<compile_context>
chip_gen: v5e
topology: v5e:2x2
jax: 0.10.0
libtpu: 0.0.40
codegen_flags: <defaults>
</compile_context>

<pallas_src>
import functools
import math

import jax
import jax.numpy as jnp
from jax.experimental import pallas as pl
from jax.experimental.pallas import tpu as pltpu

LANE = 128
_SQRT_2_OVER_PI = 0.7978845608028654


def _round_up(x, m):
    return ((x + m - 1) // m) * m


def _gelu(x):
    # TODO(synk): tanh-approximate GELU (== torch GELU(approximate='tanh')); differs from
    # PyTorch's default exact-erf GELU by <~1e-3 abs (inference tolerance) and routes through
    # the EUP tanh slot instead of a VALU-heavy erf polynomial.
    return 0.5 * x * (1.0 + jnp.tanh(_SQRT_2_OVER_PI * (x + 0.044715 * x * x * x)))


def _vmem_budget_and_limit():
    """Per-generation (tile budget, requested scoped VMEM limit)."""
    cap = None
    try:
        cap = int(pltpu.get_tpu_info().vmem_capacity_bytes)
    except Exception:
        cap = None
    if cap is not None and cap >= 100 * 1024 * 1024:      # v5e / v6e: 128 MiB physical
        return 56 * 1024 * 1024, 96 * 1024 * 1024
    return 24 * 1024 * 1024, 44 * 1024 * 1024             # v7x (64 MiB) / unknown: conservative


_TILE_BUDGET, _VMEM_LIMIT = _vmem_budget_and_limit()


def _divisor_tiles(dim, quantum, max_tile):
    """Descending divisors of `dim` that are multiples of `quantum` and <= max_tile; fallback [dim]."""
    cands = []
    t = (min(max_tile, dim) // quantum) * quantum
    while t >= quantum:
        if dim % t == 0:
            cands.append(t)
        t -= quantum
    return cands if cands else [dim]


def _pick_bb(batch, per_elem_bytes, budget):
    """Largest divisor of `batch` whose block fits `budget`; prefer >=2 grid steps (megacore)."""
    divs = [d for d in range(1, batch + 1)
            if batch % d == 0 and d * per_elem_bytes <= budget]
    if not divs:
        return 1
    multi = [d for d in divs if batch // d >= 2]
    return max(multi) if multi else max(divs)


# ----------------------------------------------------------------------------
# Pallas kernels
# ----------------------------------------------------------------------------
def _epilogue(y, b_ref, add_ref, ln_refs, act, eps):
    y = y + b_ref[...]
    if add_ref is not None:
        y = y + add_ref[...].astype(jnp.float32)
    if act == "relu":
        y = jnp.maximum(y, 0.0)
    elif act == "gelu":
        y = _gelu(y)
    for g_ref, bb_ref in ln_refs:
        mu = jnp.mean(y, axis=-1, keepdims=True)
        var = jnp.mean(jnp.square(y - mu), axis=-1, keepdims=True)
        y = (y - mu) * jax.lax.rsqrt(var + eps) * g_ref[...] + bb_ref[...]
    return y


def _fused_linear_kernel_single(*refs, act, has_add, n_ln, eps):
    """Single K step: o = epilogue(x @ w + b) with no accumulator scratch.  Grid = (M/tm,)."""
    it = iter(refs)
    x_ref = next(it); w_ref = next(it); b_ref = next(it)
    add_ref = next(it) if has_add else None
    ln_refs = [(next(it), next(it)) for _ in range(n_ln)]
    o_ref = next(it)
    y = jnp.dot(x_ref[...].astype(jnp.bfloat16), w_ref[...],
                preferred_element_type=jnp.float32)
    o_ref[...] = _epilogue(y, b_ref, add_ref, ln_refs, act, eps).astype(o_ref.dtype)


def _fused_linear_kernel_acc(*refs, act, has_add, n_ln, eps):
    """Tiled o = epilogue(x @ w + b).  Grid = (M/tm, K/tk), K innermost ("arbitrary")."""
    it = iter(refs)
    x_ref = next(it); w_ref = next(it); b_ref = next(it)
    add_ref = next(it) if has_add else None
    ln_refs = [(next(it), next(it)) for _ in range(n_ln)]
    o_ref = next(it); acc_ref = next(it)

    kk = pl.program_id(1)

    @pl.when(kk == 0)
    def _():
        acc_ref[...] = jnp.zeros_like(acc_ref)

    acc_ref[...] += jnp.dot(x_ref[...].astype(jnp.bfloat16), w_ref[...],
                            preferred_element_type=jnp.float32)

    @pl.when(kk == pl.num_programs(1) - 1)
    def _():
        o_ref[...] = _epilogue(acc_ref[...], b_ref, add_ref, ln_refs, act, eps).astype(o_ref.dtype)


def _conv_bn_relu_kernel(x_ref, w_ref, b_ref, o_ref, *, ksize, stride):
    """Bb batch elements of Conv1d(stride, pad=k//2) + BN(eval, folded) + ReLU.
    x_ref: (stride, Bb, Lph, Cin) bf16 stride-phase-decomposed padded input;
    w_ref: (k, Cin, Cout) bf16 BN-scaled weights; b_ref: (1, Cout) f32; o_ref: (Bb, Lout, Cout).
    Channel dims are zero-padded to 128 multiples in the wrapper (lane-dense loads/stores)."""
    bb, l_out, c_out = o_ref.shape
    phases = [x_ref[r] for r in range(stride)]                    # (Bb, Lph, Cin) each
    acc = jnp.zeros((bb * l_out, c_out), jnp.float32)
    for j in range(ksize):
        off = j // stride
        taps = phases[j % stride][:, off:off + l_out, :].reshape(bb * l_out, -1)
        acc = acc + jnp.dot(taps, w_ref[j], preferred_element_type=jnp.float32)
    y = jnp.maximum(acc + b_ref[...], 0.0)
    o_ref[...] = y.reshape(bb, l_out, c_out).astype(o_ref.dtype)


def _attn_block_kernel(x_ref, wqkv_ref, bqkv_ref, wo_ref, bo_ref, g_ref, beta_ref, o_ref,
                       *, n_heads, scale, eps):
    """Post-norm self-attention block for Bb batch elements (all heads in one grid step):
    o = LayerNorm(x + sum_h softmax(q_h k_h^T) v_h @ Wo[h] + bo).
    QKV weight columns are head-major grouped ([q_h|k_h|v_h] per head); Wo is pre-split per
    head so head selection is a major-dim ref index.  All dots feed bf16, accumulate f32."""
    bb, t, d = x_ref.shape
    dh = d // n_heads

    x2 = x_ref[...].astype(jnp.float32).reshape(bb * t, d)
    qkv = (jnp.dot(x2.astype(jnp.bfloat16), wqkv_ref[...],
                   preferred_element_type=jnp.float32) + bqkv_ref[...])
    qkv = qkv.reshape(bb, t, 3 * d)

    acc = jnp.zeros((bb * t, d), jnp.float32)
    for h in range(n_heads):
        lo = 3 * dh * h
        # TODO(synk): per-head q/k/v slices are sub-128-lane (Dh < 128); padding Dh up to 128
        # would make them lane-aligned but doubles the QKV-projection FLOPs, so not done here.
        q = (qkv[:, :, lo:lo + dh] * scale).astype(jnp.bfloat16)          # scale folded into q
        k = qkv[:, :, lo + dh:lo + 2 * dh].astype(jnp.bfloat16)
        v = qkv[:, :, lo + 2 * dh:lo + 3 * dh].astype(jnp.bfloat16)
        s = jnp.einsum("bqd,bkd->bqk", q, k, preferred_element_type=jnp.float32)
        m = jnp.max(s, axis=-1, keepdims=True)
        p = jnp.exp(s - m)
        p = p * pl.reciprocal(jnp.sum(p, axis=-1, keepdims=True), approx=True)
        ho = jnp.einsum("bqk,bkd->bqd", p.astype(jnp.bfloat16), v,
                        preferred_element_type=jnp.float32)
        # Accumulate straight into the output projection -> no head concat / lane relayout.
        acc = acc + jnp.dot(ho.reshape(bb * t, dh).astype(jnp.bfloat16), wo_ref[h],
                            preferred_element_type=jnp.float32)

    hres = x2 + acc + bo_ref[...]
    mu = jnp.mean(hres, axis=-1, keepdims=True)
    var = jnp.mean(jnp.square(hres - mu), axis=-1, keepdims=True)
    y = (hres - mu) * jax.lax.rsqrt(var + eps) * g_ref[...] + beta_ref[...]
    o_ref[...] = y.reshape(bb, t, d).astype(o_ref.dtype)


# ----------------------------------------------------------------------------
# Pallas wrappers
# ----------------------------------------------------------------------------
def fused_linear(x, w, b, *, act="none", add=None, lns=None, eps=1e-5, out_dtype=None):
    """o = epilogue(x @ w + b) with full-N blocks (needed for LN fusion).
    x: (M, K); w: (K, N) bf16; b: (N,); add: optional (M, N); lns: list of (gamma, beta).
    Tiles (tm, tk) derived from shapes/dtypes and the per-generation VMEM budget; single-K-step
    fast path (no accumulator scratch) whenever K fits in one tile."""
    M, K = x.shape
    Kw, N = w.shape
    assert K == Kw
    out_dtype = out_dtype if out_dtype is not None else x.dtype
    w = w.astype(jnp.bfloat16)
    n_ln = len(lns) if lns else 0

    x_bytes = jnp.dtype(x.dtype).itemsize
    add_bytes = jnp.dtype(add.dtype).itemsize if add is not None else 0
    out_bytes = jnp.dtype(out_dtype).itemsize

    def vmem_est(tm, tk):
        e = 2 * tm * tk * x_bytes + 2 * tk * N * 2 + 2 * tm * N * out_bytes
        if add is not None:
            e += 2 * tm * N * add_bytes
        e += 2 * (1 + 2 * n_ln) * N * 4
        if tk < K:
            e += tm * N * 4                     # f32 accumulator scratch
        return e

    tm_c = _divisor_tiles(M, 8, min(M, 1024))
    tk_c = _divisor_tiles(K, LANE, min(K, 4096))
    tm, tk = tm_c[-1], tk_c[-1]
    found = False
    for tmi in tm_c:                            # prefer large row tiles, then fewest K steps
        for tki in tk_c:
            if vmem_est(tmi, tki) <= _TILE_BUDGET:
                tm, tk, found = tmi, tki, True
                break
        if found:
            break

    multi_k = tk < K
    if multi_k:
        grid = (M // tm, K // tk)
        x_spec = pl.BlockSpec((tm, tk), lambda i, kk: (i, kk))
        w_spec = pl.BlockSpec((tk, N), lambda i, kk: (kk, 0))
        cmap = lambda i, kk: (0, 0)
        omap = lambda i, kk: (i, 0)
        dims = ("parallel", "arbitrary")
        scratch = [pltpu.VMEM((tm, N), jnp.float32)]
        kern = functools.partial(_fused_linear_kernel_acc, act=act,
                                 has_add=add is not None, n_ln=n_ln, eps=eps)
    else:
        grid = (M // tm,)
        x_spec = pl.BlockSpec((tm, K), lambda i: (i, 0))
        w_spec = pl.BlockSpec((K, N), lambda i: (0, 0))
        cmap = lambda i: (0, 0)
        omap = lambda i: (i, 0)
        dims = ("parallel",)
        scratch = []
        kern = functools.partial(_fused_linear_kernel_single, act=act,
                                 has_add=add is not None, n_ln=n_ln, eps=eps)

    in_specs = [x_spec, w_spec, pl.BlockSpec((1, N), cmap)]
    args = [x, w, b.reshape(1, N).astype(jnp.float32)]
    if add is not None:
        in_specs.append(pl.BlockSpec((tm, N), omap))
        args.append(add)
    if lns:
        for g, bt in lns:
            in_specs.append(pl.BlockSpec((1, N), cmap))
            in_specs.append(pl.BlockSpec((1, N), cmap))
            args.append(g.reshape(1, N).astype(jnp.float32))
            args.append(bt.reshape(1, N).astype(jnp.float32))

    return pl.pallas_call(
        kern,
        out_shape=jax.ShapeDtypeStruct((M, N), out_dtype),
        grid=grid,
        in_specs=in_specs,
        out_specs=pl.BlockSpec((tm, N), omap),
        scratch_shapes=scratch,
        compiler_params=pltpu.CompilerParams(dimension_semantics=dims,
                                             vmem_limit_bytes=_VMEM_LIMIT),
    )(*args)


def conv1d_bn_relu(x_blc, cp, stride, out_dtype=jnp.bfloat16):
    """Features-last Conv1d(stride, pad=k//2) + BatchNorm1d(eval) + ReLU (BN folded, padded to
    128-lane channels, bf16 weights/activations).  x_blc: (B, L, Cin_p) -> (B, Lout, Cout_p)."""
    B, L, Cin = x_blc.shape
    ksize, _, Cout = cp["w"].shape
    pad = ksize // 2
    Lout = (L + 2 * pad - ksize) // stride + 1
    Lp = L + 2 * pad
    Lph = -(-Lp // stride)                                         # ceil(Lp / stride)

    xp = jnp.pad(x_blc, ((0, 0), (pad, pad), (0, 0)))
    # Stride-phase decomposition so every in-kernel tap load is a contiguous sublane window.
    phases = []
    for r in range(stride):
        ph = xp[:, r::stride, :]
        if ph.shape[1] < Lph:
            ph = jnp.pad(ph, ((0, 0), (0, Lph - ph.shape[1]), (0, 0)))
        phases.append(ph)
    xph = jnp.stack(phases, axis=0)                                # (stride, B, Lph, Cin)

    xb = jnp.dtype(x_blc.dtype).itemsize
    per_elem = (3 * stride * Lph * Cin * xb                        # dbuf input block + value
                + 2 * Lout * Cout * jnp.dtype(out_dtype).itemsize  # dbuf output block
                + Lout * (Cin * 2 + Cout * 4))                     # taps + f32 accumulator
    bb = _pick_bb(B, per_elem, _TILE_BUDGET // 2)

    return pl.pallas_call(
        functools.partial(_conv_bn_relu_kernel, ksize=ksize, stride=stride),
        out_shape=jax.ShapeDtypeStruct((B, Lout, Cout), out_dtype),
        grid=(B // bb,),
        in_specs=[
            pl.BlockSpec((stride, bb, Lph, Cin), lambda b: (0, b, 0, 0)),
            pl.BlockSpec((ksize, Cin, Cout), lambda b: (0, 0, 0)),   # weights VMEM-resident
            pl.BlockSpec((1, Cout), lambda b: (0, 0)),
        ],
        out_specs=pl.BlockSpec((bb, Lout, Cout), lambda b: (b, 0, 0)),
        compiler_params=pltpu.CompilerParams(dimension_semantics=("parallel",),
                                             vmem_limit_bytes=_VMEM_LIMIT),
    )(xph, cp["w"], cp["b"])


def attention_block(x, lp, n_heads, eps=1e-5):
    """Fused post-norm self-attention block: LN1(x + OutProj(MHA(QKVProj(x)))).
    Grid over batch with Bb elements per step; weights stay VMEM-resident (constant maps)."""
    B, T, D = x.shape
    dh = D // n_heads
    scale = 1.0 / math.sqrt(dh)

    per_elem = 4 * T * D * 4 + T * 3 * D * 4 + T * T * 4 + 2 * T * D * 4
    wbytes = (D * 3 * D + D * D) * 2
    bb = _pick_bb(B, per_elem, max(_TILE_BUDGET // 2 - wbytes, per_elem))

    c2 = lambda b: (0, 0)
    c3 = lambda b: (0, 0, 0)
    return pl.pallas_call(
        functools.partial(_attn_block_kernel, n_heads=n_heads, scale=scale, eps=eps),
        out_shape=jax.ShapeDtypeStruct((B, T, D), x.dtype),
        grid=(B // bb,),
        in_specs=[
            pl.BlockSpec((bb, T, D), lambda b: (b, 0, 0)),
            pl.BlockSpec((D, 3 * D), c2),
            pl.BlockSpec((1, 3 * D), c2),
            pl.BlockSpec((n_heads, dh, D), c3),
            pl.BlockSpec((1, D), c2),
            pl.BlockSpec((1, D), c2),
            pl.BlockSpec((1, D), c2),
        ],
        out_specs=pl.BlockSpec((bb, T, D), lambda b: (b, 0, 0)),
        compiler_params=pltpu.CompilerParams(dimension_semantics=("parallel",),
                                             vmem_limit_bytes=_VMEM_LIMIT),
    )(x, lp["w_qkv"], lp["b_qkv"], lp["wo"], lp["bo"], lp["ln1_g"], lp["ln1_b"])


# ----------------------------------------------------------------------------
# One-time parameter preparation (BN folding, bf16 weights, channel padding, head regrouping)
# ----------------------------------------------------------------------------
def prepare_params(params, n_heads, eps=1e-5):
    prep = {}
    conv = []
    prev_cp = _round_up(params["conv"][0]["w"].shape[1], LANE)     # padded input channels
    prep["cin_pad"] = prev_cp
    for cp in params["conv"]:
        cout, cin, k = cp["w"].shape
        cout_p = _round_up(cout, LANE)
        s_bn = cp["gamma"] / jnp.sqrt(cp["var"] + eps)
        w = jnp.transpose(cp["w"], (2, 1, 0)) * s_bn[None, None, :]          # (k, Cin, Cout)
        b = (cp["b"] - cp["mean"]) * s_bn + cp["beta"]
        w = jnp.pad(w, ((0, 0), (0, prev_cp - cin), (0, cout_p - cout)))     # lane-dense pad
        b = jnp.pad(b, (0, cout_p - cout))
        conv.append(dict(w=w.astype(jnp.bfloat16),
                         b=b.reshape(1, cout_p).astype(jnp.float32)))
        prev_cp = cout_p
    prep["conv"] = conv

    d_model, c_conv = params["proj_w"].shape
    pw = jnp.pad(params["proj_w"].T, ((0, prev_cp - c_conv), (0, 0)))        # (C_p, d_model)
    prep["proj_w"] = pw.astype(jnp.bfloat16)
    prep["proj_b"] = params["proj_b"]
    prep["pe"] = params["pe"]

    dh = d_model // n_heads
    layers = []
    for lp in params["layers"]:
        # Head-major column grouping of the fused QKV weight/bias: [q_h | k_h | v_h] per head.
        w_qkv = (lp["w_in"].T.reshape(d_model, 3, n_heads, dh)
                 .transpose(0, 2, 1, 3).reshape(d_model, 3 * d_model))
        b_qkv = (lp["b_in"].reshape(3, n_heads, dh)
                 .transpose(1, 0, 2).reshape(1, 3 * d_model))
        layers.append(dict(
            w_qkv=w_qkv.astype(jnp.bfloat16),
            b_qkv=b_qkv.astype(jnp.float32),
            wo=lp["w_out"].T.reshape(n_heads, dh, d_model).astype(jnp.bfloat16),
            bo=lp["b_out"].reshape(1, d_model),
            ln1_g=lp["ln1_g"].reshape(1, d_model),
            ln1_b=lp["ln1_b"].reshape(1, d_model),
            w1=lp["w1"].T.astype(jnp.bfloat16), b1=lp["b1"],
            w2=lp["w2"].T.astype(jnp.bfloat16), b2=lp["b2"],
            ln2_g=lp["ln2_g"], ln2_b=lp["ln2_b"],
        ))
    prep["layers"] = layers
    prep["lnf_g"] = params["lnf_g"]
    prep["lnf_b"] = params["lnf_b"]
    return prep


# ----------------------------------------------------------------------------
# Model forward (glue in plain JAX, all hot paths in fused Pallas kernels)
# ----------------------------------------------------------------------------
def eeg_encoder_forward(x, prep, strides, n_heads):
    """x: (B, n_channels, time) -> (B, seq_len, d_model).  mask=None, use_moe=False.
    # TODO(synk): src_key_padding_mask and the MoE branch (use_moe=True) are not implemented.
    """
    h = jnp.transpose(x, (0, 2, 1))                         # NCT -> (B, L, Cin), once
    cin_p = prep["conv"][0]["w"].shape[1]
    if h.shape[-1] < cin_p:
        h = jnp.pad(h, ((0, 0), (0, 0), (0, cin_p - h.shape[-1])))   # lane-dense input channels
    h = h.astype(jnp.bfloat16)
    for cp, s in zip(prep["conv"], strides):
        h = conv1d_bn_relu(h, cp, stride=s)

    B, T, Cp = h.shape
    d_model = prep["proj_w"].shape[1]

    # Input projection with the positional-encoding add fused into the matmul epilogue.
    pe = jnp.broadcast_to(prep["pe"][:T][None], (B, T, d_model)).reshape(B * T, d_model)
    feats = fused_linear(h.reshape(B * T, Cp), prep["proj_w"], prep["proj_b"],
                         add=pe, out_dtype=jnp.float32).reshape(B, T, d_model)

    n_layers = len(prep["layers"])
    for li, lp in enumerate(prep["layers"]):
        # --- self-attention block: QKV proj + MHA + out proj + residual + LN1 (one kernel) ---
        h1 = attention_block(feats, lp, n_heads)
        h1f = h1.reshape(B * T, d_model)
        # --- feed-forward: linear1+GELU fused (bf16 d_ff activation); linear2+residual+LN2
        #     (+ encoder's final LayerNorm on the last layer) fused ---
        ff = fused_linear(h1f, lp["w1"], lp["b1"], act="gelu", out_dtype=jnp.bfloat16)
        lns = [(lp["ln2_g"], lp["ln2_b"])]
        if li == n_layers - 1:
            lns.append((prep["lnf_g"], prep["lnf_b"]))
        feats = fused_linear(ff, lp["w2"], lp["b2"], add=h1f, lns=lns,
                             out_dtype=jnp.float32).reshape(B, T, d_model)
    return feats


# ----------------------------------------------------------------------------
# Deterministic parameter initialization (synthetic, shapes follow the module)
# ----------------------------------------------------------------------------
def init_params(key, n_channels, conv_channels, kernel_sizes, d_model, n_heads,
                n_layers, d_ff, max_len=512):
    keys = iter(jax.random.split(key, 256))

    def dense(shape, fan_in):
        return jax.random.normal(next(keys), shape, jnp.float32) / math.sqrt(fan_in)

    params = {}
    conv = []
    in_c = n_channels
    for out_c, k in zip(conv_channels, kernel_sizes):
        conv.append(dict(
            w=dense((out_c, in_c, k), in_c * k),
            b=jnp.zeros((out_c,), jnp.float32),
            gamma=jnp.ones((out_c,), jnp.float32),
            beta=jnp.zeros((out_c,), jnp.float32),
            mean=jnp.zeros((out_c,), jnp.float32),
            var=jnp.ones((out_c,), jnp.float32),
        ))
        in_c = out_c
    params["conv"] = conv

    params["proj_w"] = dense((d_model, conv_channels[-1]), conv_channels[-1])
    params["proj_b"] = jnp.zeros((d_model,), jnp.float32)

    # sinusoidal positional encoding (same formula as the PyTorch module)
    pos = jnp.arange(max_len, dtype=jnp.float32)[:, None]
    div = jnp.exp(jnp.arange(0, d_model, 2, dtype=jnp.float32) * (-math.log(10000.0) / d_model))
    pe = jnp.zeros((max_len, d_model), jnp.float32)
    pe = pe.at[:, 0::2].set(jnp.sin(pos * div))
    pe = pe.at[:, 1::2].set(jnp.cos(pos * div))
    params["pe"] = pe

    layers = []
    for _ in range(n_layers):
        layers.append(dict(
            w_in=dense((3 * d_model, d_model), d_model),
            b_in=jnp.zeros((3 * d_model,), jnp.float32),
            w_out=dense((d_model, d_model), d_model),
            b_out=jnp.zeros((d_model,), jnp.float32),
            ln1_g=jnp.ones((d_model,), jnp.float32),
            ln1_b=jnp.zeros((d_model,), jnp.float32),
            w1=dense((d_ff, d_model), d_model),
            b1=jnp.zeros((d_ff,), jnp.float32),
            w2=dense((d_model, d_ff), d_ff),
            b2=jnp.zeros((d_model,), jnp.float32),
            ln2_g=jnp.ones((d_model,), jnp.float32),
            ln2_b=jnp.zeros((d_model,), jnp.float32),
        ))
    params["layers"] = layers
    params["lnf_g"] = jnp.ones((d_model,), jnp.float32)
    params["lnf_b"] = jnp.zeros((d_model,), jnp.float32)
    return params


# ----------------------------------------------------------------------------
if __name__ == "__main__":
    # Small, module-consistent config (scaled-down version of the PyTorch defaults).
    B, n_channels, time_len = 2, 8, 64
    conv_channels = [16, 32, 64]
    kernel_sizes = [7, 5, 3]
    strides = [2, 2, 2]
    d_model, n_heads, n_layers, d_ff = 32, 4, 2, 64

    key = jax.random.PRNGKey(0)
    pkey, xkey = jax.random.split(key)
    params = init_params(pkey, n_channels, conv_channels, kernel_sizes,
                         d_model, n_heads, n_layers, d_ff)
    prep = prepare_params(params, n_heads)          # BN fold, bf16 cast, pads, head regroup: once
    x = jax.random.normal(xkey, (B, n_channels, time_len), jnp.float32)

    fwd = jax.jit(functools.partial(eeg_encoder_forward,
                                    strides=tuple(strides), n_heads=n_heads))
    out = jax.block_until_ready(fwd(x, prep))

    expected_seq = time_len // (strides[0] * strides[1] * strides[2])  # 8
    assert out.shape == (B, expected_seq, d_model), out.shape
    assert bool(jnp.all(jnp.isfinite(out)))
    print("KERNEL_OK")
</pallas_src>

<mosaic_0001>
module attributes {stable_mosaic.version = 11 : i64} {
  func.func @_conv_bn_relu_kernel(%arg0: i32, %arg1: memref<2x1x35x128xbf16, #tpu.memory_space<vmem>>, %arg2: memref<7x128x128xbf16, #tpu.memory_space<vmem>>, %arg3: memref<1x128xf32, #tpu.memory_space<vmem>>, %arg4: memref<1x32x128xbf16, #tpu.memory_space<vmem>>) attributes {dimension_semantics = [#tpu.dimension_semantics<parallel>], iteration_bounds = array<i64: 2>, scalar_prefetch = 0 : i64, scratch_operands = 0 : i64, tpu.core_type = #tpu.core_type<tc>, window_params = [{transform_indices = @transform_0, window_bounds = array<i64: 2, 1, 35, 128>}, {pipeline_mode = #tpu.pipeline_mode<synchronous>, transform_indices = @transform_1, window_bounds = array<i64: 7, 128, 128>}, {pipeline_mode = #tpu.pipeline_mode<synchronous>, transform_indices = @transform_2, window_bounds = array<i64: 1, 128>}, {transform_indices = @transform_3, window_bounds = array<i64: 1, 32, 128>}]} {
    %c0 = arith.constant 0 : index
    %c0_0 = arith.constant 0 : index
    %c0_1 = arith.constant 0 : index
    %c0_2 = arith.constant 0 : index
    %0 = vector.load %arg1[%c0, %c0_0, %c0_1, %c0_2] : memref<2x1x35x128xbf16, #tpu.memory_space<vmem>>, vector<1x1x35x128xbf16>
    %1 = vector.shape_cast %0 : vector<1x1x35x128xbf16> to vector<1x35x128xbf16>
    %c1 = arith.constant 1 : index
    %c0_3 = arith.constant 0 : index
    %c0_4 = arith.constant 0 : index
    %c0_5 = arith.constant 0 : index
    %2 = vector.load %arg1[%c1, %c0_3, %c0_4, %c0_5] : memref<2x1x35x128xbf16, #tpu.memory_space<vmem>>, vector<1x1x35x128xbf16>
    %3 = vector.shape_cast %2 : vector<1x1x35x128xbf16> to vector<1x35x128xbf16>
    %cst = arith.constant 0.000000e+00 : f32
    %4 = vector.broadcast %cst : f32 to vector<32x128xf32>
    %5 = vector.extract_strided_slice %1 {offsets = [0, 0, 0], sizes = [1, 32, 128], strides = [1, 1, 1]} : vector<1x35x128xbf16> to vector<1x32x128xbf16>
    %6 = vector.shape_cast %5 : vector<1x32x128xbf16> to vector<32x128xbf16>
    %c0_6 = arith.constant 0 : index
    %c0_7 = arith.constant 0 : index
    %c0_8 = arith.constant 0 : index
    %7 = vector.load %arg2[%c0_6, %c0_7, %c0_8] : memref<7x128x128xbf16, #tpu.memory_space<vmem>>, vector<1x128x128xbf16>
    %8 = vector.shape_cast %7 : vector<1x128x128xbf16> to vector<128x128xbf16>
    %cst_9 = arith.constant dense<0.000000e+00> : vector<32x128xf32>
    %9 = tpu.matmul %6, %8, %cst_9 {dimension_numbers = #tpu.dot_dimension_numbers<[1], [0], [0], [1], [0, 0, 1, 1], [], []>} : vector<32x128xbf16>, vector<128x128xbf16>, vector<32x128xf32> -> vector<32x128xf32>
    %10 = arith.addf %4, %9 : vector<32x128xf32>
    %11 = vector.extract_strided_slice %3 {offsets = [0, 0, 0], sizes = [1, 32, 128], strides = [1, 1, 1]} : vector<1x35x128xbf16> to vector<1x32x128xbf16>
    %12 = vector.shape_cast %11 : vector<1x32x128xbf16> to vector<32x128xbf16>
    %c1_10 = arith.constant 1 : index
    %c0_11 = arith.constant 0 : index
    %c0_12 = arith.constant 0 : index
    %13 = vector.load %arg2[%c1_10, %c0_11, %c0_12] : memref<7x128x128xbf16, #tpu.memory_space<vmem>>, vector<1x128x128xbf16>
    %14 = vector.shape_cast %13 : vector<1x128x128xbf16> to vector<128x128xbf16>
    %cst_13 = arith.constant dense<0.000000e+00> : vector<32x128xf32>
    %15 = tpu.matmul %12, %14, %cst_13 {dimension_numbers = #tpu.dot_dimension_numbers<[1], [0], [0], [1], [0, 0, 1, 1], [], []>} : vector<32x128xbf16>, vector<128x128xbf16>, vector<32x128xf32> -> vector<32x128xf32>
    %16 = arith.addf %10, %15 : vector<32x128xf32>
    %17 = vector.extract_strided_slice %1 {offsets = [0, 1, 0], sizes = [1, 32, 128], strides = [1, 1, 1]} : vector<1x35x128xbf16> to vector<1x32x128xbf16>
    %18 = vector.shape_cast %17 : vector<1x32x128xbf16> to vector<32x128xbf16>
    %c2 = arith.constant 2 : index
    %c0_14 = arith.constant 0 : index
    %c0_15 = arith.constant 0 : index
    %19 = vector.load %arg2[%c2, %c0_14, %c0_15] : memref<7x128x128xbf16, #tpu.memory_space<vmem>>, vector<1x128x128xbf16>
    %20 = vector.shape_cast %19 : vector<1x128x128xbf16> to vector<128x128xbf16>
    %cst_16 = arith.constant dense<0.000000e+00> : vector<32x128xf32>
    %21 = tpu.matmul %18, %20, %cst_16 {dimension_numbers = #tpu.dot_dimension_numbers<[1], [0], [0], [1], [0, 0, 1, 1], [], []>} : vector<32x128xbf16>, vector<128x128xbf16>, vector<32x128xf32> -> vector<32x128xf32>
    %22 = arith.addf %16, %21 : vector<32x128xf32>
    %23 = vector.extract_strided_slice %3 {offsets = [0, 1, 0], sizes = [1, 32, 128], strides = [1, 1, 1]} : vector<1x35x128xbf16> to vector<1x32x128xbf16>
    %24 = vector.shape_cast %23 : vector<1x32x128xbf16> to vector<32x128xbf16>
    %c3 = arith.constant 3 : index
    %c0_17 = arith.constant 0 : index
    %c0_18 = arith.constant 0 : index
    %25 = vector.load %arg2[%c3, %c0_17, %c0_18] : memref<7x128x128xbf16, #tpu.memory_space<vmem>>, vector<1x128x128xbf16>
    %26 = vector.shape_cast %25 : vector<1x128x128xbf16> to vector<128x128xbf16>
    %cst_19 = arith.constant dense<0.000000e+00> : vector<32x128xf32>
    %27 = tpu.matmul %24, %26, %cst_19 {dimension_numbers = #tpu.dot_dimension_numbers<[1], [0], [0], [1], [0, 0, 1, 1], [], []>} : vector<32x128xbf16>, vector<128x128xbf16>, vector<32x128xf32> -> vector<32x128xf32>
    %28 = arith.addf %22, %27 : vector<32x128xf32>
    %29 = vector.extract_strided_slice %1 {offsets = [0, 2, 0], sizes = [1, 32, 128], strides = [1, 1, 1]} : vector<1x35x128xbf16> to vector<1x32x128xbf16>
    %30 = vector.shape_cast %29 : vector<1x32x128xbf16> to vector<32x128xbf16>
    %c4 = arith.constant 4 : index
    %c0_20 = arith.constant 0 : index
    %c0_21 = arith.constant 0 : index
    %31 = vector.load %arg2[%c4, %c0_20, %c0_21] : memref<7x128x128xbf16, #tpu.memory_space<vmem>>, vector<1x128x128xbf16>
    %32 = vector.shape_cast %31 : vector<1x128x128xbf16> to vector<128x128xbf16>
    %cst_22 = arith.constant dense<0.000000e+00> : vector<32x128xf32>
    %33 = tpu.matmul %30, %32, %cst_22 {dimension_numbers = #tpu.dot_dimension_numbers<[1], [0], [0], [1], [0, 0, 1, 1], [], []>} : vector<32x128xbf16>, vector<128x128xbf16>, vector<32x128xf32> -> vector<32x128xf32>
    %34 = arith.addf %28, %33 : vector<32x128xf32>
    %35 = vector.extract_strided_slice %3 {offsets = [0, 2, 0], sizes = [1, 32, 128], strides = [1, 1, 1]} : vector<1x35x128xbf16> to vector<1x32x128xbf16>
    %36 = vector.shape_cast %35 : vector<1x32x128xbf16> to vector<32x128xbf16>
    %c5 = arith.constant 5 : index
    %c0_23 = arith.constant 0 : index
    %c0_24 = arith.constant 0 : index
    %37 = vector.load %arg2[%c5, %c0_23, %c0_24] : memref<7x128x128xbf16, #tpu.memory_space<vmem>>, vector<1x128x128xbf16>
    %38 = vector.shape_cast %37 : vector<1x128x128xbf16> to vector<128x128xbf16>
    %cst_25 = arith.constant dense<0.000000e+00> : vector<32x128xf32>
    %39 = tpu.matmul %36, %38, %cst_25 {dimension_numbers = #tpu.dot_dimension_numbers<[1], [0], [0], [1], [0, 0, 1, 1], [], []>} : vector<32x128xbf16>, vector<128x128xbf16>, vector<32x128xf32> -> vector<32x128xf32>
    %40 = arith.addf %34, %39 : vector<32x128xf32>
    %41 = vector.extract_strided_slice %1 {offsets = [0, 3, 0], sizes = [1, 32, 128], strides = [1, 1, 1]} : vector<1x35x128xbf16> to vector<1x32x128xbf16>
    %42 = vector.shape_cast %41 : vector<1x32x128xbf16> to vector<32x128xbf16>
    %c6 = arith.constant 6 : index
    %c0_26 = arith.constant 0 : index
    %c0_27 = arith.constant 0 : index
    %43 = vector.load %arg2[%c6, %c0_26, %c0_27] : memref<7x128x128xbf16, #tpu.memory_space<vmem>>, vector<1x128x128xbf16>
    %44 = vector.shape_cast %43 : vector<1x128x128xbf16> to vector<128x128xbf16>
    %cst_28 = arith.constant dense<0.000000e+00> : vector<32x128xf32>
    %45 = tpu.matmul %42, %44, %cst_28 {dimension_numbers = #tpu.dot_dimension_numbers<[1], [0], [0], [1], [0, 0, 1, 1], [], []>} : vector<32x128xbf16>, vector<128x128xbf16>, vector<32x128xf32> -> vector<32x128xf32>
    %46 = arith.addf %40, %45 : vector<32x128xf32>
    %c0_29 = arith.constant 0 : index
    %c0_30 = arith.constant 0 : index
    %47 = vector.load %arg3[%c0_29, %c0_30] : memref<1x128xf32, #tpu.memory_space<vmem>>, vector<1x128xf32>
    %48 = vector.broadcast %47 : vector<1x128xf32> to vector<32x128xf32>
    %49 = arith.addf %46, %48 : vector<32x128xf32>
    %cst_31 = arith.constant 0.000000e+00 : f32
    %50 = vector.broadcast %cst_31 : f32 to vector<32x128xf32>
    %51 = arith.maximumf %49, %50 : vector<32x128xf32>
    %52 = vector.shape_cast %51 : vector<32x128xf32> to vector<1x32x128xf32>
    %53 = arith.truncf %52 : vector<1x32x128xf32> to vector<1x32x128xbf16>
    %c0_32 = arith.constant 0 : index
    %c0_33 = arith.constant 0 : index
    %c0_34 = arith.constant 0 : index
    %54 = vector.load %arg4[%c0_32, %c0_33, %c0_34] : memref<1x32x128xbf16, #tpu.memory_space<vmem>>, vector<1x32x128xbf16>
    tpu.vector_store %arg4[%c0_32, %c0_33, %c0_34], %53 {strides = array<i32>} : memref<1x32x128xbf16, #tpu.memory_space<vmem>>, vector<1x32x128xbf16>,
    return
  }
  func.func @transform_0(%arg0: i32) -> (i32, i32, i32, i32) {
    %c0_i32 = arith.constant 0 : i32
    %c0_i32_0 = arith.constant 0 : i32
    %c0_i32_1 = arith.constant 0 : i32
    %c0_i32_2 = arith.constant 0 : i32
    return %c0_i32, %arg0, %c0_i32_0, %c0_i32_1 : i32, i32, i32, i32
  }
  func.func @transform_1(%arg0: i32) -> (i32, i32, i32) {
    %c0_i32 = arith.constant 0 : i32
    %c0_i32_0 = arith.constant 0 : i32
    %c0_i32_1 = arith.constant 0 : i32
    %c0_i32_2 = arith.constant 0 : i32
    return %c0_i32, %c0_i32_0, %c0_i32_1 : i32, i32, i32
  }
  func.func @transform_2(%arg0: i32) -> (i32, i32) {
    %c0_i32 = arith.constant 0 : i32
    %c0_i32_0 = arith.constant 0 : i32
    %c0_i32_1 = arith.constant 0 : i32
    return %c0_i32, %c0_i32_0 : i32, i32
  }
  func.func @transform_3(%arg0: i32) -> (i32, i32, i32) {
    %c0_i32 = arith.constant 0 : i32
    %c0_i32_0 = arith.constant 0 : i32
    %c0_i32_1 = arith.constant 0 : i32
    return %arg0, %c0_i32, %c0_i32_0 : i32, i32, i32
  }
}

module attributes {stable_mosaic.version = 11 : i64} {
  func.func @_conv_bn_relu_kernel(%arg0: i32, %arg1: memref<2x1x18x128xbf16, #tpu.memory_space<vmem>>, %arg2: memref<5x128x128xbf16, #tpu.memory_space<vmem>>, %arg3: memref<1x128xf32, #tpu.memory_space<vmem>>, %arg4: memref<1x16x128xbf16, #tpu.memory_space<vmem>>) attributes {dimension_semantics = [#tpu.dimension_semantics<parallel>], iteration_bounds = array<i64: 2>, scalar_prefetch = 0 : i64, scratch_operands = 0 : i64, tpu.core_type = #tpu.core_type<tc>, window_params = [{transform_indices = @transform_0, window_bounds = array<i64: 2, 1, 18, 128>}, {pipeline_mode = #tpu.pipeline_mode<synchronous>, transform_indices = @transform_1, window_bounds = array<i64: 5, 128, 128>}, {pipeline_mode = #tpu.pipeline_mode<synchronous>, transform_indices = @transform_2, window_bounds = array<i64: 1, 128>}, {transform_indices = @transform_3, window_bounds = array<i64: 1, 16, 128>}]} {
    %c0 = arith.constant 0 : index
    %c0_0 = arith.constant 0 : index
    %c0_1 = arith.constant 0 : index
    %c0_2 = arith.constant 0 : index
    %0 = vector.load %arg1[%c0, %c0_0, %c0_1, %c0_2] : memref<2x1x18x128xbf16, #tpu.memory_space<vmem>>, vector<1x1x18x128xbf16>
    %1 = vector.shape_cast %0 : vector<1x1x18x128xbf16> to vector<1x18x128xbf16>
    %c1 = arith.constant 1 : index
    %c0_3 = arith.constant 0 : index
    %c0_4 = arith.constant 0 : index
    %c0_5 = arith.constant 0 : index
    %2 = vector.load %arg1[%c1, %c0_3, %c0_4, %c0_5] : memref<2x1x18x128xbf16, #tpu.memory_space<vmem>>, vector<1x1x18x128xbf16>
    %3 = vector.shape_cast %2 : vector<1x1x18x128xbf16> to vector<1x18x128xbf16>
    %cst = arith.constant 0.000000e+00 : f32
    %4 = vector.broadcast %cst : f32 to vector<16x128xf32>
    %5 = vector.extract_strided_slice %1 {offsets = [0, 0, 0], sizes = [1, 16, 128], strides = [1, 1, 1]} : vector<1x18x128xbf16> to vector<1x16x128xbf16>
    %6 = vector.shape_cast %5 : vector<1x16x128xbf16> to vector<16x128xbf16>
    %c0_6 = arith.constant 0 : index
    %c0_7 = arith.constant 0 : index
    %c0_8 = arith.constant 0 : index
    %7 = vector.load %arg2[%c0_6, %c0_7, %c0_8] : memref<5x128x128xbf16, #tpu.memory_space<vmem>>, vector<1x128x128xbf16>
    %8 = vector.shape_cast %7 : vector<1x128x128xbf16> to vector<128x128xbf16>
    %cst_9 = arith.constant dense<0.000000e+00> : vector<16x128xf32>
    %9 = tpu.matmul %6, %8, %cst_9 {dimension_numbers = #tpu.dot_dimension_numbers<[1], [0], [0], [1], [0, 0, 1, 1], [], []>} : vector<16x128xbf16>, vector<128x128xbf16>, vector<16x128xf32> -> vector<16x128xf32>
    %10 = arith.addf %4, %9 : vector<16x128xf32>
    %11 = vector.extract_strided_slice %3 {offsets = [0, 0, 0], sizes = [1, 16, 128], strides = [1, 1, 1]} : vector<1x18x128xbf16> to vector<1x16x128xbf16>
    %12 = vector.shape_cast %11 : vector<1x16x128xbf16> to vector<16x128xbf16>
    %c1_10 = arith.constant 1 : index
    %c0_11 = arith.constant 0 : index
    %c0_12 = arith.constant 0 : index
    %13 = vector.load %arg2[%c1_10, %c0_11, %c0_12] : memref<5x128x128xbf16, #tpu.memory_space<vmem>>, vector<1x128x128xbf16>
    %14 = vector.shape_cast %13 : vector<1x128x128xbf16> to vector<128x128xbf16>
    %cst_13 = arith.constant dense<0.000000e+00> : vector<16x128xf32>
    %15 = tpu.matmul %12, %14, %cst_13 {dimension_numbers = #tpu.dot_dimension_numbers<[1], [0], [0], [1], [0, 0, 1, 1], [], []>} : vector<16x128xbf16>, vector<128x128xbf16>, vector<16x128xf32> -> vector<16x128xf32>
    %16 = arith.addf %10, %15 : vector<16x128xf32>
    %17 = vector.extract_strided_slice %1 {offsets = [0, 1, 0], sizes = [1, 16, 128], strides = [1, 1, 1]} : vector<1x18x128xbf16> to vector<1x16x128xbf16>
    %18 = vector.shape_cast %17 : vector<1x16x128xbf16> to vector<16x128xbf16>
    %c2 = arith.constant 2 : index
    %c0_14 = arith.constant 0 : index
    %c0_15 = arith.constant 0 : index
    %19 = vector.load %arg2[%c2, %c0_14, %c0_15] : memref<5x128x128xbf16, #tpu.memory_space<vmem>>, vector<1x128x128xbf16>
    %20 = vector.shape_cast %19 : vector<1x128x128xbf16> to vector<128x128xbf16>
    %cst_16 = arith.constant dense<0.000000e+00> : vector<16x128xf32>
    %21 = tpu.matmul %18, %20, %cst_16 {dimension_numbers = #tpu.dot_dimension_numbers<[1], [0], [0], [1], [0, 0, 1, 1], [], []>} : vector<16x128xbf16>, vector<128x128xbf16>, vector<16x128xf32> -> vector<16x128xf32>
    %22 = arith.addf %16, %21 : vector<16x128xf32>
    %23 = vector.extract_strided_slice %3 {offsets = [0, 1, 0], sizes = [1, 16, 128], strides = [1, 1, 1]} : vector<1x18x128xbf16> to vector<1x16x128xbf16>
    %24 = vector.shape_cast %23 : vector<1x16x128xbf16> to vector<16x128xbf16>
    %c3 = arith.constant 3 : index
    %c0_17 = arith.constant 0 : index
    %c0_18 = arith.constant 0 : index
    %25 = vector.load %arg2[%c3, %c0_17, %c0_18] : memref<5x128x128xbf16, #tpu.memory_space<vmem>>, vector<1x128x128xbf16>
    %26 = vector.shape_cast %25 : vector<1x128x128xbf16> to vector<128x128xbf16>
    %cst_19 = arith.constant dense<0.000000e+00> : vector<16x128xf32>
    %27 = tpu.matmul %24, %26, %cst_19 {dimension_numbers = #tpu.dot_dimension_numbers<[1], [0], [0], [1], [0, 0, 1, 1], [], []>} : vector<16x128xbf16>, vector<128x128xbf16>, vector<16x128xf32> -> vector<16x128xf32>
    %28 = arith.addf %22, %27 : vector<16x128xf32>
    %29 = vector.extract_strided_slice %1 {offsets = [0, 2, 0], sizes = [1, 16, 128], strides = [1, 1, 1]} : vector<1x18x128xbf16> to vector<1x16x128xbf16>
    %30 = vector.shape_cast %29 : vector<1x16x128xbf16> to vector<16x128xbf16>
    %c4 = arith.constant 4 : index
    %c0_20 = arith.constant 0 : index
    %c0_21 = arith.constant 0 : index
    %31 = vector.load %arg2[%c4, %c0_20, %c0_21] : memref<5x128x128xbf16, #tpu.memory_space<vmem>>, vector<1x128x128xbf16>
    %32 = vector.shape_cast %31 : vector<1x128x128xbf16> to vector<128x128xbf16>
    %cst_22 = arith.constant dense<0.000000e+00> : vector<16x128xf32>
    %33 = tpu.matmul %30, %32, %cst_22 {dimension_numbers = #tpu.dot_dimension_numbers<[1], [0], [0], [1], [0, 0, 1, 1], [], []>} : vector<16x128xbf16>, vector<128x128xbf16>, vector<16x128xf32> -> vector<16x128xf32>
    %34 = arith.addf %28, %33 : vector<16x128xf32>
    %c0_23 = arith.constant 0 : index
    %c0_24 = arith.constant 0 : index
    %35 = vector.load %arg3[%c0_23, %c0_24] : memref<1x128xf32, #tpu.memory_space<vmem>>, vector<1x128xf32>
    %36 = vector.broadcast %35 : vector<1x128xf32> to vector<16x128xf32>
    %37 = arith.addf %34, %36 : vector<16x128xf32>
    %cst_25 = arith.constant 0.000000e+00 : f32
    %38 = vector.broadcast %cst_25 : f32 to vector<16x128xf32>
    %39 = arith.maximumf %37, %38 : vector<16x128xf32>
    %40 = vector.shape_cast %39 : vector<16x128xf32> to vector<1x16x128xf32>
    %41 = arith.truncf %40 : vector<1x16x128xf32> to vector<1x16x128xbf16>
    %c0_26 = arith.constant 0 : index
    %c0_27 = arith.constant 0 : index
    %c0_28 = arith.constant 0 : index
    %42 = vector.load %arg4[%c0_26, %c0_27, %c0_28] : memref<1x16x128xbf16, #tpu.memory_space<vmem>>, vector<1x16x128xbf16>
    tpu.vector_store %arg4[%c0_26, %c0_27, %c0_28], %41 {strides = array<i32>} : memref<1x16x128xbf16, #tpu.memory_space<vmem>>, vector<1x16x128xbf16>,
    return
  }
  func.func @transform_0(%arg0: i32) -> (i32, i32, i32, i32) {
    %c0_i32 = arith.constant 0 : i32
    %c0_i32_0 = arith.constant 0 : i32
    %c0_i32_1 = arith.constant 0 : i32
    %c0_i32_2 = arith.constant 0 : i32
    return %c0_i32, %arg0, %c0_i32_0, %c0_i32_1 : i32, i32, i32, i32
  }
  func.func @transform_1(%arg0: i32) -> (i32, i32, i32) {
    %c0_i32 = arith.constant 0 : i32
    %c0_i32_0 = arith.constant 0 : i32
    %c0_i32_1 = arith.constant 0 : i32
    %c0_i32_2 = arith.constant 0 : i32
    return %c0_i32, %c0_i32_0, %c0_i32_1 : i32, i32, i32
  }
  func.func @transform_2(%arg0: i32) -> (i32, i32) {
    %c0_i32 = arith.constant 0 : i32
    %c0_i32_0 = arith.constant 0 : i32
    %c0_i32_1 = arith.constant 0 : i32
    return %c0_i32, %c0_i32_0 : i32, i32
  }
  func.func @transform_3(%arg0: i32) -> (i32, i32, i32) {
    %c0_i32 = arith.constant 0 : i32
    %c0_i32_0 = arith.constant 0 : i32
    %c0_i32_1 = arith.constant 0 : i32
    return %arg0, %c0_i32, %c0_i32_0 : i32, i32, i32
  }
}

module attributes {stable_mosaic.version = 11 : i64} {
  func.func @_conv_bn_relu_kernel(%arg0: i32, %arg1: memref<2x1x9x128xbf16, #tpu.memory_space<vmem>>, %arg2: memref<3x128x128xbf16, #tpu.memory_space<vmem>>, %arg3: memref<1x128xf32, #tpu.memory_space<vmem>>, %arg4: memref<1x8x128xbf16, #tpu.memory_space<vmem>>) attributes {dimension_semantics = [#tpu.dimension_semantics<parallel>], iteration_bounds = array<i64: 2>, scalar_prefetch = 0 : i64, scratch_operands = 0 : i64, tpu.core_type = #tpu.core_type<tc>, window_params = [{transform_indices = @transform_0, window_bounds = array<i64: 2, 1, 9, 128>}, {pipeline_mode = #tpu.pipeline_mode<synchronous>, transform_indices = @transform_1, window_bounds = array<i64: 3, 128, 128>}, {pipeline_mode = #tpu.pipeline_mode<synchronous>, transform_indices = @transform_2, window_bounds = array<i64: 1, 128>}, {transform_indices = @transform_3, window_bounds = array<i64: 1, 8, 128>}]} {
    %c0 = arith.constant 0 : index
    %c0_0 = arith.constant 0 : index
    %c0_1 = arith.constant 0 : index
    %c0_2 = arith.constant 0 : index
    %0 = vector.load %arg1[%c0, %c0_0, %c0_1, %c0_2] : memref<2x1x9x128xbf16, #tpu.memory_space<vmem>>, vector<1x1x9x128xbf16>
    %1 = vector.shape_cast %0 : vector<1x1x9x128xbf16> to vector<1x9x128xbf16>
    %c1 = arith.constant 1 : index
    %c0_3 = arith.constant 0 : index
    %c0_4 = arith.constant 0 : index
    %c0_5 = arith.constant 0 : index
    %2 = vector.load %arg1[%c1, %c0_3, %c0_4, %c0_5] : memref<2x1x9x128xbf16, #tpu.memory_space<vmem>>, vector<1x1x9x128xbf16>
    %3 = vector.shape_cast %2 : vector<1x1x9x128xbf16> to vector<1x9x128xbf16>
    %cst = arith.constant 0.000000e+00 : f32
    %4 = vector.broadcast %cst : f32 to vector<8x128xf32>
    %5 = vector.extract_strided_slice %1 {offsets = [0, 0, 0], sizes = [1, 8, 128], strides = [1, 1, 1]} : vector<1x9x128xbf16> to vector<1x8x128xbf16>
    %6 = vector.shape_cast %5 : vector<1x8x128xbf16> to vector<8x128xbf16>
    %c0_6 = arith.constant 0 : index
    %c0_7 = arith.constant 0 : index
    %c0_8 = arith.constant 0 : index
    %7 = vector.load %arg2[%c0_6, %c0_7, %c0_8] : memref<3x128x128xbf16, #tpu.memory_space<vmem>>, vector<1x128x128xbf16>
    %8 = vector.shape_cast %7 : vector<1x128x128xbf16> to vector<128x128xbf16>
    %cst_9 = arith.constant dense<0.000000e+00> : vector<8x128xf32>
    %9 = tpu.matmul %6, %8, %cst_9 {dimension_numbers = #tpu.dot_dimension_numbers<[1], [0], [0], [1], [0, 0, 1, 1], [], []>} : vector<8x128xbf16>, vector<128x128xbf16>, vector<8x128xf32> -> vector<8x128xf32>
    %10 = arith.addf %4, %9 : vector<8x128xf32>
    %11 = vector.extract_strided_slice %3 {offsets = [0, 0, 0], sizes = [1, 8, 128], strides = [1, 1, 1]} : vector<1x9x128xbf16> to vector<1x8x128xbf16>
    %12 = vector.shape_cast %11 : vector<1x8x128xbf16> to vector<8x128xbf16>
    %c1_10 = arith.constant 1 : index
    %c0_11 = arith.constant 0 : index
    %c0_12 = arith.constant 0 : index
    %13 = vector.load %arg2[%c1_10, %c0_11, %c0_12] : memref<3x128x128xbf16, #tpu.memory_space<vmem>>, vector<1x128x128xbf16>
    %14 = vector.shape_cast %13 : vector<1x128x128xbf16> to vector<128x128xbf16>
    %cst_13 = arith.constant dense<0.000000e+00> : vector<8x128xf32>
    %15 = tpu.matmul %12, %14, %cst_13 {dimension_numbers = #tpu.dot_dimension_numbers<[1], [0], [0], [1], [0, 0, 1, 1], [], []>} : vector<8x128xbf16>, vector<128x128xbf16>, vector<8x128xf32> -> vector<8x128xf32>
    %16 = arith.addf %10, %15 : vector<8x128xf32>
    %17 = vector.extract_strided_slice %1 {offsets = [0, 1, 0], sizes = [1, 8, 128], strides = [1, 1, 1]} : vector<1x9x128xbf16> to vector<1x8x128xbf16>
    %18 = vector.shape_cast %17 : vector<1x8x128xbf16> to vector<8x128xbf16>
    %c2 = arith.constant 2 : index
    %c0_14 = arith.constant 0 : index
    %c0_15 = arith.constant 0 : index
    %19 = vector.load %arg2[%c2, %c0_14, %c0_15] : memref<3x128x128xbf16, #tpu.memory_space<vmem>>, vector<1x128x128xbf16>
    %20 = vector.shape_cast %19 : vector<1x128x128xbf16> to vector<128x128xbf16>
    %cst_16 = arith.constant dense<0.000000e+00> : vector<8x128xf32>
    %21 = tpu.matmul %18, %20, %cst_16 {dimension_numbers = #tpu.dot_dimension_numbers<[1], [0], [0], [1], [0, 0, 1, 1], [], []>} : vector<8x128xbf16>, vector<128x128xbf16>, vector<8x128xf32> -> vector<8x128xf32>
    %22 = arith.addf %16, %21 : vector<8x128xf32>
    %c0_17 = arith.constant 0 : index
    %c0_18 = arith.constant 0 : index
    %23 = vector.load %arg3[%c0_17, %c0_18] : memref<1x128xf32, #tpu.memory_space<vmem>>, vector<1x128xf32>
    %24 = vector.broadcast %23 : vector<1x128xf32> to vector<8x128xf32>
    %25 = arith.addf %22, %24 : vector<8x128xf32>
    %cst_19 = arith.constant 0.000000e+00 : f32
    %26 = vector.broadcast %cst_19 : f32 to vector<8x128xf32>
    %27 = arith.maximumf %25, %26 : vector<8x128xf32>
    %28 = vector.shape_cast %27 : vector<8x128xf32> to vector<1x8x128xf32>
    %29 = arith.truncf %28 : vector<1x8x128xf32> to vector<1x8x128xbf16>
    %c0_20 = arith.constant 0 : index
    %c0_21 = arith.constant 0 : index
    %c0_22 = arith.constant 0 : index
    %30 = vector.load %arg4[%c0_20, %c0_21, %c0_22] : memref<1x8x128xbf16, #tpu.memory_space<vmem>>, vector<1x8x128xbf16>
    tpu.vector_store %arg4[%c0_20, %c0_21, %c0_22], %29 {strides = array<i32>} : memref<1x8x128xbf16, #tpu.memory_space<vmem>>, vector<1x8x128xbf16>,
    return
  }
  func.func @transform_0(%arg0: i32) -> (i32, i32, i32, i32) {
    %c0_i32 = arith.constant 0 : i32
    %c0_i32_0 = arith.constant 0 : i32
    %c0_i32_1 = arith.constant 0 : i32
    %c0_i32_2 = arith.constant 0 : i32
    return %c0_i32, %arg0, %c0_i32_0, %c0_i32_1 : i32, i32, i32, i32
  }
  func.func @transform_1(%arg0: i32) -> (i32, i32, i32) {
    %c0_i32 = arith.constant 0 : i32
    %c0_i32_0 = arith.constant 0 : i32
    %c0_i32_1 = arith.constant 0 : i32
    %c0_i32_2 = arith.constant 0 : i32
    return %c0_i32, %c0_i32_0, %c0_i32_1 : i32, i32, i32
  }
  func.func @transform_2(%arg0: i32) -> (i32, i32) {
    %c0_i32 = arith.constant 0 : i32
    %c0_i32_0 = arith.constant 0 : i32
    %c0_i32_1 = arith.constant 0 : i32
    return %c0_i32, %c0_i32_0 : i32, i32
  }
  func.func @transform_3(%arg0: i32) -> (i32, i32, i32) {
    %c0_i32 = arith.constant 0 : i32
    %c0_i32_0 = arith.constant 0 : i32
    %c0_i32_1 = arith.constant 0 : i32
    return %arg0, %c0_i32, %c0_i32_0 : i32, i32, i32
  }
}

module attributes {stable_mosaic.version = 11 : i64} {
  func.func @_fused_linear_kernel_single(%arg0: i32, %arg1: memref<16x128xbf16, #tpu.memory_space<vmem>>, %arg2: memref<128x32xbf16, #tpu.memory_space<vmem>>, %arg3: memref<1x32xf32, #tpu.memory_space<vmem>>, %arg4: memref<16x32xf32, #tpu.memory_space<vmem>>, %arg5: memref<16x32xf32, #tpu.memory_space<vmem>>) attributes {dimension_semantics = [#tpu.dimension_semantics<parallel>], iteration_bounds = array<i64: 1>, scalar_prefetch = 0 : i64, scratch_operands = 0 : i64, tpu.core_type = #tpu.core_type<tc>, window_params = [{transform_indices = @transform_0, window_bounds = array<i64: 16, 128>}, {pipeline_mode = #tpu.pipeline_mode<synchronous>, transform_indices = @transform_1, window_bounds = array<i64: 128, 32>}, {pipeline_mode = #tpu.pipeline_mode<synchronous>, transform_indices = @transform_2, window_bounds = array<i64: 1, 32>}, {transform_indices = @transform_3, window_bounds = array<i64: 16, 32>}, {transform_indices = @transform_4, window_bounds = array<i64: 16, 32>}]} {
    %c0 = arith.constant 0 : index
    %c0_0 = arith.constant 0 : index
    %0 = vector.load %arg1[%c0, %c0_0] : memref<16x128xbf16, #tpu.memory_space<vmem>>, vector<16x128xbf16>
    %c0_1 = arith.constant 0 : index
    %c0_2 = arith.constant 0 : index
    %1 = vector.load %arg2[%c0_1, %c0_2] : memref<128x32xbf16, #tpu.memory_space<vmem>>, vector<128x32xbf16>
    %cst = arith.constant dense<0.000000e+00> : vector<16x32xf32>
    %2 = tpu.matmul %0, %1, %cst {dimension_numbers = #tpu.dot_dimension_numbers<[1], [0], [0], [1], [0, 0, 1, 1], [], []>} : vector<16x128xbf16>, vector<128x32xbf16>, vector<16x32xf32> -> vector<16x32xf32>
    %c0_3 = arith.constant 0 : index
    %c0_4 = arith.constant 0 : index
    %3 = vector.load %arg3[%c0_3, %c0_4] : memref<1x32xf32, #tpu.memory_space<vmem>>, vector<1x32xf32>
    %4 = vector.broadcast %3 : vector<1x32xf32> to vector<16x32xf32>
    %5 = arith.addf %2, %4 : vector<16x32xf32>
    %c0_5 = arith.constant 0 : index
    %c0_6 = arith.constant 0 : index
    %6 = vector.load %arg4[%c0_5, %c0_6] : memref<16x32xf32, #tpu.memory_space<vmem>>, vector<16x32xf32>
    %7 = arith.addf %5, %6 : vector<16x32xf32>
    %c0_7 = arith.constant 0 : index
    %c0_8 = arith.constant 0 : index
    %8 = vector.load %arg5[%c0_7, %c0_8] : memref<16x32xf32, #tpu.memory_space<vmem>>, vector<16x32xf32>
    tpu.vector_store %arg5[%c0_7, %c0_8], %7 {strides = array<i32>} : memref<16x32xf32, #tpu.memory_space<vmem>>, vector<16x32xf32>,
    return
  }
  func.func @transform_0(%arg0: i32) -> (i32, i32) {
    %c0_i32 = arith.constant 0 : i32
    %c0_i32_0 = arith.constant 0 : i32
    return %arg0, %c0_i32 : i32, i32
  }
  func.func @transform_1(%arg0: i32) -> (i32, i32) {
    %c0_i32 = arith.constant 0 : i32
    %c0_i32_0 = arith.constant 0 : i32
    %c0_i32_1 = arith.constant 0 : i32
    return %c0_i32, %c0_i32_0 : i32, i32
  }
  func.func @transform_2(%arg0: i32) -> (i32, i32) {
    %c0_i32 = arith.constant 0 : i32
    %c0_i32_0 = arith.constant 0 : i32
    %c0_i32_1 = arith.constant 0 : i32
    return %c0_i32, %c0_i32_0 : i32, i32
  }
  func.func @transform_3(%arg0: i32) -> (i32, i32) {
    %c0_i32 = arith.constant 0 : i32
    %c0_i32_0 = arith.constant 0 : i32
    return %arg0, %c0_i32 : i32, i32
  }
  func.func @transform_4(%arg0: i32) -> (i32, i32) {
    %c0_i32 = arith.constant 0 : i32
    %c0_i32_0 = arith.constant 0 : i32
    return %arg0, %c0_i32 : i32, i32
  }
}

module attributes {stable_mosaic.version = 11 : i64} {
  func.func @_attn_block_kernel(%arg0: i32, %arg1: memref<1x8x32xf32, #tpu.memory_space<vmem>>, %arg2: memref<32x96xbf16, #tpu.memory_space<vmem>>, %arg3: memref<1x96xf32, #tpu.memory_space<vmem>>, %arg4: memref<4x8x32xbf16, #tpu.memory_space<vmem>>, %arg5: memref<1x32xf32, #tpu.memory_space<vmem>>, %arg6: memref<1x32xf32, #tpu.memory_space<vmem>>, %arg7: memref<1x32xf32, #tpu.memory_space<vmem>>, %arg8: memref<1x8x32xf32, #tpu.memory_space<vmem>>) attributes {dimension_semantics = [#tpu.dimension_semantics<parallel>], iteration_bounds = array<i64: 2>, scalar_prefetch = 0 : i64, scratch_operands = 0 : i64, tpu.core_type = #tpu.core_type<tc>, window_params = [{transform_indices = @transform_0, window_bounds = array<i64: 1, 8, 32>}, {pipeline_mode = #tpu.pipeline_mode<synchronous>, transform_indices = @transform_1, window_bounds = array<i64: 32, 96>}, {pipeline_mode = #tpu.pipeline_mode<synchronous>, transform_indices = @transform_2, window_bounds = array<i64: 1, 96>}, {pipeline_mode = #tpu.pipeline_mode<synchronous>, transform_indices = @transform_3, window_bounds = array<i64: 4, 8, 32>}, {pipeline_mode = #tpu.pipeline_mode<synchronous>, transform_indices = @transform_4, window_bounds = array<i64: 1, 32>}, {pipeline_mode = #tpu.pipeline_mode<synchronous>, transform_indices = @transform_5, window_bounds = array<i64: 1, 32>}, {pipeline_mode = #tpu.pipeline_mode<synchronous>, transform_indices = @transform_6, window_bounds = array<i64: 1, 32>}, {transform_indices = @transform_7, window_bounds = array<i64: 1, 8, 32>}]} {
    %c0 = arith.constant 0 : index
    %c0_0 = arith.constant 0 : index
    %c0_1 = arith.constant 0 : index
    %0 = vector.load %arg1[%c0, %c0_0, %c0_1] : memref<1x8x32xf32, #tpu.memory_space<vmem>>, vector<1x8x32xf32>
    %1 = vector.shape_cast %0 : vector<1x8x32xf32> to vector<8x32xf32>
    %2 = arith.truncf %1 : vector<8x32xf32> to vector<8x32xbf16>
    %c0_2 = arith.constant 0 : index
    %c0_3 = arith.constant 0 : index
    %3 = vector.load %arg2[%c0_2, %c0_3] : memref<32x96xbf16, #tpu.memory_space<vmem>>, vector<32x96xbf16>
    %cst = arith.constant dense<0.000000e+00> : vector<8x96xf32>
    %4 = tpu.matmul %2, %3, %cst {dimension_numbers = #tpu.dot_dimension_numbers<[1], [0], [0], [1], [0, 0, 1, 1], [], []>} : vector<8x32xbf16>, vector<32x96xbf16>, vector<8x96xf32> -> vector<8x96xf32>
    %c0_4 = arith.constant 0 : index
    %c0_5 = arith.constant 0 : index
    %5 = vector.load %arg3[%c0_4, %c0_5] : memref<1x96xf32, #tpu.memory_space<vmem>>, vector<1x96xf32>
    %6 = vector.broadcast %5 : vector<1x96xf32> to vector<8x96xf32>
    %7 = arith.addf %4, %6 : vector<8x96xf32>
    %8 = vector.shape_cast %7 : vector<8x96xf32> to vector<1x8x96xf32>
    %cst_6 = arith.constant 0.000000e+00 : f32
    %9 = vector.broadcast %cst_6 : f32 to vector<8x32xf32>
    %10 = vector.extract_strided_slice %8 {offsets = [0, 0, 0], sizes = [1, 8, 8], strides = [1, 1, 1]} : vector<1x8x96xf32> to vector<1x8x8xf32>
    %cst_7 = arith.constant 0.353553385 : f32
    %11 = vector.broadcast %cst_7 : f32 to vector<1x8x8xf32>
    %12 = arith.mulf %10, %11 : vector<1x8x8xf32>
    %13 = arith.truncf %12 : vector<1x8x8xf32> to vector<1x8x8xbf16>
    %14 = vector.extract_strided_slice %8 {offsets = [0, 0, 8], sizes = [1, 8, 8], strides = [1, 1, 1]} : vector<1x8x96xf32> to vector<1x8x8xf32>
    %15 = arith.truncf %14 : vector<1x8x8xf32> to vector<1x8x8xbf16>
    %16 = vector.extract_strided_slice %8 {offsets = [0, 0, 16], sizes = [1, 8, 8], strides = [1, 1, 1]} : vector<1x8x96xf32> to vector<1x8x8xf32>
    %17 = arith.truncf %16 : vector<1x8x8xf32> to vector<1x8x8xbf16>
    "tpu.trace_start"() <{level = 10 : i32, message = "bqd,bkd->bqk"}> : () -> ()
    %cst_8 = arith.constant dense<0.000000e+00> : vector<1x8x8xf32>
    %18 = tpu.matmul %13, %15, %cst_8 {dimension_numbers = #tpu.dot_dimension_numbers<[2], [2], [1], [1], [0, 0, 0, 1, 1, 1], [0], [0]>} : vector<1x8x8xbf16>, vector<1x8x8xbf16>, vector<1x8x8xf32> -> vector<1x8x8xf32>
    "tpu.trace_stop"() : () -> ()
    %cst_9 = arith.constant dense<0xFF800000> : vector<1x8xf32>
    %19 = vector.multi_reduction <maximumf>, %18, %cst_9 [2] : vector<1x8x8xf32> to vector<1x8xf32>
    %20 = vector.shape_cast %19 : vector<1x8xf32> to vector<1x8x1xf32>
    %21 = vector.broadcast %20 : vector<1x8x1xf32> to vector<1x8x8xf32>
    %22 = arith.subf %18, %21 : vector<1x8x8xf32>
    %23 = math.exp %22 : vector<1x8x8xf32>
    %cst_10 = arith.constant dense<0.000000e+00> : vector<1x8xf32>
    %24 = vector.multi_reduction <add>, %23, %cst_10 [2] : vector<1x8x8xf32> to vector<1x8xf32>
    %25 = vector.shape_cast %24 : vector<1x8xf32> to vector<1x8x1xf32>
    %26 = tpu.reciprocal %25 {approx = true} : vector<1x8x1xf32> -> vector<1x8x1xf32>
    %27 = vector.broadcast %26 : vector<1x8x1xf32> to vector<1x8x8xf32>
    %28 = arith.mulf %23, %27 : vector<1x8x8xf32>
    %29 = arith.truncf %28 : vector<1x8x8xf32> to vector<1x8x8xbf16>
    "tpu.trace_start"() <{level = 10 : i32, message = "bqk,bkd->bqd"}> : () -> ()
    %cst_11 = arith.constant dense<0.000000e+00> : vector<1x8x8xf32>
    %30 = tpu.matmul %29, %17, %cst_11 {dimension_numbers = #tpu.dot_dimension_numbers<[2], [1], [1], [2], [0, 0, 0, 1, 1, 2], [0], [0]>} : vector<1x8x8xbf16>, vector<1x8x8xbf16>, vector<1x8x8xf32> -> vector<1x8x8xf32>
    "tpu.trace_stop"() : () -> ()
    %31 = vector.shape_cast %30 : vector<1x8x8xf32> to vector<8x8xf32>
    %32 = arith.truncf %31 : vector<8x8xf32> to vector<8x8xbf16>
    %c0_12 = arith.constant 0 : index
    %c0_13 = arith.constant 0 : index
    %c0_14 = arith.constant 0 : index
    %33 = vector.load %arg4[%c0_12, %c0_13, %c0_14] : memref<4x8x32xbf16, #tpu.memory_space<vmem>>, vector<1x8x32xbf16>
    %34 = vector.shape_cast %33 : vector<1x8x32xbf16> to vector<8x32xbf16>
    %cst_15 = arith.constant dense<0.000000e+00> : vector<8x32xf32>
    %35 = tpu.matmul %32, %34, %cst_15 {dimension_numbers = #tpu.dot_dimension_numbers<[1], [0], [0], [1], [0, 0, 1, 1], [], []>} : vector<8x8xbf16>, vector<8x32xbf16>, vector<8x32xf32> -> vector<8x32xf32>
    %36 = arith.addf %9, %35 : vector<8x32xf32>
    %37 = vector.extract_strided_slice %8 {offsets = [0, 0, 24], sizes = [1, 8, 8], strides = [1, 1, 1]} : vector<1x8x96xf32> to vector<1x8x8xf32>
    %cst_16 = arith.constant 0.353553385 : f32
    %38 = vector.broadcast %cst_16 : f32 to vector<1x8x8xf32>
    %39 = arith.mulf %37, %38 : vector<1x8x8xf32>
    %40 = arith.truncf %39 : vector<1x8x8xf32> to vector<1x8x8xbf16>
    %41 = vector.extract_strided_slice %8 {offsets = [0, 0, 32], sizes = [1, 8, 8], strides = [1, 1, 1]} : vector<1x8x96xf32> to vector<1x8x8xf32>
    %42 = arith.truncf %41 : vector<1x8x8xf32> to vector<1x8x8xbf16>
    %43 = vector.extract_strided_slice %8 {offsets = [0, 0, 40], sizes = [1, 8, 8], strides = [1, 1, 1]} : vector<1x8x96xf32> to vector<1x8x8xf32>
    %44 = arith.truncf %43 : vector<1x8x8xf32> to vector<1x8x8xbf16>
    "tpu.trace_start"() <{level = 10 : i32, message = "bqd,bkd->bqk"}> : () -> ()
    %cst_17 = arith.constant dense<0.000000e+00> : vector<1x8x8xf32>
    %45 = tpu.matmul %40, %42, %cst_17 {dimension_numbers = #tpu.dot_dimension_numbers<[2], [2], [1], [1], [0, 0, 0, 1, 1, 1], [0], [0]>} : vector<1x8x8xbf16>, vector<1x8x8xbf16>, vector<1x8x8xf32> -> vector<1x8x8xf32>
    "tpu.trace_stop"() : () -> ()
    %cst_18 = arith.constant dense<0xFF800000> : vector<1x8xf32>
    %46 = vector.multi_reduction <maximumf>, %45, %cst_18 [2] : vector<1x8x8xf32> to vector<1x8xf32>
    %47 = vector.shape_cast %46 : vector<1x8xf32> to vector<1x8x1xf32>
    %48 = vector.broadcast %47 : vector<1x8x1xf32> to vector<1x8x8xf32>
    %49 = arith.subf %45, %48 : vector<1x8x8xf32>
    %50 = math.exp %49 : vector<1x8x8xf32>
    %cst_19 = arith.constant dense<0.000000e+00> : vector<1x8xf32>
    %51 = vector.multi_reduction <add>, %50, %cst_19 [2] : vector<1x8x8xf32> to vector<1x8xf32>
    %52 = vector.shape_cast %51 : vector<1x8xf32> to vector<1x8x1xf32>
    %53 = tpu.reciprocal %52 {approx = true} : vector<1x8x1xf32> -> vector<1x8x1xf32>
    %54 = vector.broadcast %53 : vector<1x8x1xf32> to vector<1x8x8xf32>
    %55 = arith.mulf %50, %54 : vector<1x8x8xf32>
    %56 = arith.truncf %55 : vector<1x8x8xf32> to vector<1x8x8xbf16>
    "tpu.trace_start"() <{level = 10 : i32, message = "bqk,bkd->bqd"}> : () -> ()
    %cst_20 = arith.constant dense<0.000000e+00> : vector<1x8x8xf32>
    %57 = tpu.matmul %56, %44, %cst_20 {dimension_numbers = #tpu.dot_dimension_numbers<[2], [1], [1], [2], [0, 0, 0, 1, 1, 2], [0], [0]>} : vector<1x8x8xbf16>, vector<1x8x8xbf16>, vector<1x8x8xf32> -> vector<1x8x8xf32>
    "tpu.trace_stop"() : () -> ()
    %58 = vector.shape_cast %57 : vector<1x8x8xf32> to vector<8x8xf32>
    %59 = arith.truncf %58 : vector<8x8xf32> to vector<8x8xbf16>
    %c1 = arith.constant 1 : index
    %c0_21 = arith.constant 0 : index
    %c0_22 = arith.constant 0 : index
    %60 = vector.load %arg4[%c1, %c0_21, %c0_22] : memref<4x8x32xbf16, #tpu.memory_space<vmem>>, vector<1x8x32xbf16>
    %61 = vector.shape_cast %60 : vector<1x8x32xbf16> to vector<8x32xbf16>
    %cst_23 = arith.constant dense<0.000000e+00> : vector<8x32xf32>
    %62 = tpu.matmul %59, %61, %cst_23 {dimension_numbers = #tpu.dot_dimension_numbers<[1], [0], [0], [1], [0, 0, 1, 1], [], []>} : vector<8x8xbf16>, vector<8x32xbf16>, vector<8x32xf32> -> vector<8x32xf32>
    %63 = arith.addf %36, %62 : vector<8x32xf32>
    %64 = vector.extract_strided_slice %8 {offsets = [0, 0, 48], sizes = [1, 8, 8], strides = [1, 1, 1]} : vector<1x8x96xf32> to vector<1x8x8xf32>
    %cst_24 = arith.constant 0.353553385 : f32
    %65 = vector.broadcast %cst_24 : f32 to vector<1x8x8xf32>
    %66 = arith.mulf %64, %65 : vector<1x8x8xf32>
    %67 = arith.truncf %66 : vector<1x8x8xf32> to vector<1x8x8xbf16>
    %68 = vector.extract_strided_slice %8 {offsets = [0, 0, 56], sizes = [1, 8, 8], strides = [1, 1, 1]} : vector<1x8x96xf32> to vector<1x8x8xf32>
    %69 = arith.truncf %68 : vector<1x8x8xf32> to vector<1x8x8xbf16>
    %70 = vector.extract_strided_slice %8 {offsets = [0, 0, 64], sizes = [1, 8, 8], strides = [1, 1, 1]} : vector<1x8x96xf32> to vector<1x8x8xf32>
    %71 = arith.truncf %70 : vector<1x8x8xf32> to vector<1x8x8xbf16>
    "tpu.trace_start"() <{level = 10 : i32, message = "bqd,bkd->bqk"}> : () -> ()
    %cst_25 = arith.constant dense<0.000000e+00> : vector<1x8x8xf32>
    %72 = tpu.matmul %67, %69, %cst_25 {dimension_numbers = #tpu.dot_dimension_numbers<[2], [2], [1], [1], [0, 0, 0, 1, 1, 1], [0], [0]>} : vector<1x8x8xbf16>, vector<1x8x8xbf16>, vector<1x8x8xf32> -> vector<1x8x8xf32>
    "tpu.trace_stop"() : () -> ()
    %cst_26 = arith.constant dense<0xFF800000> : vector<1x8xf32>
    %73 = vector.multi_reduction <maximumf>, %72, %cst_26 [2] : vector<1x8x8xf32> to vector<1x8xf32>
    %74 = vector.shape_cast %73 : vector<1x8xf32> to vector<1x8x1xf32>
    %75 = vector.broadcast %74 : vector<1x8x1xf32> to vector<1x8x8xf32>
    %76 = arith.subf %72, %75 : vector<1x8x8xf32>
    %77 = math.exp %76 : vector<1x8x8xf32>
    %cst_27 = arith.constant dense<0.000000e+00> : vector<1x8xf32>
    %78 = vector.multi_reduction <add>, %77, %cst_27 [2] : vector<1x8x8xf32> to vector<1x8xf32>
    %79 = vector.shape_cast %78 : vector<1x8xf32> to vector<1x8x1xf32>
    %80 = tpu.reciprocal %79 {approx = true} : vector<1x8x1xf32> -> vector<1x8x1xf32>
    %81 = vector.broadcast %80 : vector<1x8x1xf32> to vector<1x8x8xf32>
    %82 = arith.mulf %77, %81 : vector<1x8x8xf32>
    %83 = arith.truncf %82 : vector<1x8x8xf32> to vector<1x8x8xbf16>
    "tpu.trace_start"() <{level = 10 : i32, message = "bqk,bkd->bqd"}> : () -> ()
    %cst_28 = arith.constant dense<0.000000e+00> : vector<1x8x8xf32>
    %84 = tpu.matmul %83, %71, %cst_28 {dimension_numbers = #tpu.dot_dimension_numbers<[2], [1], [1], [2], [0, 0, 0, 1, 1, 2], [0], [0]>} : vector<1x8x8xbf16>, vector<1x8x8xbf16>, vector<1x8x8xf32> -> vector<1x8x8xf32>
    "tpu.trace_stop"() : () -> ()
    %85 = vector.shape_cast %84 : vector<1x8x8xf32> to vector<8x8xf32>
    %86 = arith.truncf %85 : vector<8x8xf32> to vector<8x8xbf16>
    %c2 = arith.constant 2 : index
    %c0_29 = arith.constant 0 : index
    %c0_30 = arith.constant 0 : index
    %87 = vector.load %arg4[%c2, %c0_29, %c0_30] : memref<4x8x32xbf16, #tpu.memory_space<vmem>>, vector<1x8x32xbf16>
    %88 = vector.shape_cast %87 : vector<1x8x32xbf16> to vector<8x32xbf16>
    %cst_31 = arith.constant dense<0.000000e+00> : vector<8x32xf32>
    %89 = tpu.matmul %86, %88, %cst_31 {dimension_numbers = #tpu.dot_dimension_numbers<[1], [0], [0], [1], [0, 0, 1, 1], [], []>} : vector<8x8xbf16>, vector<8x32xbf16>, vector<8x32xf32> -> vector<8x32xf32>
    %90 = arith.addf %63, %89 : vector<8x32xf32>
    %91 = vector.extract_strided_slice %8 {offsets = [0, 0, 72], sizes = [1, 8, 8], strides = [1, 1, 1]} : vector<1x8x96xf32> to vector<1x8x8xf32>
    %cst_32 = arith.constant 0.353553385 : f32
    %92 = vector.broadcast %cst_32 : f32 to vector<1x8x8xf32>
    %93 = arith.mulf %91, %92 : vector<1x8x8xf32>
    %94 = arith.truncf %93 : vector<1x8x8xf32> to vector<1x8x8xbf16>
    %95 = vector.extract_strided_slice %8 {offsets = [0, 0, 80], sizes = [1, 8, 8], strides = [1, 1, 1]} : vector<1x8x96xf32> to vector<1x8x8xf32>
    %96 = arith.truncf %95 : vector<1x8x8xf32> to vector<1x8x8xbf16>
    %97 = vector.extract_strided_slice %8 {offsets = [0, 0, 88], sizes = [1, 8, 8], strides = [1, 1, 1]} : vector<1x8x96xf32> to vector<1x8x8xf32>
    %98 = arith.truncf %97 : vector<1x8x8xf32> to vector<1x8x8xbf16>
    "tpu.trace_start"() <{level = 10 : i32, message = "bqd,bkd->bqk"}> : () -> ()
    %cst_33 = arith.constant dense<0.000000e+00> : vector<1x8x8xf32>
    %99 = tpu.matmul %94, %96, %cst_33 {dimension_numbers = #tpu.dot_dimension_numbers<[2], [2], [1], [1], [0, 0, 0, 1, 1, 1], [0], [0]>} : vector<1x8x8xbf16>, vector<1x8x8xbf16>, vector<1x8x8xf32> -> vector<1x8x8xf32>
    "tpu.trace_stop"() : () -> ()
    %cst_34 = arith.constant dense<0xFF800000> : vector<1x8xf32>
    %100 = vector.multi_reduction <maximumf>, %99, %cst_34 [2] : vector<1x8x8xf32> to vector<1x8xf32>
    %101 = vector.shape_cast %100 : vector<1x8xf32> to vector<1x8x1xf32>
    %102 = vector.broadcast %101 : vector<1x8x1xf32> to vector<1x8x8xf32>
    %103 = arith.subf %99, %102 : vector<1x8x8xf32>
    %104 = math.exp %103 : vector<1x8x8xf32>
    %cst_35 = arith.constant dense<0.000000e+00> : vector<1x8xf32>
    %105 = vector.multi_reduction <add>, %104, %cst_35 [2] : vector<1x8x8xf32> to vector<1x8xf32>
    %106 = vector.shape_cast %105 : vector<1x8xf32> to vector<1x8x1xf32>
    %107 = tpu.reciprocal %106 {approx = true} : vector<1x8x1xf32> -> vector<1x8x1xf32>
    %108 = vector.broadcast %107 : vector<1x8x1xf32> to vector<1x8x8xf32>
    %109 = arith.mulf %104, %108 : vector<1x8x8xf32>
    %110 = arith.truncf %109 : vector<1x8x8xf32> to vector<1x8x8xbf16>
    "tpu.trace_start"() <{level = 10 : i32, message = "bqk,bkd->bqd"}> : () -> ()
    %cst_36 = arith.constant dense<0.000000e+00> : vector<1x8x8xf32>
    %111 = tpu.matmul %110, %98, %cst_36 {dimension_numbers = #tpu.dot_dimension_numbers<[2], [1], [1], [2], [0, 0, 0, 1, 1, 2], [0], [0]>} : vector<1x8x8xbf16>, vector<1x8x8xbf16>, vector<1x8x8xf32> -> vector<1x8x8xf32>
    "tpu.trace_stop"() : () -> ()
    %112 = vector.shape_cast %111 : vector<1x8x8xf32> to vector<8x8xf32>
    %113 = arith.truncf %112 : vector<8x8xf32> to vector<8x8xbf16>
    %c3 = arith.constant 3 : index
    %c0_37 = arith.constant 0 : index
    %c0_38 = arith.constant 0 : index
    %114 = vector.load %arg4[%c3, %c0_37, %c0_38] : memref<4x8x32xbf16, #tpu.memory_space<vmem>>, vector<1x8x32xbf16>
    %115 = vector.shape_cast %114 : vector<1x8x32xbf16> to vector<8x32xbf16>
    %cst_39 = arith.constant dense<0.000000e+00> : vector<8x32xf32>
    %116 = tpu.matmul %113, %115, %cst_39 {dimension_numbers = #tpu.dot_dimension_numbers<[1], [0], [0], [1], [0, 0, 1, 1], [], []>} : vector<8x8xbf16>, vector<8x32xbf16>, vector<8x32xf32> -> vector<8x32xf32>
    %117 = arith.addf %90, %116 : vector<8x32xf32>
    %118 = arith.addf %1, %117 : vector<8x32xf32>
    %c0_40 = arith.constant 0 : index
    %c0_41 = arith.constant 0 : index
    %119 = vector.load %arg5[%c0_40, %c0_41] : memref<1x32xf32, #tpu.memory_space<vmem>>, vector<1x32xf32>
    %120 = vector.broadcast %119 : vector<1x32xf32> to vector<8x32xf32>
    %121 = arith.addf %118, %120 : vector<8x32xf32>
    %cst_42 = arith.constant dense<0.000000e+00> : vector<8xf32>
    %122 = vector.multi_reduction <add>, %121, %cst_42 [1] : vector<8x32xf32> to vector<8xf32>
    %123 = vector.shape_cast %122 : vector<8xf32> to vector<8x1xf32>
    %cst_43 = arith.constant 3.200000e+01 : f32
    %124 = vector.broadcast %cst_43 : f32 to vector<8x1xf32>
    %125 = arith.divf %123, %124 : vector<8x1xf32>
    %126 = vector.broadcast %125 : vector<8x1xf32> to vector<8x32xf32>
    %127 = arith.subf %121, %126 : vector<8x32xf32>
    %128 = arith.mulf %127, %127 : vector<8x32xf32>
    %cst_44 = arith.constant dense<0.000000e+00> : vector<8xf32>
    %129 = vector.multi_reduction <add>, %128, %cst_44 [1] : vector<8x32xf32> to vector<8xf32>
    %130 = vector.shape_cast %129 : vector<8xf32> to vector<8x1xf32>
    %cst_45 = arith.constant 3.200000e+01 : f32
    %131 = vector.broadcast %cst_45 : f32 to vector<8x1xf32>
    %132 = arith.divf %130, %131 : vector<8x1xf32>
    %133 = vector.broadcast %125 : vector<8x1xf32> to vector<8x32xf32>
    %134 = arith.subf %121, %133 : vector<8x32xf32>
    %cst_46 = arith.constant 9.99999974E-6 : f32
    %135 = vector.broadcast %cst_46 : f32 to vector<8x1xf32>
    %136 = arith.addf %132, %135 : vector<8x1xf32>
    %137 = math.rsqrt %136 : vector<8x1xf32>
    %138 = vector.broadcast %137 : vector<8x1xf32> to vector<8x32xf32>
    %139 = arith.mulf %134, %138 : vector<8x32xf32>
    %c0_47 = arith.constant 0 : index
    %c0_48 = arith.constant 0 : index
    %140 = vector.load %arg6[%c0_47, %c0_48] : memref<1x32xf32, #tpu.memory_space<vmem>>, vector<1x32xf32>
    %141 = vector.broadcast %140 : vector<1x32xf32> to vector<8x32xf32>
    %142 = arith.mulf %139, %141 : vector<8x32xf32>
    %c0_49 = arith.constant 0 : index
    %c0_50 = arith.constant 0 : index
    %143 = vector.load %arg7[%c0_49, %c0_50] : memref<1x32xf32, #tpu.memory_space<vmem>>, vector<1x32xf32>
    %144 = vector.broadcast %143 : vector<1x32xf32> to vector<8x32xf32>
    %145 = arith.addf %142, %144 : vector<8x32xf32>
    %146 = vector.shape_cast %145 : vector<8x32xf32> to vector<1x8x32xf32>
    %c0_51 = arith.constant 0 : index
    %c0_52 = arith.constant 0 : index
    %c0_53 = arith.constant 0 : index
    %147 = vector.load %arg8[%c0_51, %c0_52, %c0_53] : memref<1x8x32xf32, #tpu.memory_space<vmem>>, vector<1x8x32xf32>
    tpu.vector_store %arg8[%c0_51, %c0_52, %c0_53], %146 {strides = array<i32>} : memref<1x8x32xf32, #tpu.memory_space<vmem>>, vector<1x8x32xf32>,
    return
  }
  func.func @transform_0(%arg0: i32) -> (i32, i32, i32) {
    %c0_i32 = arith.constant 0 : i32
    %c0_i32_0 = arith.constant 0 : i32
    %c0_i32_1 = arith.constant 0 : i32
    return %arg0, %c0_i32, %c0_i32_0 : i32, i32, i32
  }
  func.func @transform_1(%arg0: i32) -> (i32, i32) {
    %c0_i32 = arith.constant 0 : i32
    %c0_i32_0 = arith.constant 0 : i32
    %c0_i32_1 = arith.constant 0 : i32
    return %c0_i32, %c0_i32_0 : i32, i32
  }
  func.func @transform_2(%arg0: i32) -> (i32, i32) {
    %c0_i32 = arith.constant 0 : i32
    %c0_i32_0 = arith.constant 0 : i32
    %c0_i32_1 = arith.constant 0 : i32
    return %c0_i32, %c0_i32_0 : i32, i32
  }
  func.func @transform_3(%arg0: i32) -> (i32, i32, i32) {
    %c0_i32 = arith.constant 0 : i32
    %c0_i32_0 = arith.constant 0 : i32
    %c0_i32_1 = arith.constant 0 : i32
    %c0_i32_2 = arith.constant 0 : i32
    return %c0_i32, %c0_i32_0, %c0_i32_1 : i32, i32, i32
  }
  func.func @transform_4(%arg0: i32) -> (i32, i32) {
    %c0_i32 = arith.constant 0 : i32
    %c0_i32_0 = arith.constant 0 : i32
    %c0_i32_1 = arith.constant 0 : i32
    return %c0_i32, %c0_i32_0 : i32, i32
  }
  func.func @transform_5(%arg0: i32) -> (i32, i32) {
    %c0_i32 = arith.constant 0 : i32
    %c0_i32_0 = arith.constant 0 : i32
    %c0_i32_1 = arith.constant 0 : i32
    return %c0_i32, %c0_i32_0 : i32, i32
  }
  func.func @transform_6(%arg0: i32) -> (i32, i32) {
    %c0_i32 = arith.constant 0 : i32
    %c0_i32_0 = arith.constant 0 : i32
    %c0_i32_1 = arith.constant 0 : i32
    return %c0_i32, %c0_i32_0 : i32, i32
  }
  func.func @transform_7(%arg0: i32) -> (i32, i32, i32) {
    %c0_i32 = arith.constant 0 : i32
    %c0_i32_0 = arith.constant 0 : i32
    %c0_i32_1 = arith.constant 0 : i32
    return %arg0, %c0_i32, %c0_i32_0 : i32, i32, i32
  }
}

module attributes {stable_mosaic.version = 11 : i64} {
  func.func @_fused_linear_kernel_single(%arg0: i32, %arg1: memref<16x64xbf16, #tpu.memory_space<vmem>>, %arg2: memref<64x32xbf16, #tpu.memory_space<vmem>>, %arg3: memref<1x32xf32, #tpu.memory_space<vmem>>, %arg4: memref<16x32xf32, #tpu.memory_space<vmem>>, %arg5: memref<1x32xf32, #tpu.memory_space<vmem>>, %arg6: memref<1x32xf32, #tpu.memory_space<vmem>>, %arg7: memref<16x32xf32, #tpu.memory_space<vmem>>) attributes {dimension_semantics = [#tpu.dimension_semantics<parallel>], iteration_bounds = array<i64: 1>, scalar_prefetch = 0 : i64, scratch_operands = 0 : i64, tpu.core_type = #tpu.core_type<tc>, window_params = [{transform_indices = @transform_0, window_bounds = array<i64: 16, 64>}, {pipeline_mode = #tpu.pipeline_mode<synchronous>, transform_indices = @transform_1, window_bounds = array<i64: 64, 32>}, {pipeline_mode = #tpu.pipeline_mode<synchronous>, transform_indices = @transform_2, window_bounds = array<i64: 1, 32>}, {transform_indices = @transform_3, window_bounds = array<i64: 16, 32>}, {pipeline_mode = #tpu.pipeline_mode<synchronous>, transform_indices = @transform_4, window_bounds = array<i64: 1, 32>}, {pipeline_mode = #tpu.pipeline_mode<synchronous>, transform_indices = @transform_5, window_bounds = array<i64: 1, 32>}, {transform_indices = @transform_6, window_bounds = array<i64: 16, 32>}]} {
    %c0 = arith.constant 0 : index
    %c0_0 = arith.constant 0 : index
    %0 = vector.load %arg1[%c0, %c0_0] : memref<16x64xbf16, #tpu.memory_space<vmem>>, vector<16x64xbf16>
    %c0_1 = arith.constant 0 : index
    %c0_2 = arith.constant 0 : index
    %1 = vector.load %arg2[%c0_1, %c0_2] : memref<64x32xbf16, #tpu.memory_space<vmem>>, vector<64x32xbf16>
    %cst = arith.constant dense<0.000000e+00> : vector<16x32xf32>
    %2 = tpu.matmul %0, %1, %cst {dimension_numbers = #tpu.dot_dimension_numbers<[1], [0], [0], [1], [0, 0, 1, 1], [], []>} : vector<16x64xbf16>, vector<64x32xbf16>, vector<16x32xf32> -> vector<16x32xf32>
    %c0_3 = arith.constant 0 : index
    %c0_4 = arith.constant 0 : index
    %3 = vector.load %arg3[%c0_3, %c0_4] : memref<1x32xf32, #tpu.memory_space<vmem>>, vector<1x32xf32>
    %4 = vector.broadcast %3 : vector<1x32xf32> to vector<16x32xf32>
    %5 = arith.addf %2, %4 : vector<16x32xf32>
    %c0_5 = arith.constant 0 : index
    %c0_6 = arith.constant 0 : index
    %6 = vector.load %arg4[%c0_5, %c0_6] : memref<16x32xf32, #tpu.memory_space<vmem>>, vector<16x32xf32>
    %7 = arith.addf %5, %6 : vector<16x32xf32>
    %cst_7 = arith.constant dense<0.000000e+00> : vector<16xf32>
    %8 = vector.multi_reduction <add>, %7, %cst_7 [1] : vector<16x32xf32> to vector<16xf32>
    %9 = vector.shape_cast %8 : vector<16xf32> to vector<16x1xf32>
    %cst_8 = arith.constant 3.200000e+01 : f32
    %10 = vector.broadcast %cst_8 : f32 to vector<16x1xf32>
    %11 = arith.divf %9, %10 : vector<16x1xf32>
    %12 = vector.broadcast %11 : vector<16x1xf32> to vector<16x32xf32>
    %13 = arith.subf %7, %12 : vector<16x32xf32>
    %14 = arith.mulf %13, %13 : vector<16x32xf32>
    %cst_9 = arith.constant dense<0.000000e+00> : vector<16xf32>
    %15 = vector.multi_reduction <add>, %14, %cst_9 [1] : vector<16x32xf32> to vector<16xf32>
    %16 = vector.shape_cast %15 : vector<16xf32> to vector<16x1xf32>
    %cst_10 = arith.constant 3.200000e+01 : f32
    %17 = vector.broadcast %cst_10 : f32 to vector<16x1xf32>
    %18 = arith.divf %16, %17 : vector<16x1xf32>
    %19 = vector.broadcast %11 : vector<16x1xf32> to vector<16x32xf32>
    %20 = arith.subf %7, %19 : vector<16x32xf32>
    %cst_11 = arith.constant 9.99999974E-6 : f32
    %21 = vector.broadcast %cst_11 : f32 to vector<16x1xf32>
    %22 = arith.addf %18, %21 : vector<16x1xf32>
    %23 = math.rsqrt %22 : vector<16x1xf32>
    %24 = vector.broadcast %23 : vector<16x1xf32> to vector<16x32xf32>
    %25 = arith.mulf %20, %24 : vector<16x32xf32>
    %c0_12 = arith.constant 0 : index
    %c0_13 = arith.constant 0 : index
    %26 = vector.load %arg5[%c0_12, %c0_13] : memref<1x32xf32, #tpu.memory_space<vmem>>, vector<1x32xf32>
    %27 = vector.broadcast %26 : vector<1x32xf32> to vector<16x32xf32>
    %28 = arith.mulf %25, %27 : vector<16x32xf32>
    %c0_14 = arith.constant 0 : index
    %c0_15 = arith.constant 0 : index
    %29 = vector.load %arg6[%c0_14, %c0_15] : memref<1x32xf32, #tpu.memory_space<vmem>>, vector<1x32xf32>
    %30 = vector.broadcast %29 : vector<1x32xf32> to vector<16x32xf32>
    %31 = arith.addf %28, %30 : vector<16x32xf32>
    %c0_16 = arith.constant 0 : index
    %c0_17 = arith.constant 0 : index
    %32 = vector.load %arg7[%c0_16, %c0_17] : memref<16x32xf32, #tpu.memory_space<vmem>>, vector<16x32xf32>
    tpu.vector_store %arg7[%c0_16, %c0_17], %31 {strides = array<i32>} : memref<16x32xf32, #tpu.memory_space<vmem>>, vector<16x32xf32>,
    return
  }
  func.func @transform_0(%arg0: i32) -> (i32, i32) {
    %c0_i32 = arith.constant 0 : i32
    %c0_i32_0 = arith.constant 0 : i32
    return %arg0, %c0_i32 : i32, i32
  }
  func.func @transform_1(%arg0: i32) -> (i32, i32) {
    %c0_i32 = arith.constant 0 : i32
    %c0_i32_0 = arith.constant 0 : i32
    %c0_i32_1 = arith.constant 0 : i32
    return %c0_i32, %c0_i32_0 : i32, i32
  }
  func.func @transform_2(%arg0: i32) -> (i32, i32) {
    %c0_i32 = arith.constant 0 : i32
    %c0_i32_0 = arith.constant 0 : i32
    %c0_i32_1 = arith.constant 0 : i32
    return %c0_i32, %c0_i32_0 : i32, i32
  }
  func.func @transform_3(%arg0: i32) -> (i32, i32) {
    %c0_i32 = arith.constant 0 : i32
    %c0_i32_0 = arith.constant 0 : i32
    return %arg0, %c0_i32 : i32, i32
  }
  func.func @transform_4(%arg0: i32) -> (i32, i32) {
    %c0_i32 = arith.constant 0 : i32
    %c0_i32_0 = arith.constant 0 : i32
    %c0_i32_1 = arith.constant 0 : i32
    return %c0_i32, %c0_i32_0 : i32, i32
  }
  func.func @transform_5(%arg0: i32) -> (i32, i32) {
    %c0_i32 = arith.constant 0 : i32
    %c0_i32_0 = arith.constant 0 : i32
    %c0_i32_1 = arith.constant 0 : i32
    return %c0_i32, %c0_i32_0 : i32, i32
  }
  func.func @transform_6(%arg0: i32) -> (i32, i32) {
    %c0_i32 = arith.constant 0 : i32
    %c0_i32_0 = arith.constant 0 : i32
    return %arg0, %c0_i32 : i32, i32
  }
}

module attributes {stable_mosaic.version = 11 : i64} {
  func.func @_fused_linear_kernel_single(%arg0: i32, %arg1: memref<16x32xf32, #tpu.memory_space<vmem>>, %arg2: memref<32x64xbf16, #tpu.memory_space<vmem>>, %arg3: memref<1x64xf32, #tpu.memory_space<vmem>>, %arg4: memref<16x64xbf16, #tpu.memory_space<vmem>>) attributes {dimension_semantics = [#tpu.dimension_semantics<parallel>], iteration_bounds = array<i64: 1>, scalar_prefetch = 0 : i64, scratch_operands = 0 : i64, tpu.core_type = #tpu.core_type<tc>, window_params = [{transform_indices = @transform_0, window_bounds = array<i64: 16, 32>}, {pipeline_mode = #tpu.pipeline_mode<synchronous>, transform_indices = @transform_1, window_bounds = array<i64: 32, 64>}, {pipeline_mode = #tpu.pipeline_mode<synchronous>, transform_indices = @transform_2, window_bounds = array<i64: 1, 64>}, {transform_indices = @transform_3, window_bounds = array<i64: 16, 64>}]} {
    %c0 = arith.constant 0 : index
    %c0_0 = arith.constant 0 : index
    %0 = vector.load %arg1[%c0, %c0_0] : memref<16x32xf32, #tpu.memory_space<vmem>>, vector<16x32xf32>
    %1 = arith.truncf %0 : vector<16x32xf32> to vector<16x32xbf16>
    %c0_1 = arith.constant 0 : index
    %c0_2 = arith.constant 0 : index
    %2 = vector.load %arg2[%c0_1, %c0_2] : memref<32x64xbf16, #tpu.memory_space<vmem>>, vector<32x64xbf16>
    %cst = arith.constant dense<0.000000e+00> : vector<16x64xf32>
    %3 = tpu.matmul %1, %2, %cst {dimension_numbers = #tpu.dot_dimension_numbers<[1], [0], [0], [1], [0, 0, 1, 1], [], []>} : vector<16x32xbf16>, vector<32x64xbf16>, vector<16x64xf32> -> vector<16x64xf32>
    %c0_3 = arith.constant 0 : index
    %c0_4 = arith.constant 0 : index
    %4 = vector.load %arg3[%c0_3, %c0_4] : memref<1x64xf32, #tpu.memory_space<vmem>>, vector<1x64xf32>
    %5 = vector.broadcast %4 : vector<1x64xf32> to vector<16x64xf32>
    %6 = arith.addf %3, %5 : vector<16x64xf32>
    %cst_5 = arith.constant 5.000000e-01 : f32
    %7 = vector.broadcast %cst_5 : f32 to vector<16x64xf32>
    %8 = arith.mulf %7, %6 : vector<16x64xf32>
    %cst_6 = arith.constant 4.471500e-02 : f32
    %9 = vector.broadcast %cst_6 : f32 to vector<16x64xf32>
    %10 = arith.mulf %9, %6 : vector<16x64xf32>
    %11 = arith.mulf %10, %6 : vector<16x64xf32>
    %12 = arith.mulf %11, %6 : vector<16x64xf32>
    %13 = arith.addf %6, %12 : vector<16x64xf32>
    %cst_7 = arith.constant 0.797884583 : f32
    %14 = vector.broadcast %cst_7 : f32 to vector<16x64xf32>
    %15 = arith.mulf %14, %13 : vector<16x64xf32>
    %16 = math.tanh %15 : vector<16x64xf32>
    %cst_8 = arith.constant 1.000000e+00 : f32
    %17 = vector.broadcast %cst_8 : f32 to vector<16x64xf32>
    %18 = arith.addf %17, %16 : vector<16x64xf32>
    %19 = arith.mulf %8, %18 : vector<16x64xf32>
    %20 = arith.truncf %19 : vector<16x64xf32> to vector<16x64xbf16>
    %c0_9 = arith.constant 0 : index
    %c0_10 = arith.constant 0 : index
    %21 = vector.load %arg4[%c0_9, %c0_10] : memref<16x64xbf16, #tpu.memory_space<vmem>>, vector<16x64xbf16>
    tpu.vector_store %arg4[%c0_9, %c0_10], %20 {strides = array<i32>} : memref<16x64xbf16, #tpu.memory_space<vmem>>, vector<16x64xbf16>,
    return
  }
  func.func @transform_0(%arg0: i32) -> (i32, i32) {
    %c0_i32 = arith.constant 0 : i32
    %c0_i32_0 = arith.constant 0 : i32
    return %arg0, %c0_i32 : i32, i32
  }
  func.func @transform_1(%arg0: i32) -> (i32, i32) {
    %c0_i32 = arith.constant 0 : i32
    %c0_i32_0 = arith.constant 0 : i32
    %c0_i32_1 = arith.constant 0 : i32
    return %c0_i32, %c0_i32_0 : i32, i32
  }
  func.func @transform_2(%arg0: i32) -> (i32, i32) {
    %c0_i32 = arith.constant 0 : i32
    %c0_i32_0 = arith.constant 0 : i32
    %c0_i32_1 = arith.constant 0 : i32
    return %c0_i32, %c0_i32_0 : i32, i32
  }
  func.func @transform_3(%arg0: i32) -> (i32, i32) {
    %c0_i32 = arith.constant 0 : i32
    %c0_i32_0 = arith.constant 0 : i32
    return %arg0, %c0_i32 : i32, i32
  }
}

module attributes {stable_mosaic.version = 11 : i64} {
  func.func @_fused_linear_kernel_single(%arg0: i32, %arg1: memref<16x64xbf16, #tpu.memory_space<vmem>>, %arg2: memref<64x32xbf16, #tpu.memory_space<vmem>>, %arg3: memref<1x32xf32, #tpu.memory_space<vmem>>, %arg4: memref<16x32xf32, #tpu.memory_space<vmem>>, %arg5: memref<1x32xf32, #tpu.memory_space<vmem>>, %arg6: memref<1x32xf32, #tpu.memory_space<vmem>>, %arg7: memref<1x32xf32, #tpu.memory_space<vmem>>, %arg8: memref<1x32xf32, #tpu.memory_space<vmem>>, %arg9: memref<16x32xf32, #tpu.memory_space<vmem>>) attributes {dimension_semantics = [#tpu.dimension_semantics<parallel>], iteration_bounds = array<i64: 1>, scalar_prefetch = 0 : i64, scratch_operands = 0 : i64, tpu.core_type = #tpu.core_type<tc>, window_params = [{transform_indices = @transform_0, window_bounds = array<i64: 16, 64>}, {pipeline_mode = #tpu.pipeline_mode<synchronous>, transform_indices = @transform_1, window_bounds = array<i64: 64, 32>}, {pipeline_mode = #tpu.pipeline_mode<synchronous>, transform_indices = @transform_2, window_bounds = array<i64: 1, 32>}, {transform_indices = @transform_3, window_bounds = array<i64: 16, 32>}, {pipeline_mode = #tpu.pipeline_mode<synchronous>, transform_indices = @transform_4, window_bounds = array<i64: 1, 32>}, {pipeline_mode = #tpu.pipeline_mode<synchronous>, transform_indices = @transform_5, window_bounds = array<i64: 1, 32>}, {pipeline_mode = #tpu.pipeline_mode<synchronous>, transform_indices = @transform_6, window_bounds = array<i64: 1, 32>}, {pipeline_mode = #tpu.pipeline_mode<synchronous>, transform_indices = @transform_7, window_bounds = array<i64: 1, 32>}, {transform_indices = @transform_8, window_bounds = array<i64: 16, 32>}]} {
    %c0 = arith.constant 0 : index
    %c0_0 = arith.constant 0 : index
    %0 = vector.load %arg1[%c0, %c0_0] : memref<16x64xbf16, #tpu.memory_space<vmem>>, vector<16x64xbf16>
    %c0_1 = arith.constant 0 : index
    %c0_2 = arith.constant 0 : index
    %1 = vector.load %arg2[%c0_1, %c0_2] : memref<64x32xbf16, #tpu.memory_space<vmem>>, vector<64x32xbf16>
    %cst = arith.constant dense<0.000000e+00> : vector<16x32xf32>
    %2 = tpu.matmul %0, %1, %cst {dimension_numbers = #tpu.dot_dimension_numbers<[1], [0], [0], [1], [0, 0, 1, 1], [], []>} : vector<16x64xbf16>, vector<64x32xbf16>, vector<16x32xf32> -> vector<16x32xf32>
    %c0_3 = arith.constant 0 : index
    %c0_4 = arith.constant 0 : index
    %3 = vector.load %arg3[%c0_3, %c0_4] : memref<1x32xf32, #tpu.memory_space<vmem>>, vector<1x32xf32>
    %4 = vector.broadcast %3 : vector<1x32xf32> to vector<16x32xf32>
    %5 = arith.addf %2, %4 : vector<16x32xf32>
    %c0_5 = arith.constant 0 : index
    %c0_6 = arith.constant 0 : index
    %6 = vector.load %arg4[%c0_5, %c0_6] : memref<16x32xf32, #tpu.memory_space<vmem>>, vector<16x32xf32>
    %7 = arith.addf %5, %6 : vector<16x32xf32>
    %cst_7 = arith.constant dense<0.000000e+00> : vector<16xf32>
    %8 = vector.multi_reduction <add>, %7, %cst_7 [1] : vector<16x32xf32> to vector<16xf32>
    %9 = vector.shape_cast %8 : vector<16xf32> to vector<16x1xf32>
    %cst_8 = arith.constant 3.200000e+01 : f32
    %10 = vector.broadcast %cst_8 : f32 to vector<16x1xf32>
    %11 = arith.divf %9, %10 : vector<16x1xf32>
    %12 = vector.broadcast %11 : vector<16x1xf32> to vector<16x32xf32>
    %13 = arith.subf %7, %12 : vector<16x32xf32>
    %14 = arith.mulf %13, %13 : vector<16x32xf32>
    %cst_9 = arith.constant dense<0.000000e+00> : vector<16xf32>
    %15 = vector.multi_reduction <add>, %14, %cst_9 [1] : vector<16x32xf32> to vector<16xf32>
    %16 = vector.shape_cast %15 : vector<16xf32> to vector<16x1xf32>
    %cst_10 = arith.constant 3.200000e+01 : f32
    %17 = vector.broadcast %cst_10 : f32 to vector<16x1xf32>
    %18 = arith.divf %16, %17 : vector<16x1xf32>
    %19 = vector.broadcast %11 : vector<16x1xf32> to vector<16x32xf32>
    %20 = arith.subf %7, %19 : vector<16x32xf32>
    %cst_11 = arith.constant 9.99999974E-6 : f32
    %21 = vector.broadcast %cst_11 : f32 to vector<16x1xf32>
    %22 = arith.addf %18, %21 : vector<16x1xf32>
    %23 = math.rsqrt %22 : vector<16x1xf32>
    %24 = vector.broadcast %23 : vector<16x1xf32> to vector<16x32xf32>
    %25 = arith.mulf %20, %24 : vector<16x32xf32>
    %c0_12 = arith.constant 0 : index
    %c0_13 = arith.constant 0 : index
    %26 = vector.load %arg5[%c0_12, %c0_13] : memref<1x32xf32, #tpu.memory_space<vmem>>, vector<1x32xf32>
    %27 = vector.broadcast %26 : vector<1x32xf32> to vector<16x32xf32>
    %28 = arith.mulf %25, %27 : vector<16x32xf32>
    %c0_14 = arith.constant 0 : index
    %c0_15 = arith.constant 0 : index
    %29 = vector.load %arg6[%c0_14, %c0_15] : memref<1x32xf32, #tpu.memory_space<vmem>>, vector<1x32xf32>
    %30 = vector.broadcast %29 : vector<1x32xf32> to vector<16x32xf32>
    %31 = arith.addf %28, %30 : vector<16x32xf32>
    %cst_16 = arith.constant dense<0.000000e+00> : vector<16xf32>
    %32 = vector.multi_reduction <add>, %31, %cst_16 [1] : vector<16x32xf32> to vector<16xf32>
    %33 = vector.shape_cast %32 : vector<16xf32> to vector<16x1xf32>
    %cst_17 = arith.constant 3.200000e+01 : f32
    %34 = vector.broadcast %cst_17 : f32 to vector<16x1xf32>
    %35 = arith.divf %33, %34 : vector<16x1xf32>
    %36 = vector.broadcast %35 : vector<16x1xf32> to vector<16x32xf32>
    %37 = arith.subf %31, %36 : vector<16x32xf32>
    %38 = arith.mulf %37, %37 : vector<16x32xf32>
    %cst_18 = arith.constant dense<0.000000e+00> : vector<16xf32>
    %39 = vector.multi_reduction <add>, %38, %cst_18 [1] : vector<16x32xf32> to vector<16xf32>
    %40 = vector.shape_cast %39 : vector<16xf32> to vector<16x1xf32>
    %cst_19 = arith.constant 3.200000e+01 : f32
    %41 = vector.broadcast %cst_19 : f32 to vector<16x1xf32>
    %42 = arith.divf %40, %41 : vector<16x1xf32>
    %43 = vector.broadcast %35 : vector<16x1xf32> to vector<16x32xf32>
    %44 = arith.subf %31, %43 : vector<16x32xf32>
    %cst_20 = arith.constant 9.99999974E-6 : f32
    %45 = vector.broadcast %cst_20 : f32 to vector<16x1xf32>
    %46 = arith.addf %42, %45 : vector<16x1xf32>
    %47 = math.rsqrt %46 : vector<16x1xf32>
    %48 = vector.broadcast %47 : vector<16x1xf32> to vector<16x32xf32>
    %49 = arith.mulf %44, %48 : vector<16x32xf32>
    %c0_21 = arith.constant 0 : index
    %c0_22 = arith.constant 0 : index
    %50 = vector.load %arg7[%c0_21, %c0_22] : memref<1x32xf32, #tpu.memory_space<vmem>>, vector<1x32xf32>
    %51 = vector.broadcast %50 : vector<1x32xf32> to vector<16x32xf32>
    %52 = arith.mulf %49, %51 : vector<16x32xf32>
    %c0_23 = arith.constant 0 : index
    %c0_24 = arith.constant 0 : index
    %53 = vector.load %arg8[%c0_23, %c0_24] : memref<1x32xf32, #tpu.memory_space<vmem>>, vector<1x32xf32>
    %54 = vector.broadcast %53 : vector<1x32xf32> to vector<16x32xf32>
    %55 = arith.addf %52, %54 : vector<16x32xf32>
    %c0_25 = arith.constant 0 : index
    %c0_26 = arith.constant 0 : index
    %56 = vector.load %arg9[%c0_25, %c0_26] : memref<16x32xf32, #tpu.memory_space<vmem>>, vector<16x32xf32>
    tpu.vector_store %arg9[%c0_25, %c0_26], %55 {strides = array<i32>} : memref<16x32xf32, #tpu.memory_space<vmem>>, vector<16x32xf32>,
    return
  }
  func.func @transform_0(%arg0: i32) -> (i32, i32) {
    %c0_i32 = arith.constant 0 : i32
    %c0_i32_0 = arith.constant 0 : i32
    return %arg0, %c0_i32 : i32, i32
  }
  func.func @transform_1(%arg0: i32) -> (i32, i32) {
    %c0_i32 = arith.constant 0 : i32
    %c0_i32_0 = arith.constant 0 : i32
    %c0_i32_1 = arith.constant 0 : i32
    return %c0_i32, %c0_i32_0 : i32, i32
  }
  func.func @transform_2(%arg0: i32) -> (i32, i32) {
    %c0_i32 = arith.constant 0 : i32
    %c0_i32_0 = arith.constant 0 : i32
    %c0_i32_1 = arith.constant 0 : i32
    return %c0_i32, %c0_i32_0 : i32, i32
  }
  func.func @transform_3(%arg0: i32) -> (i32, i32) {
    %c0_i32 = arith.constant 0 : i32
    %c0_i32_0 = arith.constant 0 : i32
    return %arg0, %c0_i32 : i32, i32
  }
  func.func @transform_4(%arg0: i32) -> (i32, i32) {
    %c0_i32 = arith.constant 0 : i32
    %c0_i32_0 = arith.constant 0 : i32
    %c0_i32_1 = arith.constant 0 : i32
    return %c0_i32, %c0_i32_0 : i32, i32
  }
  func.func @transform_5(%arg0: i32) -> (i32, i32) {
    %c0_i32 = arith.constant 0 : i32
    %c0_i32_0 = arith.constant 0 : i32
    %c0_i32_1 = arith.constant 0 : i32
    return %c0_i32, %c0_i32_0 : i32, i32
  }
  func.func @transform_6(%arg0: i32) -> (i32, i32) {
    %c0_i32 = arith.constant 0 : i32
    %c0_i32_0 = arith.constant 0 : i32
    %c0_i32_1 = arith.constant 0 : i32
    return %c0_i32, %c0_i32_0 : i32, i32
  }
  func.func @transform_7(%arg0: i32) -> (i32, i32) {
    %c0_i32 = arith.constant 0 : i32
    %c0_i32_0 = arith.constant 0 : i32
    %c0_i32_1 = arith.constant 0 : i32
    return %c0_i32, %c0_i32_0 : i32, i32
  }
  func.func @transform_8(%arg0: i32) -> (i32, i32) {
    %c0_i32 = arith.constant 0 : i32
    %c0_i32_0 = arith.constant 0 : i32
    return %arg0, %c0_i32 : i32, i32
  }
}

</mosaic_0001>

<bundles_post_ra>
// kernel: eeg_encoder_forward.12
= control target key start
LH: loop header
LB: loop body
LE: loop exit
PB: predicated region body
PF: predicated region fallthrough
CT: control target
= control target key end

     0   :  { %s783_s12 = smov 0   ;;  %s785_s13 = smov 0   ;;  %s912_s0 = inlined_call_operand.vmem [shape: bf16[2,2,9,128], index: 0, kind: input, shape index: {}]   ;;  %s913_s1 = inlined_call_operand.vmem [shape: bf16[3,128,128], index: 1, kind: input, shape index: {}]   ;;  %s914_s2 = inlined_call_operand.vmem [shape: f32[1,128], index: 2, kind: input, shape index: {}]   ;;  %s915_s3 = inlined_call_operand.vmem [shape: bf16[2,8,128], index: 3, kind: output, shape index: {}]  }
   0x1   :  { %s787_s14 = smov 0  }
   0x2 LB: > { %s543_s15 = sadd.s32 4294967295, %s761_s14   ;;  %s800_s16 = sadd.s32 1, %s761_s14   ;;  %s761_s14 = sphi %s787_s14, %s918_s14   ;;  %s757_s13 = sphi %s785_s13, %s917_s13   ;;  %s753_s12 = sphi %s783_s12, %s916_s12  }
   0x3   : > { %s17_s17 = ssub.s32 %s761_s14, %s800_s16  ;;  %s20_s18 = sadd.s32 1, %s757_s13 }
   0x4   : > { %p18_p0 = scmp.eq.s32.totalorder %s17_s17, 0  ;;  %p27_p1 = scmp.ne.s32.totalorder %s757_s13, %s753_s12 }
   0x5   : > { %p28_p2 = scmp.eq.s32.totalorder %s761_s14, 0  ;;  %p546_p4 = scmp.ge.s32.totalorder %s761_s14, 2 }
   0x6   : > { %s809_s19 = scalar_select %p18_p0, %s757_s13, %s20_s18  }
   0x7   : > { %p29_p3 = por %p28_p2, %p27_p1  ;;  %127 = sbr.rel (%p546_p4) target bundleno = 18 (0x12), region = 24 }
   0xc   : > { %130 = sbr.rel (!%p29_p3) target bundleno = 18 (0x12), region = 28  ;;  %s132_s20 = sand.u32 (%p29_p3), 1, %s757_s13  }
   0xd   : > { %s688_s21 = sshll.u32 (%p29_p3), %s761_s14, 3  ;;  %s547_s22 = sshll.u32 (%p29_p3), %s132_s20, 4 }
   0xe   : > { %s137_s25 = scalar_lea.vmem (%p29_p3), %s912_s0, %s688_s21  ;;  %s134_s26 = scalar_lea.vmem (%p29_p3), [#allocation2], %s547_s22 }
   0xf   : > { %v154_v0 = vld [vmem:[%s137_s25] sm:$0xff] (%p29_p3)   ;;  %v158_v1 = vld [vmem:[%s137_s25 + $0x10] sm:$0xff] (%p29_p3)  }
  0x10   : > { %155 = vst [vmem:[%s134_s26] sm:$0xff] (%p29_p3), %v154_v0  }
  0x11   : > { %159 = vst [vmem:[%s134_s26 + $0x8] sm:$0xff] %v158_v1  }
  0x12 PF: > { %p550_p5 = scmp.ge.s32.totalorder %s761_s14, 1  ;;  %p192_p6 = scmp.lt.s32.totalorder %s761_s14, 3 }
  0x14   : > { %p193_p7 = pnand %p550_p5, %p192_p6 }
  0x15   : > { %s199_s22 = sand.u32 (!%p193_p7), 1, %s753_s12   ;;  %p221_p8 = scmp.lt.s32.totalorder (!%p193_p7), %s543_s15, 1 }
  0x16   : > { %196 = sbr.rel (%p193_p7) target bundleno = 202 (0xca), region = 69  ;;  %s551_s25 = sshll.u32 (!%p193_p7), %s199_s22, 4 }
  0x17   : > { %s201_s10 = scalar_lea.vmem (!%p193_p7), [#allocation2], %s551_s25 }
  0x1b   : > { %v705_v2 = vld [vmem:[%s913_s1 + $0x78] sm:$0xff]  ;;  %v704_v5 = vld [vmem:[%s913_s1 + $0x70] sm:$0xff]  ;;  %v703_v8 = vld [vmem:[%s913_s1 + $0x68] sm:$0xff]  ;;  %s920_s15 = smov (!%p221_p8, %s543_s15), 1 }
  0x1c   : > { %v697_v3 = vld [vmem:[%s913_s1 + $0x38] sm:$0xff]  ;;  %310 = vmatpush.bf16.msra.mxu0 %v705_v2  ;;  %v696_v6 = vld [vmem:[%s913_s1 + $0x30] sm:$0xff]  ;;  %v695_v9 = vld [vmem:[%s913_s1 + $0x28] sm:$0xff]  ;;  %s552_s9 = sshll.u32 %s920_s15, 2 }
  0x1d   : > { %v713_v4 = vld [vmem:[%s913_s1 + $0xb8] sm:$0xff]  ;;  %371 = vmatpush.bf16.msra.mxu1 %v697_v3  ;;  %v712_v7 = vld [vmem:[%s913_s1 + $0xb0] sm:$0xff]  ;;  %v711_v10 = vld [vmem:[%s913_s1 + $0xa8] sm:$0xff]  ;;  %s224_s17 = scalar_lea.vmem %s915_s3, %s552_s9 }
  0x1e   : > { %462 = vmatpush.bf16.msra.mxu2 %v713_v4  ;;  %v702_v11 = vld [vmem:[%s913_s1 + $0x60] sm:$0xff]  ;;  %v701_v14 = vld [vmem:[%s913_s1 + $0x58] sm:$0xff]  ;;  %v700_v19 = vld [vmem:[%s913_s1 + $0x50] sm:$0xff] }
  0x1f   : > { %v694_v12 = vld [vmem:[%s913_s1 + $0x20] sm:$0xff]  ;;  %v693_v15 = vld [vmem:[%s913_s1 + $0x18] sm:$0xff]  ;;  %v692_v20 = vld [vmem:[%s913_s1 + $0x10] sm:$0xff] }
  0x20   : > { %311 = vmatpush.bf16.msra.mxu0 %v704_v5  ;;  %v710_v13 = vld [vmem:[%s913_s1 + $0xa0] sm:$0xff]  ;;  %v709_v16 = vld [vmem:[%s913_s1 + $0x98] sm:$0xff]  ;;  %v708_v22 = vld [vmem:[%s913_s1 + $0x90] sm:$0xff] }
  0x21   : > { %372 = vmatpush.bf16.msra.mxu1 %v696_v6  ;;  %v652_v17 = vld [vmem:[%s201_s10] sm:$0xf]  ;;  %v689_v18 = vld [vmem:[%s201_s10] sm:$0x10]  ;;  %v699_v23 = vld [vmem:[%s913_s1 + $0x48] sm:$0xff] }
  0x22   : > { %463 = vmatpush.bf16.msra.mxu2 %v712_v7  ;;  %v653_v21 = vor.u32 %v689_v18, %v652_v17  ;;  %v691_v24 = vld [vmem:[%s913_s1 + $0x8] sm:$0xff]  ;;  %v698_v27 = vld [vmem:[%s913_s1 + $0x40] sm:$0xff] }
  0x23   : > { %v707_v26 = vld [vmem:[%s913_s1 + $0x88] sm:$0xff]  ;;  %v690_v28 = vld [vmem:[%s913_s1] sm:$0xff] }
  0x24   : > { %312 = vmatpush.bf16.msra.mxu0 %v703_v8  ;;  %v409_v25 = vshll.u32 %v653_v21, 16  ;;  %v407_v29 = vshrl.u32 %v653_v21, 16  ;;  %v706_v31 = vld [vmem:[%s913_s1 + $0x80] sm:$0xff]  ;;  %v553_v32 = vld [vmem:[%s201_s10 + $0x8] sm:$0xf] }
  0x25   : > { %373 = vmatpush.bf16.msra.mxu1 %v695_v9  ;;  %v225_v33 = vld [vmem:[%s201_s10] sm:$0xf] }
  0x26   : > { %464 = vmatpush.bf16.msra.mxu2 %v711_v10  ;;  %v411_v30 = vrot.slane %v409_v25, 1  ;;  %v738_v38 = vld [vmem:[%s914_s2] ss:$0 sm:$0xff] }
  0x28   : > { %313 = vmatpush.bf16.msra.mxu0 %v702_v11  ;;  %v412_v34 = vor.u32 %v411_v30, %v407_v29 }
  0x29   : > { %374 = vmatpush.bf16.msra.mxu1 %v694_v12 }
  0x2a   : > { %465 = vmatpush.bf16.msra.mxu2 %v710_v13 }
  0x2c   : > { %314 = vmatpush.bf16.msra.mxu0 %v701_v14 }
  0x2d   : > { %375 = vmatpush.bf16.msra.mxu1 %v693_v15 }
  0x2e   : > { %466 = vmatpush.bf16.msra.mxu2 %v709_v16 }
  0x30   : > { %315 = vmatpush.bf16.msra.mxu0 %v700_v19 }
  0x31   : > { %376 = vmatpush.bf16.msra.mxu1 %v692_v20 }
  0x32   : > { %467 = vmatpush.bf16.msra.mxu2 %v708_v22 }
  0x34   : > { %316 = vmatpush.bf16.msra.mxu0 %v699_v23 }
  0x35   : > { %377 = vmatpush.bf16.msra.mxu1 %v691_v24 }
  0x36   : > { %468 = vmatpush.bf16.msra.mxu2 %v707_v26 }
  0x38   : > { %317 = vmatpush.bf16.msra.mxu0 %v698_v27 }
  0x39   : > { %378 = vmatpush.bf16.msra.mxu1 %v690_v28 }
  0x3a   : > { %469 = vmatpush.bf16.msra.mxu2 %v706_v31 }
  0x3b   : > { %318 = vmatmul.bf16.vlgmr.msra.gmra.mxu0 %v553_v32 }
  0x3c   : > { %379 = vmatmul.bf16.vlgmr.msra.gmra.mxu1 %v225_v33 }
  0x3d   : > { %470 = vmatmul.bf16.vlgmr.msra.gmra.mxu2 %v412_v34 }
  0xb8   : > { %v319_v35 = vpop.f32.mrf.mxu0 }
  0xb9   : > { %v380_v36 = vpop.f32.mrf.mxu1 }
  0xba   : > { %v381_v37 = vadd.f32 %v380_v36, %v319_v35 }
  0xc0   : > { %v471_v39 = vpop.f32.mrf.mxu2  ;;  %v321_v41 = vpop.f32.mrf.mxu0 }
  0xc1   : > { %v475_v40 = vadd.f32 %v471_v39, %v381_v37  ;;  %v382_v42 = vpop.f32.mrf.mxu1 }
  0xc3   : > { %v480_v43 = vadd.f32 %v738_v38, %v475_v40 }
  0xc5   : > { %v481_v44 = vmax.f32 %v480_v43, 0.0 }
  0xc7   : > { %v482_v45 = vpack.c.bf16 %v481_v44, %v481_v44 }
  0xc8   : > { %v473_v46 = vpop.f32.mrf.mxu2 }
  0xc9   : > { %483 = vst [vmem:[%s224_s17] sm:$0xf] %v482_v45 }
  0xca PF: > { %p10_p9 = scmp.ge.s32.totalorder %s800_s16, 4   ;;  %s916_s12 = smov %s757_s13 }
  0xcb   : > { %s917_s13 = smov %s809_s19  ;;  %s918_s14 = smov %s800_s16 }
  0xcc   :  { %12 = sbr.rel (!%p10_p9) target bundleno = 2 (0x2), region = 111 }

// kernel: eeg_encoder_forward.11
= control target key start
LH: loop header
LB: loop body
LE: loop exit
PB: predicated region body
PF: predicated region fallthrough
CT: control target
= control target key end

     0   :  { %s1130_s12 = smov 0   ;;  %s1132_s13 = smov 0   ;;  %s1317_s0 = inlined_call_operand.vmem [shape: bf16[2,2,18,128], index: 0, kind: input, shape index: {}]   ;;  %s1318_s1 = inlined_call_operand.vmem [shape: bf16[5,128,128], index: 1, kind: input, shape index: {}]   ;;  %s1319_s2 = inlined_call_operand.vmem [shape: f32[1,128], index: 2, kind: input, shape index: {}]   ;;  %s1320_s3 = inlined_call_operand.vmem [shape: bf16[2,16,128], index: 3, kind: output, shape index: {}]  }
   0x1   :  { %s1134_s14 = smov 0  }
   0x2 LB: > { %s765_s15 = sadd.s32 4294967295, %s1108_s14   ;;  %s1147_s16 = sadd.s32 1, %s1108_s14   ;;  %s1108_s14 = sphi %s1134_s14, %s1323_s14   ;;  %s1104_s13 = sphi %s1132_s13, %s1322_s13   ;;  %s1100_s12 = sphi %s1130_s12, %s1321_s12  }
   0x3   : > { %s17_s17 = ssub.s32 %s1108_s14, %s1147_s16  ;;  %s20_s18 = sadd.s32 1, %s1104_s13 }
   0x4   : > { %p18_p0 = scmp.eq.s32.totalorder %s17_s17, 0  ;;  %p27_p1 = scmp.ne.s32.totalorder %s1104_s13, %s1100_s12 }
   0x5   : > { %p28_p2 = scmp.eq.s32.totalorder %s1108_s14, 0  ;;  %p768_p4 = scmp.ge.s32.totalorder %s1108_s14, 2 }
   0x6   : > { %s1156_s19 = scalar_select %p18_p0, %s1104_s13, %s20_s18  }
   0x7   : > { %p29_p3 = por %p28_p2, %p27_p1  ;;  %127 = sbr.rel (%p768_p4) target bundleno = 21 (0x15), region = 24 }
   0xc   : > { %130 = sbr.rel (!%p29_p3) target bundleno = 21 (0x15), region = 28  ;;  %s132_s20 = sand.u32 (%p29_p3), 1, %s1104_s13  }
   0xd   : > { %s1059_s21 = smul.u32 (%p29_p3), 12, %s1108_s14 }
   0xe   : > { %s1058_s22 = smul.u32 (%p29_p3), 24, %s132_s20 }
   0xf   : > { %s137_s25 = scalar_lea.vmem (%p29_p3), %s1317_s0, %s1059_s21 }
  0x10   : > { %v154_v0 = vld [vmem:[%s137_s25] sm:$0xff] (%p29_p3)   ;;  %v158_v1 = vld [vmem:[%s137_s25 + $0x8] sm:$0xf] (%p29_p3)  ;;  %v160_v2 = vld [vmem:[%s137_s25 + $0x18] sm:$0xff] (%p29_p3)   ;;  %s134_s26 = scalar_lea.vmem (%p29_p3), [#allocation2], %s1058_s22 }
  0x11   : > { %155 = vst [vmem:[%s134_s26] sm:$0xff] %v154_v0   ;;  %v164_v3 = vld [vmem:[%s137_s25 + $0x20] sm:$0xf] }
  0x12   : > { %159 = vst [vmem:[%s134_s26 + $0x8] sm:$0xf] %v158_v1 }
  0x13   : > { %161 = vst [vmem:[%s134_s26 + $0xc] sm:$0xff] %v160_v2  }
  0x14   : > { %165 = vst [vmem:[%s134_s26 + $0x14] sm:$0xf] %v164_v3 }
  0x15 PF: > { %p770_p5 = scmp.ge.s32.totalorder %s1108_s14, 1  ;;  %p200_p6 = scmp.lt.s32.totalorder %s1108_s14, 3 }
  0x17   : > { %p201_p7 = pnand %p770_p5, %p200_p6 }
  0x18   : > { %s207_s8 = sand.u32 (!%p201_p7), 1, %s1100_s12   ;;  %p230_p8 = scmp.lt.s32.totalorder (!%p201_p7), %s765_s15, 1 }
  0x19   : > { %204 = sbr.rel (%p201_p7) target bundleno = 237 (0xed), region = 69 }
  0x1a   : > { %s1060_s12 = smul.u32 (!%p201_p7), 24, %s207_s8 }
  0x1c   : > { %s209_s17 = scalar_lea.vmem (!%p201_p7), [#allocation2], %s1060_s12 }
  0x1e   : > { %v1028_v4 = vld [vmem:[%s1318_s1 + $0x78] sm:$0xff]  ;;  %v1027_v8 = vld [vmem:[%s1318_s1 + $0x70] sm:$0xff]  ;;  %v1026_v12 = vld [vmem:[%s1318_s1 + $0x68] sm:$0xff]  ;;  %vm431_vm0 = vsmask.f32 7424  ;;  %vm623_vm1 = vcmask 1046528  }
  0x1f   : > { %v1036_v5 = vld [vmem:[%s1318_s1 + $0xb8] sm:$0xff]  ;;  %329 = vmatpush.bf16.msra.mxu0 %v1028_v4  ;;  %v1035_v9 = vld [vmem:[%s1318_s1 + $0xb0] sm:$0xff]  ;;  %v1034_v13 = vld [vmem:[%s1318_s1 + $0xa8] sm:$0xff]  ;;  %s1325_s15 = smov (!%p230_p8, %s765_s15), 1 }
  0x20   : > { %v1044_v6 = vld [vmem:[%s1318_s1 + $0xf8] sm:$0xff]  ;;  %493 = vmatpush.bf16.msra.mxu2 %v1036_v5  ;;  %v1043_v10 = vld [vmem:[%s1318_s1 + $0xf0] sm:$0xff]  ;;  %v1042_v14 = vld [vmem:[%s1318_s1 + $0xe8] sm:$0xff]  ;;  %s1010_s12 = sshll.u32 %s1325_s15, 3 }
  0x21   : > { %v1020_v7 = vld [vmem:[%s1318_s1 + $0x38] sm:$0xff]  ;;  %590 = vmatpush.bf16.msra.mxu3 %v1044_v6  ;;  %v1019_v11 = vld [vmem:[%s1318_s1 + $0x30] sm:$0xff]  ;;  %v1018_v15 = vld [vmem:[%s1318_s1 + $0x28] sm:$0xff]  ;;  %s234_s27 = scalar_lea.vmem %s1320_s3, %s1010_s12 }
  0x22   : > { %397 = vmatpush.bf16.msra.mxu1 %v1020_v7  ;;  %v1025_v16 = vld [vmem:[%s1318_s1 + $0x60] sm:$0xff]  ;;  %v775_v21 = vld [vmem:[%s209_s17 + $0x14] sm:$0x1]  ;;  %v1024_v22 = vld [vmem:[%s1318_s1 + $0x58] sm:$0xff] }
  0x23   : > { %330 = vmatpush.bf16.msra.mxu0 %v1027_v8  ;;  %v1033_v17 = vld [vmem:[%s1318_s1 + $0xa0] sm:$0xff]  ;;  %v1032_v23 = vld [vmem:[%s1318_s1 + $0x98] sm:$0xff]  ;;  %v527_v29 = vunpack.c.l.b16 %v775_v21  ;;  %v1023_v30 = vld [vmem:[%s1318_s1 + $0x50] sm:$0xff] }
  0x24   : > { %494 = vmatpush.bf16.msra.mxu2 %v1035_v9  ;;  %v1041_v18 = vld [vmem:[%s1318_s1 + $0xe0] sm:$0xff]  ;;  %v1040_v26 = vld [vmem:[%s1318_s1 + $0xd8] sm:$0xff]  ;;  %v1031_v31 = vld [vmem:[%s1318_s1 + $0x90] sm:$0xff] }
  0x25   : > { %591 = vmatpush.bf16.msra.mxu3 %v1043_v10  ;;  %v1017_v19 = vld [vmem:[%s1318_s1 + $0x20] sm:$0xff]  ;;  %v1016_v27 = vld [vmem:[%s1318_s1 + $0x18] sm:$0xff]  ;;  %v1039_v34 = vld [vmem:[%s1318_s1 + $0xd0] sm:$0xff]  ;;  %v528_v36 = vpack.c.b16 %v527_v29, %v527_v29 }
  0x26   : > { %398 = vmatpush.bf16.msra.mxu1 %v1019_v11  ;;  %v237_v20 = vld [vmem:[%s209_s17 + $0x8] sm:$0x1]  ;;  %v1221_v24 = vld [vmem:[%s209_s17] sm:$0xff]  ;;  %v1012_v28 = vld [vmem:[%s209_s17 + $0xc] sm:$0xff] }
  0x27   : > { %331 = vmatpush.bf16.msra.mxu0 %v1026_v12  ;;  %v429_v25 = vunpack.c.l.b16 %v237_v20  ;;  %v435_v33 = vshll.u32 %v1221_v24, 16  ;;  %v1015_v35 = vld [vmem:[%s1318_s1 + $0x10] sm:$0xff]  ;;  %v532_v37 = vshll.u32 %v1012_v28, 16  ;;  %v1022_v38 = vld [vmem:[%s1318_s1 + $0x48] sm:$0xff]  ;;  %v433_v40 = vshrl.u32 %v1221_v24, 16  ;;  %v1021_v48 = vld [vmem:[%s1318_s1 + $0x40] sm:$0xff] }
  0x28   : > { %495 = vmatpush.bf16.msra.mxu2 %v1034_v13  ;;  %v1030_v39 = vld [vmem:[%s1318_s1 + $0x88] sm:$0xff]  ;;  %v530_v45 = vshrl.u32 %v1012_v28, 16  ;;  %v537_v47 = vshll.u32 %v528_v36, 16  ;;  %v1029_v49 = vld [vmem:[%s1318_s1 + $0x80] sm:$0xff]  ;;  %v1052_v52 = vld [vmem:[%s1318_s1 + $0x138] sm:$0xff]  ;;  %v624_v2 = vrot.slane %v1221_v24, 1 }
  0x29   : > { %592 = vmatpush.bf16.msra.mxu3 %v1042_v14  ;;  %v1235_v32 = vpack.c.b16 %v429_v25, %v429_v25  ;;  %v437_v41 = vrot.slane %v435_v33, 1  ;;  %v1038_v43 = vld [vmem:[%s1318_s1 + $0xc8] sm:$0xff]  ;;  %v534_v46 = vrot.slane %v532_v37, 1  ;;  %v1037_v53 = vld [vmem:[%s1318_s1 + $0xc0] sm:$0xff]  ;;  %v1051_v58 = vld [vmem:[%s1318_s1 + $0x130] sm:$0xff] }
  0x2a   : > { %399 = vmatpush.bf16.msra.mxu1 %v1018_v15  ;;  %v1014_v44 = vld [vmem:[%s1318_s1 + $0x8] sm:$0xff]  ;;  %v539_v55 = vrot.slane %v537_v47, 1  ;;  %v1013_v56 = vld [vmem:[%s1318_s1] sm:$0xff]  ;;  %v1048_v62 = vld [vmem:[%s1318_s1 + $0x118] sm:$0xff] }
  0x2b   : > { %332 = vmatpush.bf16.msra.mxu0 %v1025_v16  ;;  %v440_v42 = vshll.u32 %v1235_v32, 16  ;;  %v438_v50 = vor.u32 %v437_v41, %v433_v40  ;;  %v535_v54 = vor.u32 %v534_v46, %v530_v45  ;;  %v1050_v60 = vld [vmem:[%s1318_s1 + $0x128] sm:$0xff]  ;;  %v1049_v61 = vld [vmem:[%s1318_s1 + $0x120] sm:$0xff]  ;;  %v1047_v63 = vld [vmem:[%s1318_s1 + $0x110] sm:$0xff]  ;;  %v625_v3 = vrot.slane %v1235_v32, 1 }
  0x2c   : > { %496 = vmatpush.bf16.msra.mxu2 %v1033_v17  ;;  %v1046_v0 = vld [vmem:[%s1318_s1 + $0x108] sm:$0xff]  ;;  %v1045_v1 = vld [vmem:[%s1318_s1 + $0x100] sm:$0xff] }
  0x2d   : > { %593 = vmatpush.bf16.msra.mxu3 %v1041_v18  ;;  %v442_v51 = vrot.slane %v440_v42, 1  ;;  %v540_v59 = vsel %vm431_vm0, %v535_v54, %v539_v55  ;;  %v626_v4 = vsel %vm623_vm1, %v624_v2, %v625_v3  ;;  %v1085_v20 = vld [vmem:[%s1319_s2] ss:$0 sm:$0xff] }
  0x2e   : > { %400 = vmatpush.bf16.msra.mxu1 %v1017_v19 }
  0x2f   : > { %333 = vmatpush.bf16.msra.mxu0 %v1024_v22  ;;  %v443_v57 = vsel %vm431_vm0, %v438_v50, %v442_v51 }
  0x30   : > { %497 = vmatpush.bf16.msra.mxu2 %v1032_v23 }
  0x31   : > { %594 = vmatpush.bf16.msra.mxu3 %v1040_v26 }
  0x32   : > { %401 = vmatpush.bf16.msra.mxu1 %v1016_v27 }
  0x33   : > { %334 = vmatpush.bf16.msra.mxu0 %v1023_v30 }
  0x34   : > { %498 = vmatpush.bf16.msra.mxu2 %v1031_v31 }
  0x35   : > { %595 = vmatpush.bf16.msra.mxu3 %v1039_v34 }
  0x36   : > { %402 = vmatpush.bf16.msra.mxu1 %v1015_v35 }
  0x37   : > { %335 = vmatpush.bf16.msra.mxu0 %v1022_v38 }
  0x38   : > { %499 = vmatpush.bf16.msra.mxu2 %v1030_v39 }
  0x39   : > { %596 = vmatpush.bf16.msra.mxu3 %v1038_v43 }
  0x3a   : > { %403 = vmatpush.bf16.msra.mxu1 %v1014_v44 }
  0x3b   : > { %336 = vmatpush.bf16.msra.mxu0 %v1021_v48 }
  0x3c   : > { %500 = vmatpush.bf16.msra.mxu2 %v1029_v49 }
  0x3d   : > { %597 = vmatpush.bf16.msra.mxu3 %v1037_v53 }
  0x3e   : > { %404 = vmatpush.bf16.msra.mxu1 %v1013_v56  ;;  %337 = vmatmul.bf16.vlgmr.msra.gmra.mxu0 %v1012_v28 }
  0x3f   : > { %676 = vmatpush.bf16.msrb.mxu0 %v1052_v52  ;;  %501 = vmatmul.bf16.vlgmr.msra.gmra.mxu2 %v443_v57 }
  0x40   : > { %598 = vmatmul.bf16.vlgmr.msra.gmra.mxu3 %v540_v59 }
  0x41   : > { %405 = vmatmul.bf16.vlgmr.msra.gmra.mxu1 %v1221_v24 }
  0x43   : > { %677 = vmatpush.bf16.msrb.mxu0 %v1051_v58 }
  0x47   : > { %678 = vmatpush.bf16.msrb.mxu0 %v1050_v60 }
  0x4b   : > { %679 = vmatpush.bf16.msrb.mxu0 %v1049_v61 }
  0x4f   : > { %680 = vmatpush.bf16.msrb.mxu0 %v1048_v62 }
  0x53   : > { %681 = vmatpush.bf16.msrb.mxu0 %v1047_v63 }
  0x57   : > { %682 = vmatpush.bf16.msrb.mxu0 %v1046_v0 }
  0x5b   : > { %683 = vmatpush.bf16.msrb.mxu0 %v1045_v1 }
  0x5e   : > { %684 = vmatmul.bf16.vlgmr.msrb.gmra.mxu0 %v626_v4 }
  0xbb   : > { %v338_v5 = vpop.f32.mrf.mxu0 }
  0xbe   : > { %v406_v6 = vpop.f32.mrf.mxu1 }
  0xbf   : > { %v407_v10 = vadd.f32 %v406_v6, %v338_v5 }
  0xc2   : > { %v502_v7 = vpop.f32.mrf.mxu2 }
  0xc3   : > { %v340_v8 = vpop.f32.mrf.mxu0  ;;  %v599_v9 = vpop.f32.mrf.mxu3  ;;  %v507_v12 = vadd.f32 %v502_v7, %v407_v10 }
  0xc5   : > { %v604_v16 = vadd.f32 %v599_v9, %v507_v12 }
  0xc6   : > { %v408_v11 = vpop.f32.mrf.mxu1 }
  0xc7   : > { %v409_v13 = vadd.f32 %v408_v11, %v340_v8 }
  0xca   : > { %v504_v14 = vpop.f32.mrf.mxu2 }
  0xcb   : > { %v508_v17 = vadd.f32 %v504_v14, %v409_v13  ;;  %v601_v18 = vpop.f32.mrf.mxu3 }
  0xcd   : > { %v605_v21 = vadd.f32 %v601_v18, %v508_v17 }
  0xdb   : > { %v685_v15 = vpop.f32.mrf.mxu0 }
  0xdc   : > { %v690_v19 = vadd.f32 %v685_v15, %v604_v16 }
  0xde   : > { %v696_v23 = vadd.f32 %v1085_v20, %v690_v19 }
  0xe0   : > { %v698_v26 = vmax.f32 %v696_v23, 0.0 }
  0xe3   : > { %v687_v22 = vpop.f32.mrf.mxu0 }
  0xe4   : > { %v691_v24 = vadd.f32 %v687_v22, %v605_v21 }
  0xe6   : > { %v697_v25 = vadd.f32 %v1085_v20, %v691_v24 }
  0xe8   : > { %v699_v27 = vmax.f32 %v697_v25, 0.0 }
  0xea   : > { %v1056_v28 = vpack.c.bf16 %v699_v27, %v698_v26 }
  0xec   : > { %1057 = vst [vmem:[%s234_s27] sm:$0xff] %v1056_v28  }
  0xed PF: > { %p10_p9 = scmp.ge.s32.totalorder %s1147_s16, 4   ;;  %s1321_s12 = smov %s1104_s13 }
  0xee   : > { %s1322_s13 = smov %s1156_s19  ;;  %s1323_s14 = smov %s1147_s16 }
  0xef   :  { %12 = sbr.rel (!%p10_p9) target bundleno = 2 (0x2), region = 113 }

// kernel: eeg_encoder_forward.13
= control target key start
LH: loop header
LB: loop body
LE: loop exit
PB: predicated region body
PF: predicated region fallthrough
CT: control target
= control target key end

     0   :  { %vm111_vm0 = vcmask 261120   ;;  %s231_s1 = inlined_call_operand.vmem [shape: bf16[128,32], index: 1, kind: input, shape index: {}]   ;;  %s232_s2 = inlined_call_operand.vmem [shape: f32[1,32], index: 2, kind: input, shape index: {}]   ;;  %s233_s0 = inlined_call_operand.vmem [shape: bf16[16,128], index: 0, kind: input, shape index: {}]   ;;  %s234_s3 = inlined_call_operand.vmem [shape: f32[16,32], index: 3, kind: input, shape index: {}]   ;;  %s235_s4 = inlined_call_operand.vmem [shape: f32[16,32], index: 4, kind: output, shape index: {}]  }
   0x1   :  { %v162_v0 = vld [vmem:[%s231_s1 + $0x38] sm:$0xff]  ;;  %v161_v1 = vld [vmem:[%s231_s1 + $0x30] sm:$0xff]  ;;  %v160_v2 = vld [vmem:[%s231_s1 + $0x28] sm:$0xff] }
   0x2   :  { %93 = vmatpush.bf16.msra.mxu0 %v162_v0  ;;  %v159_v3 = vld [vmem:[%s231_s1 + $0x20] sm:$0xff]  ;;  %v158_v4 = vld [vmem:[%s231_s1 + $0x18] sm:$0xff]  ;;  %v157_v5 = vld [vmem:[%s231_s1 + $0x10] sm:$0xff] }
   0x3   :  { %v156_v6 = vld [vmem:[%s231_s1 + $0x8] sm:$0xff]  ;;  %v155_v7 = vld [vmem:[%s231_s1] sm:$0xff] }
   0x4   :  { %v154_v8 = vld [vmem:[%s233_s0] sm:$0xff]  ;;  %v108_v15 = vld [vmem:[%s234_s3 + $0x8] sm:$0xff] }
   0x5   :  { %v163_v9 = vld [vmem:[%s232_s2] ss:$0 sm:$0xff] }
   0x6   :  { %94 = vmatpush.bf16.msra.mxu0 %v161_v1  ;;  %v107_v11 = vld [vmem:[%s234_s3] sm:$0xff] }
   0xa   :  { %95 = vmatpush.bf16.msra.mxu0 %v160_v2 }
   0xe   :  { %96 = vmatpush.bf16.msra.mxu0 %v159_v3 }
  0x12   :  { %97 = vmatpush.bf16.msra.mxu0 %v158_v4 }
  0x16   :  { %98 = vmatpush.bf16.msra.mxu0 %v157_v5 }
  0x1a   :  { %99 = vmatpush.bf16.msra.mxu0 %v156_v6 }
  0x1e   :  { %100 = vmatpush.bf16.msra.mxu0 %v155_v7 }
  0x21   :  { %101 = vmatmul.bf16.vlgmr.msra.gmra.mxu0 %v154_v8 }
  0x9e   :  { %v102_v10 = vpop.f32.mrf.mxu0 }
  0x9f   :  { %v103_v12 = vadd.f32 %v163_v9, %v102_v10 }
  0xa1   :  { %v109_v13 = vadd.f32 %v107_v11, %v103_v12 }
  0xa3   :  { %112 = vst.msk [vmem:[%s235_s4] sm:$0xff] %vm111_vm0, %v109_v13 }
  0xa6   :  { %v104_v14 = vpop.f32.mrf.mxu0 }
  0xa7   :  { %v105_v16 = vadd.f32 %v163_v9, %v104_v14 }
  0xa9   :  { %v110_v17 = vadd.f32 %v108_v15, %v105_v16 }
  0xab   :  { %113 = vst.msk [vmem:[%s235_s4 + $0x8] sm:$0xff] %vm111_vm0, %v110_v17 }

// kernel: eeg_encoder_forward.10
= control target key start
LH: loop header
LB: loop body
LE: loop exit
PB: predicated region body
PF: predicated region fallthrough
CT: control target
= control target key end

     0   :  { %s1559_s12 = smov 0   ;;  %s1561_s13 = smov 0   ;;  %s1851_s0 = inlined_call_operand.vmem [shape: bf16[2,2,35,128], index: 0, kind: input, shape index: {}]   ;;  %s1852_s1 = inlined_call_operand.vmem [shape: bf16[7,128,128], index: 1, kind: input, shape index: {}]   ;;  %s1853_s2 = inlined_call_operand.vmem [shape: f32[1,128], index: 2, kind: input, shape index: {}]   ;;  %s1854_s3 = inlined_call_operand.vmem [shape: bf16[2,32,128], index: 3, kind: output, shape index: {}]  }
   0x1   :  { %s1563_s14 = smov 0  }
   0x2 LB: > { %s1056_s15 = sadd.s32 4294967295, %s1537_s14   ;;  %s1576_s16 = sadd.s32 1, %s1537_s14   ;;  %s1537_s14 = sphi %s1563_s14, %s1857_s14   ;;  %s1533_s13 = sphi %s1561_s13, %s1856_s13   ;;  %s1529_s12 = sphi %s1559_s12, %s1855_s12  }
   0x3   : > { %s17_s17 = ssub.s32 %s1537_s14, %s1576_s16  ;;  %s20_s18 = sadd.s32 1, %s1533_s13 }
   0x4   : > { %p18_p0 = scmp.eq.s32.totalorder %s17_s17, 0  ;;  %p27_p1 = scmp.ne.s32.totalorder %s1533_s13, %s1529_s12 }
   0x5   : > { %p28_p2 = scmp.eq.s32.totalorder %s1537_s14, 0  ;;  %p1059_p4 = scmp.ge.s32.totalorder %s1537_s14, 2 }
   0x6   : > { %s1585_s19 = scalar_select %p18_p0, %s1533_s13, %s20_s18  }
   0x7   : > { %p29_p3 = por %p28_p2, %p27_p1  ;;  %127 = sbr.rel (%p1059_p4) target bundleno = 23 (0x17), region = 24 }
   0xc   : > { %130 = sbr.rel (!%p29_p3) target bundleno = 23 (0x17), region = 28  ;;  %s132_s20 = sand.u32 (%p29_p3), 1, %s1533_s13  }
   0xd   : > { %s1488_s21 = smul.u32 (%p29_p3), 20, %s1537_s14 }
   0xe   : > { %s1487_s22 = smul.u32 (%p29_p3), 40, %s132_s20 }
   0xf   : > { %s137_s25 = scalar_lea.vmem (%p29_p3), %s1851_s0, %s1488_s21 }
  0x10   : > { %v154_v0 = vld [vmem:[%s137_s25] sm:$0xff] (%p29_p3)   ;;  %v158_v1 = vld [vmem:[%s137_s25 + $0x8] sm:$0xff] (%p29_p3)   ;;  %v162_v2 = vld [vmem:[%s137_s25 + $0x10] sm:$0xf] (%p29_p3)  ;;  %s134_s26 = scalar_lea.vmem (%p29_p3), [#allocation2], %s1487_s22 }
  0x11   : > { %155 = vst [vmem:[%s134_s26] sm:$0xff] %v154_v0   ;;  %v164_v3 = vld [vmem:[%s137_s25 + $0x28] sm:$0xff]   ;;  %v168_v4 = vld [vmem:[%s137_s25 + $0x30] sm:$0xff]   ;;  %v172_v5 = vld [vmem:[%s137_s25 + $0x38] sm:$0xf] }
  0x12   : > { %159 = vst [vmem:[%s134_s26 + $0x8] sm:$0xff] %v158_v1  }
  0x13   : > { %163 = vst [vmem:[%s134_s26 + $0x10] sm:$0xf] %v162_v2 }
  0x14   : > { %165 = vst [vmem:[%s134_s26 + $0x14] sm:$0xff] %v164_v3  }
  0x15   : > { %169 = vst [vmem:[%s134_s26 + $0x1c] sm:$0xff] %v168_v4  }
  0x16   : > { %173 = vst [vmem:[%s134_s26 + $0x24] sm:$0xf] %v172_v5 }
  0x17 PF: > { %p1061_p5 = scmp.ge.s32.totalorder %s1537_s14, 1  ;;  %p216_p6 = scmp.lt.s32.totalorder %s1537_s14, 3 }
  0x19   : > { %p217_p7 = pnand %p1061_p5, %p216_p6 }
  0x1a   : > { %s223_s22 = sand.u32 (!%p217_p7), 1, %s1529_s12   ;;  %p246_p8 = scmp.lt.s32.totalorder (!%p217_p7), %s1056_s15, 1 }
  0x1b   : > { %220 = sbr.rel (%p217_p7) target bundleno = 263 (0x107), region = 69 }
  0x1c   : > { %s1489_s12 = smul.u32 (!%p217_p7), 40, %s223_s22 }
  0x1e   : > { %s1656_s26 = scalar_lea.vmem (!%p217_p7), [#allocation2], %s1489_s12 }
  0x20   : > { %v1427_v6 = vld [vmem:[%s1852_s1 + $0x78] sm:$0xff]  ;;  %v1426_v10 = vld [vmem:[%s1852_s1 + $0x70] sm:$0xff]  ;;  %v1425_v14 = vld [vmem:[%s1852_s1 + $0x68] sm:$0xff]  ;;  %vm473_vm0 = vsmask.f32 7424  ;;  %vm697_vm1 = vcmask 1046528  }
  0x21   : > { %v1419_v7 = vld [vmem:[%s1852_s1 + $0x38] sm:$0xff]  ;;  %355 = vmatpush.bf16.msra.mxu0 %v1427_v6  ;;  %v1418_v11 = vld [vmem:[%s1852_s1 + $0x30] sm:$0xff]  ;;  %v1417_v15 = vld [vmem:[%s1852_s1 + $0x28] sm:$0xff]  ;;  %vm888_vm2 = vsmask.f32 6400  ;;  %s1859_s15 = smov (!%p246_p8, %s1056_s15), 1 }
  0x22   : > { %v1435_v8 = vld [vmem:[%s1852_s1 + $0xb8] sm:$0xff]  ;;  %434 = vmatpush.bf16.msra.mxu1 %v1419_v7  ;;  %v1434_v12 = vld [vmem:[%s1852_s1 + $0xb0] sm:$0xff]  ;;  %v1433_v16 = vld [vmem:[%s1852_s1 + $0xa8] sm:$0xff]  ;;  %s1407_s8 = sshll.u32 %s1859_s15, 4 }
  0x23   : > { %v1443_v9 = vld [vmem:[%s1852_s1 + $0xf8] sm:$0xff]  ;;  %544 = vmatpush.bf16.msra.mxu2 %v1435_v8  ;;  %v1442_v13 = vld [vmem:[%s1852_s1 + $0xf0] sm:$0xff]  ;;  %v1441_v17 = vld [vmem:[%s1852_s1 + $0xe8] sm:$0xff]  ;;  %s250_s10 = scalar_lea.vmem %s1854_s3, %s1407_s8 }
  0x24   : > { %657 = vmatpush.bf16.msra.mxu3 %v1443_v9  ;;  %v1424_v18 = vld [vmem:[%s1852_s1 + $0x60] sm:$0xff]  ;;  %v1423_v22 = vld [vmem:[%s1852_s1 + $0x58] sm:$0xff]  ;;  %v1422_v28 = vld [vmem:[%s1852_s1 + $0x50] sm:$0xff] }
  0x25   : > { %356 = vmatpush.bf16.msra.mxu0 %v1426_v10  ;;  %v1416_v19 = vld [vmem:[%s1852_s1 + $0x20] sm:$0xff]  ;;  %v1415_v23 = vld [vmem:[%s1852_s1 + $0x18] sm:$0xff]  ;;  %v1414_v29 = vld [vmem:[%s1852_s1 + $0x10] sm:$0xff] }
  0x26   : > { %435 = vmatpush.bf16.msra.mxu1 %v1418_v11  ;;  %v1432_v20 = vld [vmem:[%s1852_s1 + $0xa0] sm:$0xff]  ;;  %v1431_v24 = vld [vmem:[%s1852_s1 + $0x98] sm:$0xff]  ;;  %v1430_v30 = vld [vmem:[%s1852_s1 + $0x90] sm:$0xff] }
  0x27   : > { %545 = vmatpush.bf16.msra.mxu2 %v1434_v12  ;;  %v1440_v21 = vld [vmem:[%s1852_s1 + $0xe0] sm:$0xff]  ;;  %v1439_v25 = vld [vmem:[%s1852_s1 + $0xd8] sm:$0xff]  ;;  %v1438_v31 = vld [vmem:[%s1852_s1 + $0xd0] sm:$0xff] }
  0x28   : > { %658 = vmatpush.bf16.msra.mxu3 %v1442_v13  ;;  %v1659_v26 = vld [vmem:[%s1656_s26 + $0x14] sm:$0xff]  ;;  %v1662_v27 = vld [vmem:[%s1656_s26] sm:$0xff]  ;;  %v1677_v32 = vld [vmem:[%s1656_s26 + $0x8] sm:$0xff] }
  0x29   : > { %357 = vmatpush.bf16.msra.mxu0 %v1425_v14  ;;  %v477_v33 = vshll.u32 %v1662_v27, 16  ;;  %v1681_v34 = vld [vmem:[%s1656_s26 + $0x1c] sm:$0xff]  ;;  %v590_v35 = vshll.u32 %v1659_v26, 16  ;;  %v475_v38 = vshrl.u32 %v1662_v27, 16  ;;  %v588_v39 = vshrl.u32 %v1659_v26, 16  ;;  %v1466_v63 = vld [vmem:[%s1852_s1 + $0x1b0] sm:$0xff] }
  0x2a   : > { %436 = vmatpush.bf16.msra.mxu1 %v1417_v15  ;;  %v1421_v36 = vld [vmem:[%s1852_s1 + $0x48] sm:$0xff]  ;;  %v482_v43 = vshll.u32 %v1677_v32, 16  ;;  %v595_v45 = vshll.u32 %v1681_v34, 16  ;;  %v1420_v46 = vld [vmem:[%s1852_s1 + $0x40] sm:$0xff]  ;;  %v1467_v54 = vld [vmem:[%s1852_s1 + $0x1b8] sm:$0xff]  ;;  %v486_v7 = vshrl.u32 %v1677_v32, 16 }
  0x2b   : > { %546 = vmatpush.bf16.msra.mxu2 %v1433_v16  ;;  %v1413_v37 = vld [vmem:[%s1852_s1 + $0x8] sm:$0xff]  ;;  %v479_v42 = vrot.slane %v477_v33, 1  ;;  %v592_v44 = vrot.slane %v590_v35, 1  ;;  %v1412_v47 = vld [vmem:[%s1852_s1] sm:$0xff]  ;;  %v1451_v55 = vld [vmem:[%s1852_s1 + $0x138] sm:$0xff]  ;;  %v599_v9 = vshrl.u32 %v1681_v34, 16 }
  0x2c   : > { %659 = vmatpush.bf16.msra.mxu3 %v1441_v17  ;;  %v1429_v40 = vld [vmem:[%s1852_s1 + $0x88] sm:$0xff]  ;;  %v1428_v48 = vld [vmem:[%s1852_s1 + $0x80] sm:$0xff]  ;;  %v484_v51 = vrot.slane %v482_v43, 1  ;;  %v597_v53 = vrot.slane %v595_v45, 1  ;;  %v255_v56 = vld [vmem:[%s1656_s26 + $0x10] sm:$0x3] }
  0x2d   : > { %358 = vmatpush.bf16.msra.mxu0 %v1424_v18  ;;  %v1437_v41 = vld [vmem:[%s1852_s1 + $0xc8] sm:$0xff]  ;;  %v1436_v49 = vld [vmem:[%s1852_s1 + $0xc0] sm:$0xff]  ;;  %v480_v50 = vor.u32 %v479_v42, %v475_v38  ;;  %v593_v52 = vor.u32 %v592_v44, %v588_v39  ;;  %v1459_v60 = vld [vmem:[%s1852_s1 + $0x178] sm:$0xff]  ;;  %v471_v61 = vunpack.c.l.b16 %v255_v56  ;;  %v892_v39 = vrot.slane %v486_v7, 1 }
  0x2e   : > { %437 = vmatpush.bf16.msra.mxu1 %v1416_v19  ;;  %v1068_v57 = vld [vmem:[%s1656_s26 + $0x24] sm:$0x3]  ;;  %v1450_v0 = vld [vmem:[%s1852_s1 + $0x130] sm:$0xff]  ;;  %v488_v14 = vor.u32 %v486_v7, %v484_v51  ;;  %v601_v16 = vor.u32 %v599_v9, %v597_v53  ;;  %v1463_v18 = vld [vmem:[%s1852_s1 + $0x198] sm:$0xff]  ;;  %v699_v42 = vrot.slane %v1677_v32, 1  ;;  %v793_v45 = vrot.slane %v1659_v26, 1 }
  0x2f   : > { %547 = vmatpush.bf16.msra.mxu2 %v1432_v20  ;;  %v485_v58 = vsel %vm473_vm0, %v480_v50, %v484_v51  ;;  %v598_v59 = vsel %vm473_vm0, %v593_v52, %v597_v53  ;;  %v585_v62 = vunpack.c.l.b16 %v1068_v57  ;;  %v1458_v1 = vld [vmem:[%s1852_s1 + $0x170] sm:$0xff]  ;;  %v1742_v2 = vpack.c.b16 %v471_v61, %v471_v61  ;;  %v1465_v4 = vld [vmem:[%s1852_s1 + $0x1a8] sm:$0xff]  ;;  %v1464_v11 = vld [vmem:[%s1852_s1 + $0x1a0] sm:$0xff] }
  0x30   : > { %660 = vmatpush.bf16.msra.mxu3 %v1440_v21  ;;  %v1449_v5 = vld [vmem:[%s1852_s1 + $0x128] sm:$0xff]  ;;  %v1448_v12 = vld [vmem:[%s1852_s1 + $0x120] sm:$0xff]  ;;  %v1447_v19 = vld [vmem:[%s1852_s1 + $0x118] sm:$0xff] }
  0x31   : > { %359 = vmatpush.bf16.msra.mxu0 %v1423_v22  ;;  %v1744_v3 = vpack.c.b16 %v585_v62, %v585_v62  ;;  %v1457_v6 = vld [vmem:[%s1852_s1 + $0x168] sm:$0xff]  ;;  %v490_v8 = vshll.u32 %v1742_v2, 16  ;;  %v1456_v13 = vld [vmem:[%s1852_s1 + $0x160] sm:$0xff]  ;;  %v1455_v22 = vld [vmem:[%s1852_s1 + $0x158] sm:$0xff] }
  0x32   : > { %438 = vmatpush.bf16.msra.mxu1 %v1415_v23  ;;  %v1462_v23 = vld [vmem:[%s1852_s1 + $0x190] sm:$0xff]  ;;  %v1444_v35 = vld [vmem:[%s1852_s1 + $0x100] sm:$0xff] }
  0x33   : > { %548 = vmatpush.bf16.msra.mxu2 %v1431_v24  ;;  %v603_v10 = vshll.u32 %v1744_v3, 16  ;;  %v492_v15 = vrot.slane %v490_v8, 1  ;;  %v1446_v24 = vld [vmem:[%s1852_s1 + $0x110] sm:$0xff]  ;;  %v1452_v44 = vld [vmem:[%s1852_s1 + $0x140] sm:$0xff]  ;;  %v796_v50 = vrot.slane %v1744_v3, 1 }
  0x34   : > { %661 = vmatpush.bf16.msra.mxu3 %v1439_v25  ;;  %v1454_v25 = vld [vmem:[%s1852_s1 + $0x150] sm:$0xff] }
  0x35   : > { %360 = vmatpush.bf16.msra.mxu0 %v1422_v28  ;;  %v605_v17 = vrot.slane %v603_v10, 1  ;;  %v493_v20 = vsel %vm473_vm0, %v488_v14, %v492_v15  ;;  %v1461_v28 = vld [vmem:[%s1852_s1 + $0x188] sm:$0xff] }
  0x36   : > { %439 = vmatpush.bf16.msra.mxu1 %v1414_v29  ;;  %v1445_v29 = vld [vmem:[%s1852_s1 + $0x108] sm:$0xff] }
  0x37   : > { %549 = vmatpush.bf16.msra.mxu2 %v1430_v30  ;;  %v606_v21 = vsel %vm473_vm0, %v601_v16, %v605_v17  ;;  %v1453_v30 = vld [vmem:[%s1852_s1 + $0x148] sm:$0xff] }
  0x38   : > { %662 = vmatpush.bf16.msra.mxu3 %v1438_v31  ;;  %v1460_v31 = vld [vmem:[%s1852_s1 + $0x180] sm:$0xff] }
  0x39   : > { %361 = vmatpush.bf16.msra.mxu0 %v1421_v36  ;;  %v889_v36 = vrot.slane %v475_v38, 1  ;;  %v701_v38 = vrot.slane %v1742_v2, 1 }
  0x3a   : > { %440 = vmatpush.bf16.msra.mxu1 %v1413_v37  ;;  %v890_v37 = vrot.slane %v477_v33, 2  ;;  %v794_v33 = vrot.slane %v1681_v34, 1 }
  0x3b   : > { %550 = vmatpush.bf16.msra.mxu2 %v1429_v40  ;;  %v893_v40 = vrot.slane %v482_v43, 2 }
  0x3c   : > { %663 = vmatpush.bf16.msra.mxu3 %v1437_v41  ;;  %v698_v41 = vrot.slane %v1662_v27, 1  ;;  %v891_v43 = vor.u32 %v890_v37, %v889_v36  ;;  %v797_v52 = vsel %vm697_vm1, %v794_v33, %v796_v50 }
  0x3d   : > { %362 = vmatpush.bf16.msra.mxu0 %v1420_v46  ;;  %v894_v46 = vor.u32 %v893_v40, %v892_v39 }
  0x3e   : > { %441 = vmatpush.bf16.msra.mxu1 %v1412_v47  ;;  %v795_v47 = vsel %vm697_vm1, %v793_v45, %v794_v33 }
  0x3f   : > { %551 = vmatpush.bf16.msra.mxu2 %v1428_v48  ;;  %v895_v48 = vsel %vm888_vm2, %v891_v43, %v894_v46 }
  0x40   : > { %664 = vmatpush.bf16.msra.mxu3 %v1436_v49  ;;  %363 = vmatmul.bf16.vlgmr.msra.gmra.mxu0 %v1659_v26  ;;  %v896_v26 = vshrl.u32 %v1742_v2, 16  ;;  %v899_v49 = vrot.slane %v490_v8, 2 }
  0x41   : > { %753 = vmatpush.bf16.msrb.mxu0 %v1451_v55  ;;  %442 = vmatmul.bf16.vlgmr.msra.gmra.mxu1 %v1662_v27  ;;  %v700_v27 = vsel %vm697_vm1, %v698_v41, %v699_v42 }
  0x42   : > { %552 = vmatmul.bf16.vlgmr.msra.gmra.mxu2 %v485_v58  ;;  %848 = vmatpush.bf16.msrb.mxu1 %v1459_v60 }
  0x43   : > { %952 = vmatpush.bf16.msrb.mxu2 %v1467_v54  ;;  %665 = vmatmul.bf16.vlgmr.msra.gmra.mxu3 %v598_v59 }
  0x44   : > { %1479 = vmatpush.bf16.msrb.mxu3 %v1451_v55 }
  0x45   : > { %754 = vmatpush.bf16.msrb.mxu0 %v1450_v0 }
  0x46   : > { %849 = vmatpush.bf16.msrb.mxu1 %v1458_v1 }
  0x47   : > { %953 = vmatpush.bf16.msrb.mxu2 %v1466_v63 }
  0x48   : > { %1480 = vmatpush.bf16.msrb.mxu3 %v1450_v0 }
  0x49   : > { %755 = vmatpush.bf16.msrb.mxu0 %v1449_v5 }
  0x4a   : > { %850 = vmatpush.bf16.msrb.mxu1 %v1457_v6 }
  0x4b   : > { %954 = vmatpush.bf16.msrb.mxu2 %v1465_v4 }
  0x4c   : > { %1481 = vmatpush.bf16.msrb.mxu3 %v1449_v5 }
  0x4d   : > { %756 = vmatpush.bf16.msrb.mxu0 %v1448_v12 }
  0x4e   : > { %851 = vmatpush.bf16.msrb.mxu1 %v1456_v13 }
  0x4f   : > { %955 = vmatpush.bf16.msrb.mxu2 %v1464_v11 }
  0x50   : > { %1482 = vmatpush.bf16.msrb.mxu3 %v1448_v12  ;;  %368 = vmatmul.bf16.gmra.mxu0 %v1681_v34  ;;  %v898_v34 = vrot.slane %v896_v26, 1 }
  0x51   : > { %757 = vmatpush.bf16.msrb.mxu0 %v1447_v19  ;;  %447 = vmatmul.bf16.gmra.mxu1 %v1677_v32  ;;  %v702_v32 = vsel %vm697_vm1, %v699_v42, %v701_v38 }
  0x52   : > { %557 = vmatmul.bf16.gmra.mxu2 %v493_v20  ;;  %852 = vmatpush.bf16.msrb.mxu1 %v1455_v22  ;;  %v900_v51 = vor.u32 %v899_v49, %v898_v34 }
  0x53   : > { %956 = vmatpush.bf16.msrb.mxu2 %v1463_v18  ;;  %670 = vmatmul.bf16.gmra.mxu3 %v606_v21  ;;  %v1514_v21 = vld [vmem:[%s1853_s2] ss:$0 sm:$0xff] }
  0x54   : > { %1483 = vmatpush.bf16.msrb.mxu3 %v1447_v19  ;;  %v901_v53 = vsel %vm888_vm2, %v894_v46, %v900_v51 }
  0x55   : > { %758 = vmatpush.bf16.msrb.mxu0 %v1446_v24 }
  0x56   : > { %853 = vmatpush.bf16.msrb.mxu1 %v1454_v25 }
  0x57   : > { %957 = vmatpush.bf16.msrb.mxu2 %v1462_v23 }
  0x58   : > { %1484 = vmatpush.bf16.msrb.mxu3 %v1446_v24 }
  0x59   : > { %759 = vmatpush.bf16.msrb.mxu0 %v1445_v29 }
  0x5a   : > { %854 = vmatpush.bf16.msrb.mxu1 %v1453_v30 }
  0x5b   : > { %958 = vmatpush.bf16.msrb.mxu2 %v1461_v28 }
  0x5c   : > { %1485 = vmatpush.bf16.msrb.mxu3 %v1445_v29 }
  0x5d   : > { %760 = vmatpush.bf16.msrb.mxu0 %v1444_v35 }
  0x5e   : > { %855 = vmatpush.bf16.msrb.mxu1 %v1452_v44 }
  0x5f   : > { %959 = vmatpush.bf16.msrb.mxu2 %v1460_v31 }
  0x60   : > { %1486 = vmatpush.bf16.msrb.mxu3 %v1444_v35  ;;  %761 = vmatmul.bf16.vlgmr.msrb.gmra.mxu0 %v700_v27 }
  0x61   : > { %856 = vmatmul.bf16.vlgmr.msrb.gmra.mxu1 %v795_v47 }
  0x62   : > { %960 = vmatmul.bf16.vlgmr.msrb.gmra.mxu2 %v895_v48 }
  0x63   : > { %766 = vmatmul.bf16.vlgmr.msrb.gmra.mxu3 %v702_v32 }
  0x71   : > { %861 = vmatmul.bf16.gmra.mxu1 %v797_v52 }
  0x72   : > { %965 = vmatmul.bf16.gmra.mxu2 %v901_v53 }
  0xbd   : > { %v364_v54 = vpop.f32.mrf.mxu0 }
  0xbe   : > { %v443_v55 = vpop.f32.mrf.mxu1 }
  0xbf   : > { %v444_v4 = vadd.f32 %v443_v55, %v364_v54 }
  0xc5   : > { %v553_v56 = vpop.f32.mrf.mxu2  ;;  %v366_v58 = vpop.f32.mrf.mxu0 }
  0xc6   : > { %v666_v57 = vpop.f32.mrf.mxu3  ;;  %v445_v59 = vpop.f32.mrf.mxu1  ;;  %v563_v7 = vadd.f32 %v553_v56, %v444_v4 }
  0xc7   : > { %v446_v9 = vadd.f32 %v445_v59, %v366_v58 }
  0xc8   : > { %v676_v10 = vadd.f32 %v666_v57, %v563_v7 }
  0xcd   : > { %v555_v60 = vpop.f32.mrf.mxu2  ;;  %v369_v61 = vpop.f32.mrf.mxu0 }
  0xce   : > { %v448_v62 = vpop.f32.mrf.mxu1  ;;  %v668_v63 = vpop.f32.mrf.mxu3  ;;  %v564_v11 = vadd.f32 %v555_v60, %v446_v9 }
  0xcf   : > { %v449_v22 = vadd.f32 %v448_v62, %v369_v61 }
  0xd0   : > { %v677_v16 = vadd.f32 %v668_v63, %v564_v11 }
  0xd5   : > { %v558_v0 = vpop.f32.mrf.mxu2  ;;  %v371_v1 = vpop.f32.mrf.mxu0 }
  0xd6   : > { %v450_v2 = vpop.f32.mrf.mxu1  ;;  %v671_v3 = vpop.f32.mrf.mxu3  ;;  %v565_v31 = vadd.f32 %v558_v0, %v449_v22 }
  0xd7   : > { %v451_v36 = vadd.f32 %v450_v2, %v371_v1 }
  0xd8   : > { %v678_v40 = vadd.f32 %v671_v3, %v565_v31 }
  0xdd   : > { %v560_v5 = vpop.f32.mrf.mxu2  ;;  %v762_v6 = vpop.f32.mrf.mxu0 }
  0xde   : > { %v857_v8 = vpop.f32.mrf.mxu1  ;;  %v673_v12 = vpop.f32.mrf.mxu3  ;;  %v772_v13 = vadd.f32 %v762_v6, %v676_v10  ;;  %v566_v41 = vadd.f32 %v560_v5, %v451_v36 }
  0xe0   : > { %v867_v18 = vadd.f32 %v857_v8, %v772_v13  ;;  %v679_v33 = vadd.f32 %v673_v12, %v566_v41 }
  0xe5   : > { %v961_v14 = vpop.f32.mrf.mxu2  ;;  %v764_v15 = vpop.f32.mrf.mxu0 }
  0xe6   : > { %v859_v17 = vpop.f32.mrf.mxu1  ;;  %v773_v19 = vadd.f32 %v764_v15, %v677_v16  ;;  %v971_v20 = vadd.f32 %v961_v14, %v867_v18  ;;  %v767_v24 = vpop.f32.mrf.mxu3 }
  0xe7   : > { %v774_v38 = vadd.f32 %v767_v24, %v678_v40 }
  0xe8   : > { %v868_v23 = vadd.f32 %v859_v17, %v773_v19  ;;  %v979_v28 = vadd.f32 %v1514_v21, %v971_v20 }
  0xea   : > { %v983_v37 = vmax.f32 %v979_v28, 0.0 }
  0xed   : > { %v963_v25 = vpop.f32.mrf.mxu2 }
  0xee   : > { %v972_v29 = vadd.f32 %v963_v25, %v868_v23  ;;  %v862_v30 = vpop.f32.mrf.mxu1  ;;  %v769_v45 = vpop.f32.mrf.mxu3 }
  0xef   : > { %v869_v43 = vadd.f32 %v862_v30, %v774_v38  ;;  %v775_v27 = vadd.f32 %v769_v45, %v679_v33 }
  0xf0   : > { %v980_v35 = vadd.f32 %v1514_v21, %v972_v29 }
  0xf2   : > { %v984_v39 = vmax.f32 %v980_v35, 0.0 }
  0xf4   : > { %v1471_v42 = vpack.c.bf16 %v984_v39, %v983_v37 }
  0xf5   : > { %v966_v44 = vpop.f32.mrf.mxu2 }
  0xf6   : > { %1472 = vst [vmem:[%s250_s10] sm:$0xff] %v1471_v42   ;;  %v864_v46 = vpop.f32.mrf.mxu1  ;;  %v973_v32 = vadd.f32 %v966_v44, %v869_v43 }
  0xf7   : > { %v870_v47 = vadd.f32 %v864_v46, %v775_v27 }
  0xf8   : > { %v981_v26 = vadd.f32 %v1514_v21, %v973_v32 }
  0xfa   : > { %v985_v50 = vmax.f32 %v981_v26, 0.0 }
  0xfd   : > { %v968_v48 = vpop.f32.mrf.mxu2 }
  0xfe   : > { %v974_v34 = vadd.f32 %v968_v48, %v870_v47 }
 0x100   : > { %v982_v49 = vadd.f32 %v1514_v21, %v974_v34 }
 0x102   : > { %v986_v51 = vmax.f32 %v982_v49, 0.0 }
 0x104   : > { %v1476_v52 = vpack.c.bf16 %v986_v51, %v985_v50 }
 0x106   : > { %1478 = vst [vmem:[%s250_s10 + $0x8] sm:$0xff] %v1476_v52  }
 0x107 PF: > { %p10_p9 = scmp.ge.s32.totalorder %s1576_s16, 4   ;;  %s1855_s12 = smov %s1533_s13 }
 0x108   : > { %s1856_s13 = smov %s1585_s19  ;;  %s1857_s14 = smov %s1576_s16 }
 0x109   :  { %12 = sbr.rel (!%p10_p9) target bundleno = 2 (0x2), region = 115 }

// kernel: eeg_encoder_forward.16
= control target key start
LH: loop header
LB: loop body
LE: loop exit
PB: predicated region body
PF: predicated region fallthrough
CT: control target
= control target key end

     0   :  { %vm67_vm0 = vcmask 523264   ;;  %vm89_vm1 = vcmask 261120   ;;  %v195_v16 = vmov 32.0   ;;  %s273_s1 = inlined_call_operand.vmem [shape: bf16[64,32], index: 1, kind: input, shape index: {}]   ;;  %s274_s2 = inlined_call_operand.vmem [shape: f32[1,32], index: 2, kind: input, shape index: {}]   ;;  %s275_s0 = inlined_call_operand.vmem [shape: bf16[16,64], index: 0, kind: input, shape index: {}]   ;;  %s276_s3 = inlined_call_operand.vmem [shape: f32[16,32], index: 3, kind: input, shape index: {}]   ;;  %s277_s4 = inlined_call_operand.vmem [shape: f32[1,32], index: 4, kind: input, shape index: {}]   ;;  %s278_s5 = inlined_call_operand.vmem [shape: f32[1,32], index: 5, kind: input, shape index: {}]   ;;  %s279_s6 = inlined_call_operand.vmem [shape: f32[16,32], index: 6, kind: output, shape index: {}]  }
   0x1   :  { %v184_v0 = vld [vmem:[%s273_s1 + $0x18] sm:$0xff]  ;;  %v183_v1 = vld [vmem:[%s273_s1 + $0x10] sm:$0xff]  ;;  %v182_v2 = vld [vmem:[%s273_s1 + $0x8] sm:$0xff]  ;;  %189 = vrcp.f32 %v195_v16 }
   0x2   :  { %75 = vmatpush.bf16.msra.mxu0 %v184_v0  ;;  %v181_v3 = vld [vmem:[%s273_s1] sm:$0xff]  ;;  %v86_v12 = vld [vmem:[%s276_s3 + $0x8] sm:$0xff] }
   0x3   :  { %v180_v4 = vld [vmem:[%s275_s0] sm:$0xff] }
   0x4   :  { %v186_v5 = vld [vmem:[%s274_s2] ss:$0 sm:$0xff] }
   0x5   :  { %v85_v7 = vld [vmem:[%s276_s3] sm:$0xff] }
   0x6   :  { %76 = vmatpush.bf16.msra.mxu0 %v183_v1  ;;  %v187_v47 = vld [vmem:[%s277_s4] ss:$0 sm:$0xff] }
   0x7   :  { %v190_v17 = vpop.eup %189  ;;  %v188_v50 = vld [vmem:[%s278_s5] ss:$0 sm:$0xff] }
   0x8   :  { %v97_v18 = vmul.f32 32.0, %v190_v17  ;;  %vm101_vm2 = vweird.f32 %v190_v17 }
   0xa   :  { %77 = vmatpush.bf16.msra.mxu0 %v182_v2  ;;  %v98_v19 = vsub.f32 1.0, %v97_v18 }
   0xc   :  { %v99_v20 = vmul.f32 %v190_v17, %v98_v19 }
   0xe   :  { %78 = vmatpush.bf16.msra.mxu0 %v181_v3  ;;  %v100_v21 = vadd.f32 %v190_v17, %v99_v20 }
  0x10   :  { %v102_v22 = vsel %vm101_vm2, %v190_v17, %v100_v21 }
  0x11   :  { %179 = vmatmul.msk.bf16.vlgmr.msra.gmra.mxu0 %vm67_vm0, %v180_v4 }
  0x8e   :  { %v80_v6 = vpop.f32.mrf.mxu0 }
  0x8f   :  { %v81_v8 = vadd.f32 %v186_v5, %v80_v6 }
  0x91   :  { %v87_v9 = vadd.f32 %v85_v7, %v81_v8 }
  0x93   :  { %v90_v10 = vsel %vm89_vm1, %v87_v9, 0.0 }
  0x94   :  { %91 = vadd.xlane.f32.xlu0 %v90_v10 }
  0x96   :  { %v82_v11 = vpop.f32.mrf.mxu0 }
  0x97   :  { %v83_v13 = vadd.f32 %v186_v5, %v82_v11 }
  0x99   :  { %v88_v14 = vadd.f32 %v86_v12, %v83_v13 }
  0x9b   :  { %v93_v15 = vsel %vm89_vm1, %v88_v14, 0.0 }
  0x9c   :  { %94 = vadd.xlane.f32.xlu0 %v93_v15 }
 0x107   :  { %v92_v23 = vpop.xlane.xlu0 %91 }
 0x108   :  { %v103_v24 = vmul.f32 %v102_v22, %v92_v23 }
 0x10a   :  { %v105_v25 = vsub.f32 %v87_v9, %v103_v24 }
 0x10c   :  { %v107_v26 = vmul.f32 %v105_v25, %v105_v25 }
 0x10e   :  { %v109_v27 = vsel %vm89_vm1, %v107_v26, 0.0 }
 0x10f   :  { %110 = vadd.xlane.f32.xlu1 %v109_v27  ;;  %v95_v28 = vpop.xlane.xlu0 %94 }
 0x110   :  { %v104_v29 = vmul.f32 %v102_v22, %v95_v28 }
 0x112   :  { %v106_v30 = vsub.f32 %v88_v14, %v104_v29 }
 0x114   :  { %v108_v31 = vmul.f32 %v106_v30, %v106_v30 }
 0x116   :  { %v112_v32 = vsel %vm89_vm1, %v108_v31, 0.0 }
 0x117   :  { %113 = vadd.xlane.f32.xlu1 %v112_v32 }
 0x182   :  { %v111_v33 = vpop.xlane.xlu1 %110 }
 0x183   :  { %v115_v34 = vmul.f32 %v111_v33, %v102_v22 }
 0x185   :  { %v117_v35 = vadd.f32 1e-05, %v115_v34 }
 0x187   :  { %191 = vrsqrt.f32 %v117_v35  ;;  %vm125_vm4 = vweird.f32 %v117_v35 }
 0x18a   :  { %v114_v36 = vpop.xlane.xlu1 %113 }
 0x18b   :  { %v116_v37 = vmul.f32 %v114_v36, %v102_v22 }
 0x18d   :  { %v192_v38 = vpop.eup %191  ;;  %v118_v39 = vadd.f32 1e-05, %v116_v37 }
 0x18e   :  { %v120_v40 = vmul.f32 %v192_v38, %v117_v35  ;;  %vm126_vm3 = vweird.f32 %v192_v38 }
 0x18f   :  { %193 = vrsqrt.f32 %v118_v39  ;;  %vm127_vm5 = vmor %vm125_vm4, %vm126_vm3  ;;  %vm135_vm7 = vweird.f32 %v118_v39 }
 0x190   :  { %v121_v41 = vmul.f32 %v192_v38, %v120_v40 }
 0x192   :  { %v122_v42 = vmul.f32 0.5, %v121_v41 }
 0x194   :  { %v123_v43 = vsub.f32 1.5, %v122_v42 }
 0x195   :  { %v194_v44 = vpop.eup %193 }
 0x196   :  { %v124_v45 = vmul.f32 %v192_v38, %v123_v43  ;;  %v130_v46 = vmul.f32 %v194_v44, %v118_v39  ;;  %vm136_vm6 = vweird.f32 %v194_v44 }
 0x197   :  { %vm137_vm8 = vmor %vm135_vm7, %vm136_vm6 }
 0x198   :  { %v128_v48 = vsel %vm127_vm5, %v192_v38, %v124_v45  ;;  %v131_v49 = vmul.f32 %v194_v44, %v130_v46 }
 0x199   :  { %v139_v51 = vmul.f32 %v128_v48, %v105_v25 }
 0x19a   :  { %v132_v52 = vmul.f32 0.5, %v131_v49 }
 0x19b   :  { %v145_v53 = vmul.f32 %v187_v47, %v139_v51 }
 0x19c   :  { %v133_v54 = vsub.f32 1.5, %v132_v52 }
 0x19d   :  { %v151_v55 = vadd.f32 %v188_v50, %v145_v53 }
 0x19e   :  { %v134_v56 = vmul.f32 %v194_v44, %v133_v54 }
 0x19f   :  { %153 = vst.msk [vmem:[%s279_s6] sm:$0xff] %vm89_vm1, %v151_v55 }
 0x1a0   :  { %v138_v57 = vsel %vm137_vm8, %v194_v44, %v134_v56 }
 0x1a1   :  { %v140_v58 = vmul.f32 %v138_v57, %v106_v30 }
 0x1a3   :  { %v146_v59 = vmul.f32 %v187_v47, %v140_v58 }
 0x1a5   :  { %v152_v60 = vadd.f32 %v188_v50, %v146_v59 }
 0x1a7   :  { %154 = vst.msk [vmem:[%s279_s6 + $0x8] sm:$0xff] %vm89_vm1, %v152_v60 }

// kernel: eeg_encoder_forward.14
= control target key start
LH: loop header
LB: loop body
LE: loop exit
PB: predicated region body
PF: predicated region fallthrough
CT: control target
= control target key end

     0   :  { %s874_s24 = smov 0   ;;  %s988_s0 = inlined_call_operand.vmem [shape: f32[2,8,32], index: 0, kind: input, shape index: {}]   ;;  %s989_s1 = inlined_call_operand.vmem [shape: bf16[32,96], index: 1, kind: input, shape index: {}]   ;;  %s990_s2 = inlined_call_operand.vmem [shape: f32[1,96], index: 2, kind: input, shape index: {}]   ;;  %s991_s3 = inlined_call_operand.vmem [shape: bf16[4,8,32], index: 3, kind: input, shape index: {}]   ;;  %s992_s4 = inlined_call_operand.vmem [shape: f32[1,32], index: 4, kind: input, shape index: {}]   ;;  %s993_s5 = inlined_call_operand.vmem [shape: f32[1,32], index: 5, kind: input, shape index: {}]   ;;  %s994_s6 = inlined_call_operand.vmem [shape: f32[1,32], index: 6, kind: input, shape index: {}]   ;;  %s995_s7 = inlined_call_operand.vmem [shape: f32[2,8,32], index: 7, kind: output, shape index: {}]  }
   0x1 LB: > { %s735_s25 = sadd.s32 4294967295, %s820_s24   ;;  %p739_p0 = scmp.ge.s32.totalorder %s820_s24, 1  ;;  %s820_s24 = sphi %s874_s24, %s17_s24  }
   0x2   : > { %p236_p1 = scmp.lt.s32.totalorder %s820_s24, 3 }
   0x4   : > { %p237_p2 = pnand %p739_p0, %p236_p1 }
   0x5   : > { %p266_p3 = scmp.lt.s32.totalorder (!%p237_p2), %s735_s25, 1  ;;  %s822_s13 = smov (!%p237_p2), 96  }
   0x6   : > { %240 = sbr.rel (%p237_p2) target bundleno = 1748 (0x6d4), region = 48  ;;  %s823_s14 = smov (!%p237_p2), 120  }
   0x7   : > { %s824_s15 = smov (!%p237_p2), 104   ;;  %s825_s16 = smov (!%p237_p2), 72  }
   0x8   : > { %s826_s17 = smov (!%p237_p2), 48   ;;  %s827_s18 = smov (!%p237_p2), 80  }
   0x9   : > { %s828_s21 = smov (!%p237_p2), 88   ;;  %s829_s22 = smov (!%p237_p2), 40  }
   0xa   : > { %s830_s23 = smov (!%p237_p2), 112   ;;  %s831_s26 = smov (!%p237_p2), 56  }
   0xb   : > { %v769_v0 = vld [vmem:[%s989_s1 + $0x8] sm:$0xff]  ;;  %v768_v1 = vld [vmem:[%s989_s1] sm:$0xff]  ;;  %s997_s25 = smov (!%p266_p3, %s735_s25), 1  ;;  %vm297_vm0 = vcmask 261120   ;;  %vm322_vm1 = vcmask 64512   ;;  %vm359_vm2 = vcmask 1043456  }
   0xc   : > { %307 = vmatpush.bf16.msra.mxu0 %v769_v0  ;;  %s740_s30 = sshll.u32 %s997_s25, 3  ;;  %v790_v4 = vld [vmem:[%s990_s2] ss:$0 sm:$0xff]  ;;  %v755_v61 = vld [vmem:[%s991_s3 + $0x4] sm:$0xf]  ;;  %s832_s29 = smov 64  }
   0xd   : > { %s269_s10 = scalar_lea.vmem %s988_s0, %s740_s30  ;;  %v377_v20 = vld [vmem:[%s991_s3] sm:$0xf]  ;;  %v444_v62 = vsel %vm359_vm2, %v755_v61, 0  ;;  %s273_s20 = scalar_lea.vmem %s995_s7, %s740_s30 }
   0xe   : > { %v896_v2 = vld [vmem:[%s269_s10] sm:$0xff]  ;;  %v463_v23 = vsel %vm359_vm2, %v377_v20, 0 }
   0xf   : > { %v276_v3 = vpack.c.bf16 %v896_v2, %v896_v2 }
  0x10   : > { %308 = vmatpush.bf16.msra.mxu0 %v768_v1 }
  0x13   : > { %750 = vmatmul.msk.bf16.vlgmr.msra.gmra.mxu0 %vm297_vm0, %v276_v3 }
  0x14   : > { %453 = vmatpush.bf16.msrb.mxu0 %v444_v62 }
  0x90   : > { %v310_v5 = vpop.f32.mrf.mxu0 }
  0x91   : > { %v311_v6 = vadd.f32 %v790_v4, %v310_v5 }
  0x93   : > { %v314_v7 = vmul.f32 0.35355338, %v311_v6  ;;  %v316_v8 = vpack.c.bf16 %v311_v6, %v311_v6 }
  0x95   : > { %v318_v9 = vunpack.c.l.b16 %v316_v8  ;;  %v315_v10 = vpack.c.bf16 %v314_v7, %v314_v7 }
  0x97   : > { %v904_v11 = vpack.c.b16 %v318_v9, %v318_v9  ;;  %v379_v13 = vunpack.c.l.b16 %v315_v10 }
  0x98   : > { %v312_v12 = vpop.f32.mrf.mxu0 }
  0x99   : > { %383 = vrot.lane.b32.xlu2 %v904_v11, %s822_s13  ;;  %320 = vrot.lane.b32.xlu0 %v904_v11, %s823_s14  ;;  %v908_v14 = vpack.c.b16 %v379_v13, %v379_v13 }
  0xa1   : > { %381 = vrot.lane.b32.xlu2 %v908_v14, %s824_s15 }
  0xa9   : > { %480 = vrot.lane.b32.xlu2 %v904_v11, %s825_s16 }
  0xb1   : > { %559 = vrot.lane.b32.xlu2 %v904_v11, %s826_s17 }
  0xb9   : > { %478 = vrot.lane.b32.xlu2 %v908_v14, %s827_s18 }
  0xf3   : > { %v384_v15 = vpop.permute.xlu2 %383 }
  0xf4   : > { %v389_v16 = vsel %vm322_vm1, %v384_v15, 0 }
  0xf5   : > { %398 = vmatpush.bf16.xpose.msra.mxu3 %v389_v16 }
  0xfb   : > { %v382_v17 = vpop.permute.xlu2 %381 }
  0xfc   : > { %753 = vmatmul.msk.bf16.vlgmr.msra.gmra.mxu3 %vm322_vm1, %v382_v17 }
 0x103   : > { %v481_v18 = vpop.permute.xlu2 %480 }
 0x104   : > { %v486_v19 = vsel %vm322_vm1, %v481_v18, 0 }
 0x105   : > { %495 = vmatpush.bf16.xpose.msrb.mxu3 %v486_v19 }
 0x10b   : > { %v321_v21 = vpop.permute.xlu0 %320  ;;  %v560_v22 = vpop.permute.xlu2 %559 }
 0x10c   : > { %v327_v24 = vsel %vm322_vm1, %v321_v21, 0  ;;  %v565_v26 = vsel %vm322_vm1, %v560_v22, 0 }
 0x10d   : > { %336 = vmatpush.bf16.xpose.msra.mxu1 %v327_v24 }
 0x113   : > { %v479_v25 = vpop.permute.xlu2 %478 }
 0x114   : > { %751 = vmatmul.msk.bf16.vlgmr.msra.gmra.mxu1 %vm322_vm1, %v315_v10  ;;  %758 = vmatmul.msk.bf16.vlgmr.msrb.gmra.mxu3 %vm322_vm1, %v479_v25 }
 0x115   : > { %472 = vmatpush.bf16.msrb.mxu1 %v463_v23 }
 0x119   : > { %574 = vmatpush.bf16.xpose.msra.mxu1 %v565_v26 }
 0x17f   : > { %v400_v27 = vpop.f32.mrf.mxu3 }
 0x180   : > { %v404_v28 = vsel %vm322_vm1, %v400_v27, -inf }
 0x181   : > { %405 = vmax.xlane.f32.xlu2 %v404_v28  ;;  %v764_v28 = vld [vmem:[%s991_s3 + $0xc] sm:$0xf] }
 0x187   : > { %v402_v29 = vpop.f32.mrf.mxu3 }
 0x191   : > { %v338_v30 = vpop.f32.mrf.mxu1 }
 0x192   : > { %v342_v31 = vsel %vm322_vm1, %v338_v30, -inf }
 0x193   : > { %343 = vmax.xlane.f32.xlu0 %v342_v31 }
 0x197   : > { %v927_v32 = vpop.f32.mrf.mxu3 }
 0x198   : > { %v501_v34 = vsel %vm322_vm1, %v927_v32, -inf }
 0x199   : > { %v340_v33 = vpop.f32.mrf.mxu1 }
 0x19a   : > { %v620_v33 = vsel %vm359_vm2, %v764_v28, 0 }
 0x19b   : > { %502 = vmax.xlane.f32.xlu0 %v501_v34 }
 0x19f   : > { %v499_v35 = vpop.f32.mrf.mxu3 }
 0x1f4   : > { %v406_v36 = vpop.xlane.xlu2 %405 }
 0x1f5   : > { %v407_v37 = vsub.f32 %v400_v27, %v406_v36  ;;  %v760_v36 = vld [vmem:[%s991_s3 + $0x8] sm:$0xf] }
 0x1f7   : > { %v408_v38 = vmul.f32 1.442695, %v407_v37  ;;  %v541_v37 = vsel %vm359_vm2, %v760_v36, 0 }
 0x1f8   : > { %550 = vmatpush.bf16.msra.mxu0 %v541_v37 }
 0x1f9   : > { %794 = vpow2.f32 %v408_v38 }
 0x1ff   : > { %v795_v39 = vpop.eup %794 }
 0x200   : > { %v410_v40 = vsel %vm322_vm1, %v795_v39, 0.0 }
 0x201   : > { %411 = vadd.xlane.f32.xlu0 %v410_v40 }
 0x206   : > { %v344_v41 = vpop.xlane.xlu0 %343 }
 0x207   : > { %v345_v42 = vsub.f32 %v338_v30, %v344_v41 }
 0x209   : > { %v346_v43 = vmul.f32 1.442695, %v345_v42 }
 0x20b   : > { %796 = vpow2.f32 %v346_v43 }
 0x20e   : > { %v503_v46 = vpop.xlane.xlu0 %502 }
 0x20f   : > { %v504_v8 = vsub.f32 %v927_v32, %v503_v46 }
 0x211   : > { %v797_v44 = vpop.eup %796  ;;  %v505_v10 = vmul.f32 1.442695, %v504_v8 }
 0x212   : > { %v348_v45 = vsel %vm322_vm1, %v797_v44, 0.0 }
 0x213   : > { %349 = vadd.xlane.f32.xlu1 %v348_v45 }
 0x215   : > { %416 = vrot.lane.b32.xlu0 %v904_v11, %s828_s21 }
 0x21d   : > { %592 = vrot.lane.b32.xlu0 %v904_v11, %s829_s22 }
 0x22c   : > { %354 = vrot.lane.b32.xlu1 %v904_v11, %s830_s23 }
 0x234   : > { %557 = vrot.lane.b32.xlu1 %v908_v14, %s831_s26 }
 0x274   : > { %v412_v47 = vpop.xlane.xlu0 %411 }
 0x286   : > { %v350_v51 = vpop.xlane.xlu1 %349 }
 0x287   : > { %v417_v48 = vpop.permute.xlu0 %416  ;;  %798 = vrcp.f32 %v350_v51 }
 0x288   : > { %v422_v56 = vsel %vm359_vm2, %v417_v48, 0  ;;  %800 = vrcp.f32 %v412_v47  ;;  %v791_v48 = vld [vmem:[%s992_s4] ss:$0 sm:$0xff] }
 0x289   : > { %802 = vpow2.f32 %v505_v10 }
 0x28d   : > { %v799_v52 = vpop.eup %798 }
 0x28e   : > { %v352_v53 = vmul.f32 %v799_v52, %v797_v44  ;;  %v801_v58 = vpop.eup %800 }
 0x28f   : > { %v593_v49 = vpop.permute.xlu0 %592  ;;  %v414_v59 = vmul.f32 %v801_v58, %v795_v39  ;;  %v803_v16 = vpop.eup %802 }
 0x290   : > { %v598_v50 = vsel %vm359_vm2, %v593_v49, 0  ;;  %v353_v57 = vpack.c.bf16 %v352_v53, %v352_v53  ;;  %v507_v19 = vsel %vm322_vm1, %v803_v16, 0.0 }
 0x291   : > { %607 = vmatpush.bf16.msra.mxu3 %v598_v50  ;;  %v415_v60 = vpack.c.bf16 %v414_v59, %v414_v59 }
 0x29e   : > { %v355_v54 = vpop.permute.xlu1 %354 }
 0x29f   : > { %v361_v55 = vsel %vm359_vm2, %v355_v54, 0  ;;  %v833_v54 = vmov 32.0  }
 0x2a0   : > { %370 = vmatpush.bf16.msra.mxu2 %v361_v55 }
 0x2a3   : > { %752 = vmatmul.msk.bf16.vlgmr.msra.gmra.mxu2 %vm322_vm1, %v353_v57 }
 0x2a4   : > { %431 = vmatpush.bf16.msrb.mxu2 %v422_v56 }
 0x2a6   : > { %v558_v5 = vpop.permute.xlu1 %557 }
 0x2b3   : > { %754 = vmatmul.msk.bf16.vlgmr.msrb.gmra.mxu2 %vm322_vm1, %v415_v60 }
 0x326   : > { %v372_v63 = vpop.f32.mrf.mxu2 }
 0x327   : > { %v376_v0 = vpack.c.bf16 %v372_v63, %v372_v63 }
 0x329   : > { %757 = vmatmul.msk.bf16.vlgmr.msrb.gmra.mxu1 %vm322_vm1, %v376_v0 }
 0x32e   : > { %v374_v1 = vpop.f32.mrf.mxu2 }
 0x336   : > { %v433_v3 = vpop.f32.mrf.mxu2 }
 0x337   : > { %v437_v4 = vpack.c.bf16 %v433_v3, %v433_v3 }
 0x339   : > { %756 = vmatmul.msk.bf16.vlgmr.msrb.gmra.mxu0 %vm322_vm1, %v437_v4  ;;  %762 = vmatmul.msk.bf16.vlgmr.msra.gmra.mxu1 %vm322_vm1, %v558_v5 }
 0x33e   : > { %v435_v6 = vpop.f32.mrf.mxu2 }
 0x3a6   : > { %v474_v7 = vpop.f32.mrf.mxu1 }
 0x3ae   : > { %v476_v9 = vpop.f32.mrf.mxu1 }
 0x3b6   : > { %v455_v12 = vpop.f32.mrf.mxu0  ;;  %v576_v13 = vpop.f32.mrf.mxu1 }
 0x3b7   : > { %v475_v14 = vadd.f32 %v474_v7, %v455_v12  ;;  %v580_v15 = vsel %vm322_vm1, %v576_v13, -inf  ;;  %v792_v12 = vld [vmem:[%s993_s5] ss:$0 sm:$0xff] }
 0x3b8   : > { %581 = vmax.xlane.f32.xlu1 %v580_v15 }
 0x3be   : > { %v457_v17 = vpop.f32.mrf.mxu0  ;;  %v578_v18 = vpop.f32.mrf.mxu1 }
 0x3c0   : > { %508 = vadd.xlane.f32.xlu1 %v507_v19 }
 0x42b   : > { %v582_v20 = vpop.xlane.xlu1 %581 }
 0x42c   : > { %v583_v21 = vsub.f32 %v576_v13, %v582_v20 }
 0x42e   : > { %v584_v22 = vmul.f32 1.442695, %v583_v21 }
 0x430   : > { %804 = vpow2.f32 %v584_v22 }
 0x433   : > { %v509_v25 = vpop.xlane.xlu1 %508 }
 0x434   : > { %806 = vrcp.f32 %v509_v25 }
 0x436   : > { %v805_v23 = vpop.eup %804 }
 0x437   : > { %v586_v24 = vsel %vm322_vm1, %v805_v23, 0.0 }
 0x438   : > { %587 = vadd.xlane.f32.xlu2 %v586_v24 }
 0x43a   : > { %v807_v27 = vpop.eup %806 }
 0x43b   : > { %v511_v30 = vmul.f32 %v807_v27, %v803_v16 }
 0x450   : > { %513 = vrot.lane.b32.xlu2 %v904_v11, %s832_s29  ;;  %v512_v11 = vpack.c.bf16 %v511_v30, %v511_v30 }
 0x4ab   : > { %v588_v26 = vpop.xlane.xlu2 %587 }
 0x4ac   : > { %808 = vrcp.f32 %v588_v26 }
 0x4ad   : > { %810 = vrcp.f32 %v833_v54 }
 0x4b2   : > { %v809_v29 = vpop.eup %808 }
 0x4b3   : > { %v590_v31 = vmul.f32 %v809_v29, %v805_v23  ;;  %v514_v32 = vpop.permute.xlu2 %513  ;;  %v811_v55 = vpop.eup %810 }
 0x4b4   : > { %v519_v34 = vsel %vm359_vm2, %v514_v32, 0  ;;  %v646_v56 = vmul.f32 32.0, %v811_v55  ;;  %vm650_vm3 = vweird.f32 %v811_v55 }
 0x4b5   : > { %v591_v35 = vpack.c.bf16 %v590_v31, %v590_v31  ;;  %528 = vmatpush.bf16.msra.mxu2 %v519_v34 }
 0x4b6   : > { %v647_v57 = vsub.f32 1.0, %v646_v56 }
 0x4b7   : > { %763 = vmatmul.msk.bf16.vlgmr.msra.gmra.mxu3 %vm322_vm1, %v591_v35 }
 0x4b8   : > { %759 = vmatmul.msk.bf16.vlgmr.msra.gmra.mxu2 %vm322_vm1, %v512_v11  ;;  %v648_v58 = vmul.f32 %v811_v55, %v647_v57 }
 0x4b9   : > { %629 = vmatpush.bf16.msrb.mxu2 %v620_v33 }
 0x4ba   : > { %v649_v59 = vadd.f32 %v811_v55, %v648_v58 }
 0x4bc   : > { %v651_v60 = vsel %vm650_vm3, %v811_v55, %v649_v59 }
 0x53a   : > { %v609_v38 = vpop.f32.mrf.mxu3 }
 0x53b   : > { %v613_v39 = vpack.c.bf16 %v609_v38, %v609_v38  ;;  %v530_v40 = vpop.f32.mrf.mxu2 }
 0x53c   : > { %v534_v41 = vpack.c.bf16 %v530_v40, %v530_v40 }
 0x53d   : > { %765 = vmatmul.msk.bf16.vlgmr.msrb.gmra.mxu2 %vm322_vm1, %v613_v39 }
 0x53e   : > { %761 = vmatmul.msk.bf16.vlgmr.msra.gmra.mxu0 %vm322_vm1, %v534_v41 }
 0x542   : > { %v611_v42 = vpop.f32.mrf.mxu3 }
 0x543   : > { %v532_v43 = vpop.f32.mrf.mxu2 }
 0x5bb   : > { %v552_v44 = vpop.f32.mrf.mxu0 }
 0x5bc   : > { %v556_v45 = vadd.f32 %v552_v44, %v475_v14  ;;  %v793_v14 = vld [vmem:[%s994_s6] ss:$0 sm:$0xff] }
 0x5c0   : > { %v631_v46 = vpop.f32.mrf.mxu2 }
 0x5c1   : > { %v635_v47 = vadd.f32 %v631_v46, %v556_v45 }
 0x5c3   : > { %v636_v49 = vadd.f32 %v635_v47, %v896_v2  ;;  %v554_v50 = vpop.f32.mrf.mxu0 }
 0x5c5   : > { %v641_v51 = vadd.f32 %v791_v48, %v636_v49 }
 0x5c7   : > { %v642_v52 = vsel %vm297_vm0, %v641_v51, 0.0 }
 0x5c8   : > { %v633_v53 = vpop.f32.mrf.mxu2  ;;  %643 = vadd.xlane.f32.xlu1 %v642_v52 }
 0x63b   : > { %v644_v61 = vpop.xlane.xlu1 %643 }
 0x63c   : > { %v652_v62 = vmul.f32 %v651_v60, %v644_v61 }
 0x63e   : > { %v653_v63 = vsub.f32 %v641_v51, %v652_v62 }
 0x640   : > { %v654_v0 = vmul.f32 %v653_v63, %v653_v63 }
 0x642   : > { %v655_v2 = vsel %vm297_vm0, %v654_v0, 0.0 }
 0x643   : > { %656 = vadd.xlane.f32.xlu0 %v655_v2 }
 0x6b6   : > { %v657_v1 = vpop.xlane.xlu0 %656 }
 0x6b7   : > { %v658_v3 = vmul.f32 %v657_v1, %v651_v60 }
 0x6b9   : > { %v659_v4 = vadd.f32 1e-05, %v658_v3 }
 0x6bb   : > { %812 = vrsqrt.f32 %v659_v4  ;;  %vm666_vm5 = vweird.f32 %v659_v4 }
 0x6c1   : > { %v813_v5 = vpop.eup %812 }
 0x6c2   : > { %v661_v6 = vmul.f32 %v813_v5, %v659_v4  ;;  %vm667_vm4 = vweird.f32 %v813_v5 }
 0x6c3   : > { %vm668_vm6 = vmor %vm666_vm5, %vm667_vm4 }
 0x6c4   : > { %v662_v7 = vmul.f32 %v813_v5, %v661_v6 }
 0x6c6   : > { %v663_v8 = vmul.f32 0.5, %v662_v7 }
 0x6c8   : > { %v664_v9 = vsub.f32 1.5, %v663_v8 }
 0x6ca   : > { %v665_v10 = vmul.f32 %v813_v5, %v664_v9 }
 0x6cc   : > { %v669_v13 = vsel %vm668_vm6, %v813_v5, %v665_v10 }
 0x6cd   : > { %v670_v15 = vmul.f32 %v669_v13, %v653_v63 }
 0x6cf   : > { %v675_v16 = vmul.f32 %v792_v12, %v670_v15 }
 0x6d1   : > { %v680_v17 = vadd.f32 %v793_v14, %v675_v16 }
 0x6d3   : > { %681 = vst.msk [vmem:[%s273_s20] sm:$0xff] %vm297_vm0, %v680_v17 }
 0x6d4 PF: > { %s17_s24 = sadd.s32 1, %s820_s24  }
 0x6d5   : > { %p14_p4 = scmp.ge.s32.totalorder %s17_s24, 4  }
 0x6d7   :  { %16 = sbr.rel (!%p14_p4) target bundleno = 1 (0x1), region = 81 }

// kernel: eeg_encoder_forward.15
= control target key start
LH: loop header
LB: loop body
LE: loop exit
PB: predicated region body
PF: predicated region fallthrough
CT: control target
= control target key end

     0   :  { %vm38_vm0 = vcmask 261120   ;;  %vm76_vm1 = vcmask 519168   ;;  %s140_s1 = inlined_call_operand.vmem [shape: bf16[32,64], index: 1, kind: input, shape index: {}]   ;;  %s141_s0 = inlined_call_operand.vmem [shape: f32[16,32], index: 0, kind: input, shape index: {}]   ;;  %s142_s2 = inlined_call_operand.vmem [shape: f32[1,64], index: 2, kind: input, shape index: {}]   ;;  %s143_s3 = inlined_call_operand.vmem [shape: bf16[16,64], index: 3, kind: output, shape index: {}]  }
   0x1   :  { %v93_v0 = vld [vmem:[%s140_s1 + $0x8] sm:$0xff]  ;;  %v92_v1 = vld [vmem:[%s140_s1] sm:$0xff] }
   0x2   :  { %48 = vmatpush.bf16.msra.mxu0 %v93_v0  ;;  %v15_v2 = vld [vmem:[%s141_s0] sm:$0xff]  ;;  %v16_v3 = vld [vmem:[%s141_s0 + $0x8] sm:$0xff] }
   0x3   :  { %v17_v4 = vpack.c.bf16 %v16_v3, %v15_v2  ;;  %v94_v5 = vld [vmem:[%s142_s2] ss:$0 sm:$0xff] }
   0x6   :  { %49 = vmatpush.bf16.msra.mxu0 %v92_v1 }
   0x9   :  { %91 = vmatmul.msk.bf16.vlgmr.msra.gmra.mxu0 %vm38_vm0, %v17_v4 }
  0x86   :  { %v51_v6 = vpop.f32.mrf.mxu0 }
  0x87   :  { %v52_v7 = vadd.f32 %v94_v5, %v51_v6 }
  0x89   :  { %v58_v8 = vmul.f32 0.044715, %v52_v7  ;;  %v56_v21 = vmul.f32 0.5, %v52_v7 }
  0x8b   :  { %v60_v9 = vmul.f32 %v58_v8, %v52_v7 }
  0x8d   :  { %v62_v10 = vmul.f32 %v60_v9, %v52_v7 }
  0x8e   :  { %v53_v11 = vpop.f32.mrf.mxu0 }
  0x8f   :  { %v64_v12 = vadd.f32 %v62_v10, %v52_v7  ;;  %v54_v13 = vadd.f32 %v94_v5, %v53_v11 }
  0x91   :  { %v66_v14 = vmul.f32 0.7978846, %v64_v12  ;;  %v59_v15 = vmul.f32 0.044715, %v54_v13  ;;  %v57_v26 = vmul.f32 0.5, %v54_v13 }
  0x93   :  { %95 = vtanh.f32 %v66_v14  ;;  %v61_v16 = vmul.f32 %v59_v15, %v54_v13 }
  0x95   :  { %v63_v17 = vmul.f32 %v61_v16, %v54_v13 }
  0x97   :  { %v65_v18 = vadd.f32 %v63_v17, %v54_v13 }
  0x99   :  { %v96_v19 = vpop.eup %95  ;;  %v67_v20 = vmul.f32 0.7978846, %v65_v18 }
  0x9a   :  { %v70_v22 = vadd.f32 1.0, %v96_v19 }
  0x9b   :  { %97 = vtanh.f32 %v67_v20 }
  0x9c   :  { %v72_v23 = vmul.f32 %v70_v22, %v56_v21 }
  0x9e   :  { %v74_v24 = vpack.c.bf16 %v72_v23, %v72_v23 }
  0xa0   :  { %77 = vst.msk [vmem:[%s143_s3] sm:$0xf] %vm76_vm1, %v74_v24 }
  0xa1   :  { %v98_v25 = vpop.eup %97 }
  0xa2   :  { %v71_v27 = vadd.f32 1.0, %v98_v25 }
  0xa4   :  { %v73_v28 = vmul.f32 %v71_v27, %v57_v26 }
  0xa6   :  { %v75_v29 = vpack.c.bf16 %v73_v28, %v73_v28 }
  0xa8   :  { %78 = vst.msk [vmem:[%s143_s3 + $0x4] sm:$0xf] %vm76_vm1, %v75_v29 }

// kernel: eeg_encoder_forward.19
= control target key start
LH: loop header
LB: loop body
LE: loop exit
PB: predicated region body
PF: predicated region fallthrough
CT: control target
= control target key end

     0   :  { %s415_s0 = inlined_call_operand.vmem [shape: bf16[16,64], index: 0, kind: input, shape index: {}]   ;;  %s416_s1 = inlined_call_operand.vmem [shape: bf16[64,32], index: 1, kind: input, shape index: {}]   ;;  %s417_s2 = inlined_call_operand.vmem [shape: f32[1,32], index: 2, kind: input, shape index: {}]   ;;  %s418_s3 = inlined_call_operand.vmem [shape: f32[16,32], index: 3, kind: input, shape index: {}]   ;;  %s419_s4 = inlined_call_operand.vmem [shape: f32[1,32], index: 4, kind: input, shape index: {}]   ;;  %s420_s5 = inlined_call_operand.vmem [shape: f32[1,32], index: 5, kind: input, shape index: {}]   ;;  %s421_s6 = inlined_call_operand.vmem [shape: f32[1,32], index: 6, kind: input, shape index: {}]   ;;  %s422_s7 = inlined_call_operand.vmem [shape: f32[1,32], index: 7, kind: input, shape index: {}]   ;;  %s423_s8 = inlined_call_operand.hbm [shape: f32[16,32], index: 8, kind: output, shape index: {}]  }
   0x1   :  { %v261_v0 = vld [vmem:[%s416_s1 + $0x18] sm:$0xff]  ;;  %v260_v1 = vld [vmem:[%s416_s1 + $0x10] sm:$0xff] }
   0x2   :  { %82 = vmatpush.bf16.msra.mxu0 %v261_v0 }
   0x3   :  { %13 = vsyncpa [#allocation3], 0  ;;  %v259_v2 = vld [vmem:[%s416_s1 + $0x8] sm:$0xff]  ;;  %v258_v3 = vld [vmem:[%s416_s1] sm:$0xff]  ;;  %vm74_vm0 = vcmask 523264   ;;  %vm96_vm1 = vcmask 261120  }
   0x4   :  { %v257_v4 = vld [vmem:[%s415_s0] sm:$0xff]  ;;  %v93_v12 = vld [vmem:[%s418_s3 + $0x8] sm:$0xff]  ;;  %v307_v16 = vmov 32.0   ;;  %s224_s26 = sshll.u32 %s423_s8, 4  ;;  %s310_s27 = smov 8   ;;  %s225_s26 = int_to_ptr.hbm [resolvable:$true] %s224_s26 }
   0x5   :  { %v266_v5 = vld [vmem:[%s417_s2] ss:$0 sm:$0xff]  ;;  %271 = vrcp.f32 %v307_v16 }
   0x6   :  { %83 = vmatpush.bf16.msra.mxu0 %v260_v1  ;;  %v92_v7 = vld [vmem:[%s418_s3] sm:$0xff] }
   0x7   :  { %v267_v47 = vld [vmem:[%s419_s4] ss:$0 sm:$0xff] }
   0x8   :  { %v268_v51 = vld [vmem:[%s420_s5] ss:$0 sm:$0xff] }
   0xa   :  { %84 = vmatpush.bf16.msra.mxu0 %v259_v2 }
   0xb   :  { %v272_v17 = vpop.eup %271 }
   0xc   :  { %v104_v18 = vmul.f32 32.0, %v272_v17  ;;  %vm108_vm2 = vweird.f32 %v272_v17 }
   0xe   :  { %85 = vmatpush.bf16.msra.mxu0 %v258_v3  ;;  %v105_v19 = vsub.f32 1.0, %v104_v18 }
  0x10   :  { %v106_v20 = vmul.f32 %v272_v17, %v105_v19 }
  0x11   :  { %256 = vmatmul.msk.bf16.vlgmr.msra.gmra.mxu0 %vm74_vm0, %v257_v4 }
  0x12   :  { %v107_v21 = vadd.f32 %v272_v17, %v106_v20 }
  0x14   :  { %v382_v22 = vsel %vm108_vm2, %v272_v17, %v107_v21 }
  0x8e   :  { %v87_v6 = vpop.f32.mrf.mxu0 }
  0x8f   :  { %v88_v8 = vadd.f32 %v266_v5, %v87_v6 }
  0x91   :  { %v94_v9 = vadd.f32 %v92_v7, %v88_v8 }
  0x93   :  { %v97_v10 = vsel %vm96_vm1, %v94_v9, 0.0 }
  0x94   :  { %98 = vadd.xlane.f32.xlu0 %v97_v10 }
  0x96   :  { %v89_v11 = vpop.f32.mrf.mxu0 }
  0x97   :  { %v90_v13 = vadd.f32 %v266_v5, %v89_v11 }
  0x99   :  { %v95_v14 = vadd.f32 %v93_v12, %v90_v13 }
  0x9b   :  { %v100_v15 = vsel %vm96_vm1, %v95_v14, 0.0 }
  0x9c   :  { %101 = vadd.xlane.f32.xlu0 %v100_v15 }
 0x107   :  { %v99_v23 = vpop.xlane.xlu0 %98 }
 0x108   :  { %v110_v24 = vmul.f32 %v382_v22, %v99_v23 }
 0x10a   :  { %v112_v25 = vsub.f32 %v94_v9, %v110_v24  ;;  %v269_v24 = vld [vmem:[%s421_s6] ss:$0 sm:$0xff]  ;;  %s308_s6 = smov [#allocation2]  }
 0x10b   :  { %s222_s23 = sshll.u32 %s308_s6, 4  ;;  %s223_s23 = int_to_ptr.vmem [resolvable:$true] %s222_s23 }
 0x10c   :  { %v114_v26 = vmul.f32 %v112_v25, %v112_v25 }
 0x10e   :  { %v116_v27 = vsel %vm96_vm1, %v114_v26, 0.0 }
 0x10f   :  { %117 = vadd.xlane.f32.xlu1 %v116_v27  ;;  %v102_v28 = vpop.xlane.xlu0 %101  ;;  %v270_v27 = vld [vmem:[%s422_s7] ss:$0 sm:$0xff]  ;;  %s309_s7 = smov 128  }
 0x110   :  { %v111_v29 = vmul.f32 %v382_v22, %v102_v28 }
 0x112   :  { %v113_v30 = vsub.f32 %v95_v14, %v111_v29 }
 0x114   :  { %v115_v31 = vmul.f32 %v113_v30, %v113_v30 }
 0x116   :  { %v119_v32 = vsel %vm96_vm1, %v115_v31, 0.0 }
 0x117   :  { %120 = vadd.xlane.f32.xlu1 %v119_v32 }
 0x182   :  { %v118_v33 = vpop.xlane.xlu1 %117 }
 0x183   :  { %v122_v34 = vmul.f32 %v118_v33, %v382_v22 }
 0x185   :  { %v124_v35 = vadd.f32 1e-05, %v122_v34 }
 0x187   :  { %273 = vrsqrt.f32 %v124_v35  ;;  %vm132_vm4 = vweird.f32 %v124_v35 }
 0x18a   :  { %v121_v36 = vpop.xlane.xlu1 %120 }
 0x18b   :  { %v123_v37 = vmul.f32 %v121_v36, %v382_v22 }
 0x18d   :  { %v274_v38 = vpop.eup %273  ;;  %v125_v39 = vadd.f32 1e-05, %v123_v37 }
 0x18e   :  { %v127_v40 = vmul.f32 %v274_v38, %v124_v35  ;;  %vm133_vm3 = vweird.f32 %v274_v38 }
 0x18f   :  { %275 = vrsqrt.f32 %v125_v39  ;;  %vm134_vm5 = vmor %vm132_vm4, %vm133_vm3  ;;  %vm142_vm7 = vweird.f32 %v125_v39 }
 0x190   :  { %v128_v41 = vmul.f32 %v274_v38, %v127_v40 }
 0x192   :  { %v129_v42 = vmul.f32 0.5, %v128_v41 }
 0x194   :  { %v130_v43 = vsub.f32 1.5, %v129_v42 }
 0x195   :  { %v276_v44 = vpop.eup %275 }
 0x196   :  { %v131_v45 = vmul.f32 %v274_v38, %v130_v43  ;;  %v137_v46 = vmul.f32 %v276_v44, %v125_v39  ;;  %vm143_vm6 = vweird.f32 %v276_v44 }
 0x197   :  { %vm144_vm8 = vmor %vm142_vm7, %vm143_vm6 }
 0x198   :  { %v138_v48 = vmul.f32 %v276_v44, %v137_v46  ;;  %v135_v49 = vsel %vm134_vm5, %v274_v38, %v131_v45 }
 0x199   :  { %v146_v50 = vmul.f32 %v135_v49, %v112_v25 }
 0x19a   :  { %v139_v52 = vmul.f32 0.5, %v138_v48 }
 0x19b   :  { %v152_v53 = vmul.f32 %v267_v47, %v146_v50 }
 0x19c   :  { %v140_v54 = vsub.f32 1.5, %v139_v52 }
 0x19d   :  { %v158_v55 = vadd.f32 %v268_v51, %v152_v53 }
 0x19e   :  { %v141_v56 = vmul.f32 %v276_v44, %v140_v54 }
 0x19f   :  { %v160_v57 = vsel %vm96_vm1, %v158_v55, 0.0 }
 0x1a0   :  { %161 = vadd.xlane.f32.xlu2 %v160_v57  ;;  %v145_v58 = vsel %vm144_vm8, %v276_v44, %v141_v56 }
 0x1a1   :  { %v147_v59 = vmul.f32 %v145_v58, %v113_v30 }
 0x1a3   :  { %v153_v60 = vmul.f32 %v267_v47, %v147_v59 }
 0x1a5   :  { %v159_v61 = vadd.f32 %v268_v51, %v153_v60 }
 0x1a7   :  { %v163_v62 = vsel %vm96_vm1, %v159_v61, 0.0 }
 0x1a8   :  { %164 = vadd.xlane.f32.xlu2 %v163_v62 }
 0x213   :  { %v162_v63 = vpop.xlane.xlu2 %161 }
 0x214   :  { %v166_v0 = vmul.f32 %v162_v63, %v382_v22 }
 0x216   :  { %v168_v1 = vsub.f32 %v158_v55, %v166_v0 }
 0x218   :  { %v170_v2 = vmul.f32 %v168_v1, %v168_v1 }
 0x21a   :  { %v172_v3 = vsel %vm96_vm1, %v170_v2, 0.0 }
 0x21b   :  { %173 = vadd.xlane.f32.xlu0 %v172_v3  ;;  %v165_v4 = vpop.xlane.xlu2 %164 }
 0x21c   :  { %v167_v5 = vmul.f32 %v165_v4, %v382_v22 }
 0x21e   :  { %v169_v6 = vsub.f32 %v159_v61, %v167_v5 }
 0x220   :  { %v171_v7 = vmul.f32 %v169_v6, %v169_v6 }
 0x222   :  { %v175_v8 = vsel %vm96_vm1, %v171_v7, 0.0 }
 0x223   :  { %176 = vadd.xlane.f32.xlu1 %v175_v8 }
 0x28e   :  { %v174_v9 = vpop.xlane.xlu0 %173 }
 0x28f   :  { %v178_v10 = vmul.f32 %v174_v9, %v382_v22 }
 0x291   :  { %v180_v11 = vadd.f32 1e-05, %v178_v10 }
 0x293   :  { %277 = vrsqrt.f32 %v180_v11  ;;  %vm188_vm10 = vweird.f32 %v180_v11 }
 0x296   :  { %v177_v12 = vpop.xlane.xlu1 %176 }
 0x297   :  { %v179_v13 = vmul.f32 %v177_v12, %v382_v22 }
 0x299   :  { %v278_v14 = vpop.eup %277  ;;  %v181_v15 = vadd.f32 1e-05, %v179_v13 }
 0x29a   :  { %v183_v16 = vmul.f32 %v278_v14, %v180_v11  ;;  %vm189_vm9 = vweird.f32 %v278_v14 }
 0x29b   :  { %279 = vrsqrt.f32 %v181_v15  ;;  %vm190_vm11 = vmor %vm188_vm10, %vm189_vm9  ;;  %vm198_vm13 = vweird.f32 %v181_v15 }
 0x29c   :  { %v184_v17 = vmul.f32 %v278_v14, %v183_v16 }
 0x29e   :  { %v185_v18 = vmul.f32 0.5, %v184_v17 }
 0x2a0   :  { %v186_v19 = vsub.f32 1.5, %v185_v18 }
 0x2a1   :  { %v280_v20 = vpop.eup %279 }
 0x2a2   :  { %v187_v21 = vmul.f32 %v278_v14, %v186_v19  ;;  %v193_v23 = vmul.f32 %v280_v20, %v181_v15  ;;  %vm199_vm12 = vweird.f32 %v280_v20 }
 0x2a3   :  { %vm200_vm14 = vmor %vm198_vm13, %vm199_vm12 }
 0x2a4   :  { %v191_v25 = vsel %vm190_vm11, %v278_v14, %v187_v21  ;;  %v194_v26 = vmul.f32 %v280_v20, %v193_v23 }
 0x2a5   :  { %v202_v22 = vmul.f32 %v191_v25, %v168_v1 }
 0x2a6   :  { %v195_v28 = vmul.f32 0.5, %v194_v26 }
 0x2a7   :  { %v208_v29 = vmul.f32 %v269_v24, %v202_v22 }
 0x2a8   :  { %v196_v30 = vsub.f32 1.5, %v195_v28 }
 0x2a9   :  { %v214_v31 = vadd.f32 %v270_v27, %v208_v29 }
 0x2aa   :  { %v197_v32 = vmul.f32 %v280_v20, %v196_v30 }
 0x2ab   :  { %216 = vst.msk [vmem:[#allocation2] sm:$0xff] %vm96_vm1, %v214_v31 }
 0x2ac   :  { %v201_v33 = vsel %vm200_vm14, %v280_v20, %v197_v32 }
 0x2ad   :  { %v203_v34 = vmul.f32 %v201_v33, %v169_v6 }
 0x2af   :  { %v209_v35 = vmul.f32 %v269_v24, %v203_v34 }
 0x2b1   :  { %v215_v36 = vadd.f32 %v270_v27, %v209_v35 }
 0x2b3   :  { %217 = vst.msk [vmem:[#allocation2 + $0x8] sm:$0xff] %vm96_vm1, %v215_v36 }
 0x2b4   :  { %230 = dma.vmem_to_hbm [thread:$0]  %s223_s23, 256, %s225_s26, [#allocation3], %s309_s7, %s309_s7, %s310_s27  }
 0x2b5   :  { %305 = dma.done.wait [#allocation3], 256  }
 0x2b6   :  { %306 = vsyncadd [#allocation3], 4294967040 }
 0x2b7   :  { %235 = vsyncpa [#allocation3], 1 }

</bundles_post_ra>
